<compile_context>
chip_gen: v5e
topology: v5e:2x2
jax: 0.10.0
libtpu: 0.0.40
codegen_flags: <defaults>
</compile_context>

<pallas_src>
import jax
import jax.numpy as jnp
import numpy as np
from jax.experimental import pallas as pl
from jax.experimental.pallas import tpu as pltpu

# ---- module constants (mirroring the PyTorch script) ----------------------
NumberOfEigenFun = 10                       # K
RW = 8                                      # EigneVectorSize = rw
NNOutputPerEigenFn = 2 * RW + 1
NumberOfOutputs = NumberOfEigenFun * NNOutputPerEigenFn         # 170
SizeOfOutputLayer = 2 * NumberOfOutputs                         # 340
VmatrixLocation = NumberOfEigenFun + NumberOfEigenFun * RW      # 90
BatchSize = 16

K = NumberOfEigenFun
B = BatchSize
BK = B * K                                  # 160  (Gram-layout width)
BR = B * RW                                 # 128  (prediction-layout height)
LW = BK                                     # packed-slab lane width (160)

# packed-slab row offsets (all multiples of 8 -> aligned sublane slices)
R_UO = 0                                    # U ortho raw   (32 rows)
R_VO = 32                                   # V ortho raw   (32 rows)
R_P = 64                                    # prediction LHS raw (128 rows)
R_D = R_P + BR                              # 192: d rows   (16 rows)
R_VT = R_D + B                              # 208: V_re^T   (10 rows used of 16)
R_VTI = R_VT + 16                           # 224: V_im^T   (10 rows used of 16)
SLAB_ROWS = R_VTI + 16                      # 240


def _indicator(shape, group, batch_axis):
    """ind[b, c] = 1.0 iff c // group == b, built without vector integer div."""
    ax_b, ax_c = (0, 1) if batch_axis == 0 else (1, 0)
    bi = jax.lax.broadcasted_iota(jnp.int32, shape, ax_b)
    ci = jax.lax.broadcasted_iota(jnp.int32, shape, ax_c)
    lo = bi * group
    return jnp.where((ci >= lo) & (ci < lo + group),
                     jnp.float32(1.0), jnp.float32(0.0))


def _custom_loss_kernel(pen_ref, slab_ref, out_ref):
    f32 = jnp.float32
    pen = pen_ref[0]

    # static 0/1 indicators for per-batch reductions / broadcasts
    ind_g = _indicator((B, BK), K, 0)      # (16, 160)
    ind_bp = _indicator((B, BR), RW, 0)    # (16, 128)
    ind_pb = _indicator((BR, B), RW, 1)    # (128, 16)

    # ===== orthogonality constraints:  sum_b ||Mn_b^H Mn_b - I||_F / B ======
    def ortho(row_off):
        raw = slab_ref[row_off:row_off + 32, :]               # (32, 160)
        top = raw[0:16, :]                                     # [M_re; M_im]
        ssq = jnp.sum(top * top, axis=0, keepdims=True)        # (1, 160)
        s = jnp.where(jnp.sqrt(ssq) != 1.0, jax.lax.rsqrt(ssq), f32(1.0))
        nrm = raw * s                                          # pre-normalized operands
        # one fused Gram:  [Re | Im] of Mn^H Mn in a single (160,320) matmul
        rhs = jnp.concatenate([nrm[0:16, :], nrm[16:32, :]], axis=1)   # (16, 320)
        g = jax.lax.dot_general(nrm[0:16, :], rhs,
                                dimension_numbers=(((0,), (0,)), ((), ())),
                                preferred_element_type=f32)            # (160, 320)
        e = g * g
        rs = jnp.dot(ind_g, e, preferred_element_type=f32)             # (16, 320)
        blocksum = jnp.sum(ind_g * (rs[:, :BK] + rs[:, BK:]),
                           axis=1, keepdims=True)                      # (16, 1)
        diag = ssq * s * s                                             # diag of the Gram
        tr_b = jnp.sum(ind_g * diag, axis=1, keepdims=True)            # (16, 1)
        # ||G_b - I||_F^2 + ||Im(G_b)||_F^2 = blocksum - 2 tr(G_b) + K
        fro2 = jnp.maximum(blocksum - 2.0 * tr_b + f32(K), f32(0.0))
        return jnp.sum(jnp.sqrt(fro2)) * f32(1.0 / B)

    c2 = ortho(R_UO)        # U
    c1 = ortho(R_VO)        # V

    # ===== kernels_pred = Un diag(d) Vn^H, relative Frobenius error =========
    pred_raw = slab_ref[R_P:R_P + BR, 0:4 * K + 2 * RW]       # (128, 56)
    up_rr = pred_raw[:, 0:2 * K]                               # [U_re | U_re]
    up_ii = pred_raw[:, 2 * K:4 * K]                           # [U_im | U_im]
    t_cat = pred_raw[:, 4 * K:4 * K + 2 * RW]                  # [T_re | T_im] compact

    ssq_u = jnp.dot(ind_bp, up_rr * up_rr + up_ii * up_ii,
                    preferred_element_type=f32)                # (16, 20), halves identical
    s_u = jnp.where(jnp.sqrt(ssq_u) != 1.0, jax.lax.rsqrt(ssq_u), f32(1.0))
    s_u4 = jnp.concatenate([s_u, s_u], axis=1)                 # (16, 40)
    d_all = slab_ref[R_D:R_D + B, 0:4 * K]                     # (16, 40) [dr|di|-di|dr]
    c_all = jnp.dot(ind_pb, s_u4 * d_all,
                    preferred_element_type=f32)                # (128, 40)
    lhs20 = up_rr * c_all[:, 0:2 * K] + up_ii * c_all[:, 2 * K:4 * K]   # [ar | ai]
    lhs = jnp.concatenate([lhs20, t_cat], axis=1)              # (128, 36)

    vtr = slab_ref[R_VT:R_VT + K, 0:BR]                        # (10, 128)
    vti = slab_ref[R_VTI:R_VTI + K, 0:BR]
    ssq_v = jnp.dot(vtr * vtr + vti * vti, ind_pb,
                    preferred_element_type=f32)                # (10, 16)
    s_v = jnp.where(jnp.sqrt(ssq_v) != 1.0, jax.lax.rsqrt(ssq_v), f32(1.0))
    sv = jnp.dot(s_v, ind_bp, preferred_element_type=f32)      # (10, 128)
    vrn = vtr * sv
    vin = vti * sv

    # constant tiling rows that fold  -T  into the same contraction
    rr8 = jax.lax.broadcasted_iota(jnp.int32, (RW, BR), 0)
    cc8 = jax.lax.broadcasted_iota(jnp.int32, (RW, BR), 1)
    t8 = jnp.where((cc8 & (RW - 1)) == rr8, f32(-1.0), f32(0.0))   # (8, 128)
    z8 = jnp.zeros((RW, BR), f32)
    rhs = jnp.concatenate(
        [jnp.concatenate([vrn, -vin], axis=1),
         jnp.concatenate([vin, vrn], axis=1),
         jnp.concatenate([t8, z8], axis=1),
         jnp.concatenate([z8, t8], axis=1)], axis=0)           # (36, 256)

    # diag blocks of dmat = [pred_re - T_re | pred_im - T_im]
    dmat = jnp.dot(lhs, rhs, preferred_element_type=f32)       # (128, 256)
    ep = dmat * dmat
    rs_p = jnp.dot(ind_bp, ep, preferred_element_type=f32)     # (16, 256)
    num2 = jnp.sum(ind_bp * (rs_p[:, :BR] + rs_p[:, BR:]))
    den2 = jnp.sum(t_cat * t_cat)
    mse = jnp.sqrt(num2) * jax.lax.rsqrt(den2)

    loss = mse + pen * (c1 + c2)
    out_ref[0, 0] = loss
    out_ref[0, 1] = mse
    out_ref[0, 2] = c1
    out_ref[0, 3] = c2


@jax.jit
def custom_loss(nn_output, train_re, train_im, penalty):
    assert nn_output.shape == (B, SizeOfOutputLayer)
    assert train_re.shape == (B, RW, RW) and train_im.shape == (B, RW, RW)
    f32 = jnp.float32

    re = nn_output[:, :NumberOfOutputs].astype(f32)
    im = nn_output[:, NumberOfOutputs:SizeOfOutputLayer].astype(f32)
    d_re = re[:, :K]
    d_im = im[:, :K]
    u_re = re[:, K:VmatrixLocation].reshape(B, RW, K)
    u_im = im[:, K:VmatrixLocation].reshape(B, RW, K)
    v_re = re[:, VmatrixLocation:NumberOfOutputs].reshape(B, RW, K)
    v_im = im[:, VmatrixLocation:NumberOfOutputs].reshape(B, RW, K)

    # ---- layout plumbing only (no math is moved out of the kernel) --------
    def ortho_raw(mr, mi):
        # rows 0..15: [M_re; M_im], rows 16..31: [M_im; -M_re], col = b*K+k
        both = jnp.concatenate(
            [jnp.concatenate([mr, mi], axis=1),
             jnp.concatenate([mi, -mr], axis=1)], axis=1)      # (B, 4rw, K)
        return jnp.transpose(both, (1, 0, 2)).reshape(4 * RW, BK)

    u_ortho = ortho_raw(u_re, u_im)                            # (32, 160)
    v_ortho = ortho_raw(v_re, v_im)                            # (32, 160)

    up_rr = jnp.concatenate([u_re, u_re], axis=2).reshape(BR, 2 * K)
    up_ii = jnp.concatenate([u_im, u_im], axis=2).reshape(BR, 2 * K)
    trc = train_re.reshape(BR, RW).astype(f32)
    tic = train_im.reshape(BR, RW).astype(f32)
    pred_block = jnp.concatenate(
        [up_rr, up_ii, trc, tic,
         jnp.zeros((BR, LW - (4 * K + 2 * RW)), f32)], axis=1)        # (128, 160)

    d_block = jnp.concatenate(
        [d_re, d_im, -d_im, d_re, jnp.zeros((B, LW - 4 * K), f32)], axis=1)  # (16, 160)

    v_rt = jnp.transpose(v_re, (2, 0, 1)).reshape(K, BR)       # (10, 128)
    v_it = jnp.transpose(v_im, (2, 0, 1)).reshape(K, BR)

    def vt_pad(x):
        x = jnp.concatenate([x, jnp.zeros((K, LW - BR), f32)], axis=1)
        return jnp.concatenate([x, jnp.zeros((16 - K, LW), f32)], axis=0)   # (16, 160)

    slab = jnp.concatenate(
        [u_ortho, v_ortho, pred_block, d_block, vt_pad(v_rt), vt_pad(v_it)],
        axis=0)                                                # (240, 160)
    assert slab.shape == (SLAB_ROWS, LW)

    pen = jnp.asarray([penalty], dtype=f32)

    vmem = pl.BlockSpec(memory_space=pltpu.MemorySpace.VMEM)
    smem = pl.BlockSpec(memory_space=pltpu.MemorySpace.SMEM)
    out = pl.pallas_call(
        _custom_loss_kernel,
        out_shape=jax.ShapeDtypeStruct((1, 4), jnp.float32),
        in_specs=[smem, vmem],
        out_specs=smem,
    )(pen, slab)
    return out[0, 0], out[0, 1], out[0, 2], out[0, 3]


def _numpy_reference(nn_output, train_re, train_im, penalty):
    nn = np.asarray(nn_output, np.float64)
    T = np.asarray(train_re, np.float64) + 1j * np.asarray(train_im, np.float64)
    Bn, Kn, rwn = nn.shape[0], NumberOfEigenFun, RW
    z = nn[:, :NumberOfOutputs] + 1j * nn[:, NumberOfOutputs:SizeOfOutputLayer]
    d = z[:, :Kn]
    U = z[:, Kn:VmatrixLocation].reshape(Bn, rwn, Kn)
    V = z[:, VmatrixLocation:NumberOfOutputs].reshape(Bn, rwn, Kn)

    def norm_cols(M):
        mag = np.linalg.norm(M, axis=1)
        return np.where((mag != 1.0)[:, None, :], M / mag[:, None, :], M)

    Un, Vn = norm_cols(U), norm_cols(V)

    def ortho(M):
        G = np.conj(np.transpose(M, (0, 2, 1))) @ M - np.eye(Kn)
        return np.sum(np.linalg.norm(G.reshape(Bn, Kn * Kn), axis=1)) / Bn

    c1, c2 = ortho(Vn), ortho(Un)
    D = np.zeros((Bn, Kn, Kn), complex)
    D[:, np.arange(Kn), np.arange(Kn)] = d
    pred = Un @ D @ np.conj(np.transpose(Vn, (0, 2, 1)))
    mse = np.linalg.norm(T - pred) / np.linalg.norm(T)
    return mse + penalty * (c1 + c2), mse, c1, c2


if __name__ == "__main__":
    key = jax.random.PRNGKey(0)
    k1, k2, k3 = jax.random.split(key, 3)

    nn_output = jax.random.normal(k1, (BatchSize, SizeOfOutputLayer),
                                  dtype=jnp.float32)
    train_re = jax.random.normal(k2, (BatchSize, RW, RW), dtype=jnp.float32)
    train_im = jax.random.normal(k3, (BatchSize, RW, RW), dtype=jnp.float32)
    penalty = 0.5

    loss, mse, c1, c2 = custom_loss(nn_output, train_re, train_im, penalty)
    jax.block_until_ready((loss, mse, c1, c2))

    ref = _numpy_reference(nn_output, train_re, train_im, penalty)
    got = (float(loss), float(mse), float(c1), float(c2))
    np.testing.assert_allclose(got, np.asarray(ref, np.float64),
                               rtol=2e-3, atol=2e-3)
    print("KERNEL_OK")
</pallas_src>

<mosaic_0001>
module attributes {stable_mosaic.version = 11 : i64} {
  func.func @_custom_loss_kernel(%arg0: memref<1xf32, #tpu.memory_space<smem>>, %arg1: memref<240x160xf32, #tpu.memory_space<vmem>>, %arg2: memref<1x4xf32, #tpu.memory_space<smem>>) attributes {dimension_semantics = [], scalar_prefetch = 0 : i64, scratch_operands = 0 : i64, tpu.core_type = #tpu.core_type<tc>} {
    %c0 = arith.constant 0 : index
    %0 = memref.load %arg0[%c0] : memref<1xf32, #tpu.memory_space<smem>>
    %1 = tpu.iota {dimensions = array<i32: 0>} : vector<16x160xi32>
    %2 = tpu.iota {dimensions = array<i32: 1>} : vector<16x160xi32>
    %c10_i32 = arith.constant 10 : i32
    %3 = vector.broadcast %c10_i32 : i32 to vector<16x160xi32>
    %4 = arith.muli %1, %3 : vector<16x160xi32>
    %5 = arith.cmpi sge, %2, %4 : vector<16x160xi32>
    %c10_i32_0 = arith.constant 10 : i32
    %6 = vector.broadcast %c10_i32_0 : i32 to vector<16x160xi32>
    %7 = arith.addi %4, %6 : vector<16x160xi32>
    %8 = arith.cmpi slt, %2, %7 : vector<16x160xi32>
    %9 = arith.andi %5, %8 : vector<16x160xi1>
    %cst = arith.constant 1.000000e+00 : f32
    %cst_1 = arith.constant 0.000000e+00 : f32
    %10 = vector.broadcast %cst : f32 to vector<16x160xf32>
    %11 = vector.broadcast %cst_1 : f32 to vector<16x160xf32>
    %12 = arith.select %9, %10, %11 : vector<16x160xi1>, vector<16x160xf32>
    %13 = tpu.iota {dimensions = array<i32: 0>} : vector<16x128xi32>
    %14 = tpu.iota {dimensions = array<i32: 1>} : vector<16x128xi32>
    %c8_i32 = arith.constant 8 : i32
    %15 = vector.broadcast %c8_i32 : i32 to vector<16x128xi32>
    %16 = arith.muli %13, %15 : vector<16x128xi32>
    %17 = arith.cmpi sge, %14, %16 : vector<16x128xi32>
    %c8_i32_2 = arith.constant 8 : i32
    %18 = vector.broadcast %c8_i32_2 : i32 to vector<16x128xi32>
    %19 = arith.addi %16, %18 : vector<16x128xi32>
    %20 = arith.cmpi slt, %14, %19 : vector<16x128xi32>
    %21 = arith.andi %17, %20 : vector<16x128xi1>
    %cst_3 = arith.constant 1.000000e+00 : f32
    %cst_4 = arith.constant 0.000000e+00 : f32
    %22 = vector.broadcast %cst_3 : f32 to vector<16x128xf32>
    %23 = vector.broadcast %cst_4 : f32 to vector<16x128xf32>
    %24 = arith.select %21, %22, %23 : vector<16x128xi1>, vector<16x128xf32>
    %25 = tpu.iota {dimensions = array<i32: 1>} : vector<128x16xi32>
    %26 = tpu.iota {dimensions = array<i32: 0>} : vector<128x16xi32>
    %c8_i32_5 = arith.constant 8 : i32
    %27 = vector.broadcast %c8_i32_5 : i32 to vector<128x16xi32>
    %28 = arith.muli %25, %27 : vector<128x16xi32>
    %29 = arith.cmpi sge, %26, %28 : vector<128x16xi32>
    %c8_i32_6 = arith.constant 8 : i32
    %30 = vector.broadcast %c8_i32_6 : i32 to vector<128x16xi32>
    %31 = arith.addi %28, %30 : vector<128x16xi32>
    %32 = arith.cmpi slt, %26, %31 : vector<128x16xi32>
    %33 = arith.andi %29, %32 : vector<128x16xi1>
    %cst_7 = arith.constant 1.000000e+00 : f32
    %cst_8 = arith.constant 0.000000e+00 : f32
    %34 = vector.broadcast %cst_7 : f32 to vector<128x16xf32>
    %35 = vector.broadcast %cst_8 : f32 to vector<128x16xf32>
    %36 = arith.select %33, %34, %35 : vector<128x16xi1>, vector<128x16xf32>
    %c0_9 = arith.constant 0 : index
    %c0_10 = arith.constant 0 : index
    %37 = vector.load %arg1[%c0_9, %c0_10] : memref<240x160xf32, #tpu.memory_space<vmem>>, vector<32x160xf32>
    %38 = vector.extract_strided_slice %37 {offsets = [0, 0], sizes = [16, 160], strides = [1, 1]} : vector<32x160xf32> to vector<16x160xf32>
    %39 = arith.mulf %38, %38 : vector<16x160xf32>
    %cst_11 = arith.constant dense<0.000000e+00> : vector<160xf32>
    %40 = vector.multi_reduction <add>, %39, %cst_11 [0] : vector<16x160xf32> to vector<160xf32>
    %41 = vector.shape_cast %40 : vector<160xf32> to vector<1x160xf32>
    %42 = math.sqrt %41 : vector<1x160xf32>
    %cst_12 = arith.constant 1.000000e+00 : f32
    %43 = vector.broadcast %cst_12 : f32 to vector<1x160xf32>
    %44 = arith.cmpf one, %42, %43 : vector<1x160xf32>
    %45 = math.rsqrt %41 : vector<1x160xf32>
    %cst_13 = arith.constant 1.000000e+00 : f32
    %46 = vector.broadcast %cst_13 : f32 to vector<1x160xf32>
    %47 = arith.select %44, %45, %46 : vector<1x160xi1>, vector<1x160xf32>
    %48 = vector.broadcast %47 : vector<1x160xf32> to vector<32x160xf32>
    %49 = arith.mulf %37, %48 : vector<32x160xf32>
    %50 = vector.extract_strided_slice %49 {offsets = [0, 0], sizes = [16, 160], strides = [1, 1]} : vector<32x160xf32> to vector<16x160xf32>
    %51 = vector.extract_strided_slice %49 {offsets = [16, 0], sizes = [16, 160], strides = [1, 1]} : vector<32x160xf32> to vector<16x160xf32>
    %52 = tpu.concatenate %50, %51 in 1 : vector<16x160xf32>, vector<16x160xf32> -> vector<16x320xf32>
    %53 = vector.extract_strided_slice %49 {offsets = [0, 0], sizes = [16, 160], strides = [1, 1]} : vector<32x160xf32> to vector<16x160xf32>
    %cst_14 = arith.constant dense<0.000000e+00> : vector<160x320xf32>
    %54 = tpu.matmul %53, %52, %cst_14 {dimension_numbers = #tpu.dot_dimension_numbers<[0], [0], [1], [1], [0, 1, 1, 1], [], []>} : vector<16x160xf32>, vector<16x320xf32>, vector<160x320xf32> -> vector<160x320xf32>
    %55 = arith.mulf %54, %54 : vector<160x320xf32>
    %cst_15 = arith.constant dense<0.000000e+00> : vector<16x320xf32>
    %56 = tpu.matmul %12, %55, %cst_15 {dimension_numbers = #tpu.dot_dimension_numbers<[1], [0], [0], [1], [0, 0, 1, 1], [], []>} : vector<16x160xf32>, vector<160x320xf32>, vector<16x320xf32> -> vector<16x320xf32>
    %57 = vector.extract_strided_slice %56 {offsets = [0, 0], sizes = [16, 160], strides = [1, 1]} : vector<16x320xf32> to vector<16x160xf32>
    %58 = vector.extract_strided_slice %56 {offsets = [0, 160], sizes = [16, 160], strides = [1, 1]} : vector<16x320xf32> to vector<16x160xf32>
    %59 = arith.addf %57, %58 : vector<16x160xf32>
    %60 = arith.mulf %12, %59 : vector<16x160xf32>
    %cst_16 = arith.constant dense<0.000000e+00> : vector<16xf32>
    %61 = vector.multi_reduction <add>, %60, %cst_16 [1] : vector<16x160xf32> to vector<16xf32>
    %62 = vector.shape_cast %61 : vector<16xf32> to vector<16x1xf32>
    %63 = arith.mulf %41, %47 : vector<1x160xf32>
    %64 = arith.mulf %63, %47 : vector<1x160xf32>
    %65 = vector.broadcast %64 : vector<1x160xf32> to vector<16x160xf32>
    %66 = arith.mulf %12, %65 : vector<16x160xf32>
    %cst_17 = arith.constant dense<0.000000e+00> : vector<16xf32>
    %67 = vector.multi_reduction <add>, %66, %cst_17 [1] : vector<16x160xf32> to vector<16xf32>
    %68 = vector.shape_cast %67 : vector<16xf32> to vector<16x1xf32>
    %cst_18 = arith.constant 2.000000e+00 : f32
    %69 = vector.broadcast %cst_18 : f32 to vector<16x1xf32>
    %70 = arith.mulf %69, %68 : vector<16x1xf32>
    %71 = arith.subf %62, %70 : vector<16x1xf32>
    %cst_19 = arith.constant 1.000000e+01 : f32
    %72 = vector.broadcast %cst_19 : f32 to vector<16x1xf32>
    %73 = arith.addf %71, %72 : vector<16x1xf32>
    %cst_20 = arith.constant 0.000000e+00 : f32
    %74 = vector.broadcast %cst_20 : f32 to vector<16x1xf32>
    %75 = arith.maximumf %73, %74 : vector<16x1xf32>
    %76 = math.sqrt %75 : vector<16x1xf32>
    %77 = vector.shape_cast %76 : vector<16x1xf32> to vector<1x16x1xf32>
    %cst_21 = arith.constant dense<0.000000e+00> : vector<1xf32>
    %78 = vector.multi_reduction <add>, %77, %cst_21 [1, 2] : vector<1x16x1xf32> to vector<1xf32>
    %79 = vector.shape_cast %78 : vector<1xf32> to vector<1x1x1xf32>
    %80 = vector.extract %79[0, 0, 0] : f32 from vector<1x1x1xf32>
    %cst_22 = arith.constant 6.250000e-02 : f32
    %81 = arith.mulf %80, %cst_22 : f32
    %c32 = arith.constant 32 : index
    %c0_23 = arith.constant 0 : index
    %82 = vector.load %arg1[%c32, %c0_23] : memref<240x160xf32, #tpu.memory_space<vmem>>, vector<32x160xf32>
    %83 = vector.extract_strided_slice %82 {offsets = [0, 0], sizes = [16, 160], strides = [1, 1]} : vector<32x160xf32> to vector<16x160xf32>
    %84 = arith.mulf %83, %83 : vector<16x160xf32>
    %cst_24 = arith.constant dense<0.000000e+00> : vector<160xf32>
    %85 = vector.multi_reduction <add>, %84, %cst_24 [0] : vector<16x160xf32> to vector<160xf32>
    %86 = vector.shape_cast %85 : vector<160xf32> to vector<1x160xf32>
    %87 = math.sqrt %86 : vector<1x160xf32>
    %cst_25 = arith.constant 1.000000e+00 : f32
    %88 = vector.broadcast %cst_25 : f32 to vector<1x160xf32>
    %89 = arith.cmpf one, %87, %88 : vector<1x160xf32>
    %90 = math.rsqrt %86 : vector<1x160xf32>
    %cst_26 = arith.constant 1.000000e+00 : f32
    %91 = vector.broadcast %cst_26 : f32 to vector<1x160xf32>
    %92 = arith.select %89, %90, %91 : vector<1x160xi1>, vector<1x160xf32>
    %93 = vector.broadcast %92 : vector<1x160xf32> to vector<32x160xf32>
    %94 = arith.mulf %82, %93 : vector<32x160xf32>
    %95 = vector.extract_strided_slice %94 {offsets = [0, 0], sizes = [16, 160], strides = [1, 1]} : vector<32x160xf32> to vector<16x160xf32>
    %96 = vector.extract_strided_slice %94 {offsets = [16, 0], sizes = [16, 160], strides = [1, 1]} : vector<32x160xf32> to vector<16x160xf32>
    %97 = tpu.concatenate %95, %96 in 1 : vector<16x160xf32>, vector<16x160xf32> -> vector<16x320xf32>
    %98 = vector.extract_strided_slice %94 {offsets = [0, 0], sizes = [16, 160], strides = [1, 1]} : vector<32x160xf32> to vector<16x160xf32>
    %cst_27 = arith.constant dense<0.000000e+00> : vector<160x320xf32>
    %99 = tpu.matmul %98, %97, %cst_27 {dimension_numbers = #tpu.dot_dimension_numbers<[0], [0], [1], [1], [0, 1, 1, 1], [], []>} : vector<16x160xf32>, vector<16x320xf32>, vector<160x320xf32> -> vector<160x320xf32>
    %100 = arith.mulf %99, %99 : vector<160x320xf32>
    %cst_28 = arith.constant dense<0.000000e+00> : vector<16x320xf32>
    %101 = tpu.matmul %12, %100, %cst_28 {dimension_numbers = #tpu.dot_dimension_numbers<[1], [0], [0], [1], [0, 0, 1, 1], [], []>} : vector<16x160xf32>, vector<160x320xf32>, vector<16x320xf32> -> vector<16x320xf32>
    %102 = vector.extract_strided_slice %101 {offsets = [0, 0], sizes = [16, 160], strides = [1, 1]} : vector<16x320xf32> to vector<16x160xf32>
    %103 = vector.extract_strided_slice %101 {offsets = [0, 160], sizes = [16, 160], strides = [1, 1]} : vector<16x320xf32> to vector<16x160xf32>
    %104 = arith.addf %102, %103 : vector<16x160xf32>
    %105 = arith.mulf %12, %104 : vector<16x160xf32>
    %cst_29 = arith.constant dense<0.000000e+00> : vector<16xf32>
    %106 = vector.multi_reduction <add>, %105, %cst_29 [1] : vector<16x160xf32> to vector<16xf32>
    %107 = vector.shape_cast %106 : vector<16xf32> to vector<16x1xf32>
    %108 = arith.mulf %86, %92 : vector<1x160xf32>
    %109 = arith.mulf %108, %92 : vector<1x160xf32>
    %110 = vector.broadcast %109 : vector<1x160xf32> to vector<16x160xf32>
    %111 = arith.mulf %12, %110 : vector<16x160xf32>
    %cst_30 = arith.constant dense<0.000000e+00> : vector<16xf32>
    %112 = vector.multi_reduction <add>, %111, %cst_30 [1] : vector<16x160xf32> to vector<16xf32>
    %113 = vector.shape_cast %112 : vector<16xf32> to vector<16x1xf32>
    %cst_31 = arith.constant 2.000000e+00 : f32
    %114 = vector.broadcast %cst_31 : f32 to vector<16x1xf32>
    %115 = arith.mulf %114, %113 : vector<16x1xf32>
    %116 = arith.subf %107, %115 : vector<16x1xf32>
    %cst_32 = arith.constant 1.000000e+01 : f32
    %117 = vector.broadcast %cst_32 : f32 to vector<16x1xf32>
    %118 = arith.addf %116, %117 : vector<16x1xf32>
    %cst_33 = arith.constant 0.000000e+00 : f32
    %119 = vector.broadcast %cst_33 : f32 to vector<16x1xf32>
    %120 = arith.maximumf %118, %119 : vector<16x1xf32>
    %121 = math.sqrt %120 : vector<16x1xf32>
    %122 = vector.shape_cast %121 : vector<16x1xf32> to vector<1x16x1xf32>
    %cst_34 = arith.constant dense<0.000000e+00> : vector<1xf32>
    %123 = vector.multi_reduction <add>, %122, %cst_34 [1, 2] : vector<1x16x1xf32> to vector<1xf32>
    %124 = vector.shape_cast %123 : vector<1xf32> to vector<1x1x1xf32>
    %125 = vector.extract %124[0, 0, 0] : f32 from vector<1x1x1xf32>
    %cst_35 = arith.constant 6.250000e-02 : f32
    %126 = arith.mulf %125, %cst_35 : f32
    %c64 = arith.constant 64 : index
    %c0_36 = arith.constant 0 : index
    %127 = vector.load %arg1[%c64, %c0_36] : memref<240x160xf32, #tpu.memory_space<vmem>>, vector<128x56xf32>
    %128 = vector.extract_strided_slice %127 {offsets = [0, 0], sizes = [128, 20], strides = [1, 1]} : vector<128x56xf32> to vector<128x20xf32>
    %129 = vector.extract_strided_slice %127 {offsets = [0, 20], sizes = [128, 20], strides = [1, 1]} : vector<128x56xf32> to vector<128x20xf32>
    %130 = vector.extract_strided_slice %127 {offsets = [0, 40], sizes = [128, 16], strides = [1, 1]} : vector<128x56xf32> to vector<128x16xf32>
    %131 = arith.mulf %128, %128 : vector<128x20xf32>
    %132 = arith.mulf %129, %129 : vector<128x20xf32>
    %133 = arith.addf %131, %132 : vector<128x20xf32>
    %cst_37 = arith.constant dense<0.000000e+00> : vector<16x20xf32>
    %134 = tpu.matmul %24, %133, %cst_37 {dimension_numbers = #tpu.dot_dimension_numbers<[1], [0], [0], [1], [0, 0, 1, 1], [], []>} : vector<16x128xf32>, vector<128x20xf32>, vector<16x20xf32> -> vector<16x20xf32>
    %135 = math.sqrt %134 : vector<16x20xf32>
    %cst_38 = arith.constant 1.000000e+00 : f32
    %136 = vector.broadcast %cst_38 : f32 to vector<16x20xf32>
    %137 = arith.cmpf one, %135, %136 : vector<16x20xf32>
    %138 = math.rsqrt %134 : vector<16x20xf32>
    %cst_39 = arith.constant 1.000000e+00 : f32
    %139 = vector.broadcast %cst_39 : f32 to vector<16x20xf32>
    %140 = arith.select %137, %138, %139 : vector<16x20xi1>, vector<16x20xf32>
    %141 = tpu.concatenate %140, %140 in 1 : vector<16x20xf32>, vector<16x20xf32> -> vector<16x40xf32>
    %c192 = arith.constant 192 : index
    %c0_40 = arith.constant 0 : index
    %142 = vector.load %arg1[%c192, %c0_40] : memref<240x160xf32, #tpu.memory_space<vmem>>, vector<16x40xf32>
    %143 = arith.mulf %141, %142 : vector<16x40xf32>
    %cst_41 = arith.constant dense<0.000000e+00> : vector<128x40xf32>
    %144 = tpu.matmul %36, %143, %cst_41 {dimension_numbers = #tpu.dot_dimension_numbers<[1], [0], [0], [1], [0, 0, 1, 1], [], []>} : vector<128x16xf32>, vector<16x40xf32>, vector<128x40xf32> -> vector<128x40xf32>
    %145 = vector.extract_strided_slice %144 {offsets = [0, 0], sizes = [128, 20], strides = [1, 1]} : vector<128x40xf32> to vector<128x20xf32>
    %146 = arith.mulf %128, %145 : vector<128x20xf32>
    %147 = vector.extract_strided_slice %144 {offsets = [0, 20], sizes = [128, 20], strides = [1, 1]} : vector<128x40xf32> to vector<128x20xf32>
    %148 = arith.mulf %129, %147 : vector<128x20xf32>
    %149 = arith.addf %146, %148 : vector<128x20xf32>
    %150 = tpu.concatenate %149, %130 in 1 : vector<128x20xf32>, vector<128x16xf32> -> vector<128x36xf32>
    %c208 = arith.constant 208 : index
    %c0_42 = arith.constant 0 : index
    %151 = vector.load %arg1[%c208, %c0_42] : memref<240x160xf32, #tpu.memory_space<vmem>>, vector<10x128xf32>
    %c224 = arith.constant 224 : index
    %c0_43 = arith.constant 0 : index
    %152 = vector.load %arg1[%c224, %c0_43] : memref<240x160xf32, #tpu.memory_space<vmem>>, vector<10x128xf32>
    %153 = arith.mulf %151, %151 : vector<10x128xf32>
    %154 = arith.mulf %152, %152 : vector<10x128xf32>
    %155 = arith.addf %153, %154 : vector<10x128xf32>
    %cst_44 = arith.constant dense<0.000000e+00> : vector<10x16xf32>
    %156 = tpu.matmul %155, %36, %cst_44 {dimension_numbers = #tpu.dot_dimension_numbers<[1], [0], [0], [1], [0, 0, 1, 1], [], []>} : vector<10x128xf32>, vector<128x16xf32>, vector<10x16xf32> -> vector<10x16xf32>
    %157 = math.sqrt %156 : vector<10x16xf32>
    %cst_45 = arith.constant 1.000000e+00 : f32
    %158 = vector.broadcast %cst_45 : f32 to vector<10x16xf32>
    %159 = arith.cmpf one, %157, %158 : vector<10x16xf32>
    %160 = math.rsqrt %156 : vector<10x16xf32>
    %cst_46 = arith.constant 1.000000e+00 : f32
    %161 = vector.broadcast %cst_46 : f32 to vector<10x16xf32>
    %162 = arith.select %159, %160, %161 : vector<10x16xi1>, vector<10x16xf32>
    %cst_47 = arith.constant dense<0.000000e+00> : vector<10x128xf32>
    %163 = tpu.matmul %162, %24, %cst_47 {dimension_numbers = #tpu.dot_dimension_numbers<[1], [0], [0], [1], [0, 0, 1, 1], [], []>} : vector<10x16xf32>, vector<16x128xf32>, vector<10x128xf32> -> vector<10x128xf32>
    %164 = arith.mulf %151, %163 : vector<10x128xf32>
    %165 = arith.mulf %152, %163 : vector<10x128xf32>
    %166 = tpu.iota {dimensions = array<i32: 0>} : vector<8x128xi32>
    %167 = tpu.iota {dimensions = array<i32: 1>} : vector<8x128xi32>
    %c7_i32 = arith.constant 7 : i32
    %168 = vector.broadcast %c7_i32 : i32 to vector<8x128xi32>
    %169 = arith.andi %167, %168 : vector<8x128xi32>
    %170 = arith.cmpi eq, %169, %166 : vector<8x128xi32>
    %cst_48 = arith.constant -1.000000e+00 : f32
    %cst_49 = arith.constant 0.000000e+00 : f32
    %171 = vector.broadcast %cst_48 : f32 to vector<8x128xf32>
    %172 = vector.broadcast %cst_49 : f32 to vector<8x128xf32>
    %173 = arith.select %170, %171, %172 : vector<8x128xi1>, vector<8x128xf32>
    %cst_50 = arith.constant 0.000000e+00 : f32
    %174 = vector.broadcast %cst_50 : f32 to vector<8x128xf32>
    %cst_51 = arith.constant 0.000000e+00 : f32
    %175 = vector.broadcast %cst_51 : f32 to vector<10x128xf32>
    %176 = arith.subf %175, %165 : vector<10x128xf32>
    %177 = tpu.concatenate %164, %176 in 1 : vector<10x128xf32>, vector<10x128xf32> -> vector<10x256xf32>
    %178 = tpu.concatenate %165, %164 in 1 : vector<10x128xf32>, vector<10x128xf32> -> vector<10x256xf32>
    %179 = tpu.concatenate %173, %174 in 1 : vector<8x128xf32>, vector<8x128xf32> -> vector<8x256xf32>
    %180 = tpu.concatenate %174, %173 in 1 : vector<8x128xf32>, vector<8x128xf32> -> vector<8x256xf32>
    %181 = tpu.concatenate %177, %178, %179, %180 in 0 : vector<10x256xf32>, vector<10x256xf32>, vector<8x256xf32>, vector<8x256xf32> -> vector<36x256xf32>
    %cst_52 = arith.constant dense<0.000000e+00> : vector<128x256xf32>
    %182 = tpu.matmul %150, %181, %cst_52 {dimension_numbers = #tpu.dot_dimension_numbers<[1], [0], [0], [1], [0, 0, 1, 1], [], []>} : vector<128x36xf32>, vector<36x256xf32>, vector<128x256xf32> -> vector<128x256xf32>
    %183 = arith.mulf %182, %182 : vector<128x256xf32>
    %cst_53 = arith.constant dense<0.000000e+00> : vector<16x256xf32>
    %184 = tpu.matmul %24, %183, %cst_53 {dimension_numbers = #tpu.dot_dimension_numbers<[1], [0], [0], [1], [0, 0, 1, 1], [], []>} : vector<16x128xf32>, vector<128x256xf32>, vector<16x256xf32> -> vector<16x256xf32>
    %185 = vector.extract_strided_slice %184 {offsets = [0, 0], sizes = [16, 128], strides = [1, 1]} : vector<16x256xf32> to vector<16x128xf32>
    %186 = vector.extract_strided_slice %184 {offsets = [0, 128], sizes = [16, 128], strides = [1, 1]} : vector<16x256xf32> to vector<16x128xf32>
    %187 = arith.addf %185, %186 : vector<16x128xf32>
    %188 = arith.mulf %24, %187 : vector<16x128xf32>
    %189 = vector.shape_cast %188 : vector<16x128xf32> to vector<1x16x128xf32>
    %cst_54 = arith.constant dense<0.000000e+00> : vector<1xf32>
    %190 = vector.multi_reduction <add>, %189, %cst_54 [1, 2] : vector<1x16x128xf32> to vector<1xf32>
    %191 = vector.shape_cast %190 : vector<1xf32> to vector<1x1x1xf32>
    %192 = vector.extract %191[0, 0, 0] : f32 from vector<1x1x1xf32>
    %193 = arith.mulf %130, %130 : vector<128x16xf32>
    %194 = vector.shape_cast %193 : vector<128x16xf32> to vector<1x128x16xf32>
    %cst_55 = arith.constant dense<0.000000e+00> : vector<1xf32>
    %195 = vector.multi_reduction <add>, %194, %cst_55 [1, 2] : vector<1x128x16xf32> to vector<1xf32>
    %196 = vector.shape_cast %195 : vector<1xf32> to vector<1x1x1xf32>
    %197 = vector.extract %196[0, 0, 0] : f32 from vector<1x1x1xf32>
    %198 = math.sqrt %192 : f32
    %199 = math.rsqrt %197 : f32
    %200 = arith.mulf %198, %199 : f32
    %201 = arith.addf %126, %81 : f32
    %202 = arith.mulf %0, %201 : f32
    %203 = arith.addf %200, %202 : f32
    %c0_56 = arith.constant 0 : index
    %c0_57 = arith.constant 0 : index
    %204 = memref.load %arg2[%c0_56, %c0_57] : memref<1x4xf32, #tpu.memory_space<smem>>
    memref.store %203, %arg2[%c0_56, %c0_57] : memref<1x4xf32, #tpu.memory_space<smem>>
    %c0_58 = arith.constant 0 : index
    %c1 = arith.constant 1 : index
    %205 = memref.load %arg2[%c0_58, %c1] : memref<1x4xf32, #tpu.memory_space<smem>>
    memref.store %200, %arg2[%c0_58, %c1] : memref<1x4xf32, #tpu.memory_space<smem>>
    %c0_59 = arith.constant 0 : index
    %c2 = arith.constant 2 : index
    %206 = memref.load %arg2[%c0_59, %c2] : memref<1x4xf32, #tpu.memory_space<smem>>
    memref.store %126, %arg2[%c0_59, %c2] : memref<1x4xf32, #tpu.memory_space<smem>>
    %c0_60 = arith.constant 0 : index
    %c3 = arith.constant 3 : index
    %207 = memref.load %arg2[%c0_60, %c3] : memref<1x4xf32, #tpu.memory_space<smem>>
    memref.store %81, %arg2[%c0_60, %c3] : memref<1x4xf32, #tpu.memory_space<smem>>
    return
  }
}

</mosaic_0001>

<bundles_post_ra>
// kernel: neg.4
= control target key start
LH: loop header
LB: loop body
LE: loop exit
PB: predicated region body
PF: predicated region fallthrough
CT: control target
= control target key end

     0   :  { %s264_s0 = inlined_call_operand.vmem [shape: f32[16,8,10], index: 0, kind: input, shape index: {}]   ;;  %s265_s1 = inlined_call_operand.vmem [shape: f32[16,8,10], index: 1, kind: output, shape index: {}]  }
   0x1   :  { %v2_v0 = vld [vmem:[%s264_s0] sm:$0xff]  ;;  %v128_v1 = vld [vmem:[%s264_s0 + $0x8] sm:$0xff]  ;;  %v130_v2 = vld [vmem:[%s264_s0 + $0x10] sm:$0xff] }
   0x2   :  { %v5_v3 = vxor.u32 2147483648, %v2_v0  ;;  %v12_v4 = vxor.u32 2147483648, %v128_v1  ;;  %v20_v5 = vxor.u32 2147483648, %v130_v2  ;;  %v132_v6 = vld [vmem:[%s264_s0 + $0x18] sm:$0xff]  ;;  %v134_v7 = vld [vmem:[%s264_s0 + $0x20] sm:$0xff]  ;;  %v136_v8 = vld [vmem:[%s264_s0 + $0x28] sm:$0xff] }
   0x3   :  { %v28_v9 = vxor.u32 2147483648, %v132_v6  ;;  %v138_v10 = vld [vmem:[%s264_s0 + $0x30] sm:$0xff]  ;;  %v36_v11 = vxor.u32 2147483648, %v134_v7  ;;  %v140_v12 = vld [vmem:[%s264_s0 + $0x38] sm:$0xff]  ;;  %v44_v13 = vxor.u32 2147483648, %v136_v8  ;;  %v142_v14 = vld [vmem:[%s264_s0 + $0x40] sm:$0xff] }
   0x4   :  { %7 = vst [vmem:[%s265_s1] sm:$0xff] %v5_v3  ;;  %v52_v15 = vxor.u32 2147483648, %v138_v10  ;;  %v144_v16 = vld [vmem:[%s264_s0 + $0x48] sm:$0xff]  ;;  %v60_v17 = vxor.u32 2147483648, %v140_v12  ;;  %v146_v18 = vld [vmem:[%s264_s0 + $0x50] sm:$0xff]  ;;  %v68_v19 = vxor.u32 2147483648, %v142_v14  ;;  %v148_v20 = vld [vmem:[%s264_s0 + $0x58] sm:$0xff] }
   0x5   :  { %129 = vst [vmem:[%s265_s1 + $0x8] sm:$0xff] %v12_v4  ;;  %v76_v21 = vxor.u32 2147483648, %v144_v16  ;;  %v150_v22 = vld [vmem:[%s264_s0 + $0x60] sm:$0xff]  ;;  %v84_v23 = vxor.u32 2147483648, %v146_v18  ;;  %v152_v24 = vld [vmem:[%s264_s0 + $0x68] sm:$0xff]  ;;  %v92_v25 = vxor.u32 2147483648, %v148_v20 }
   0x6   :  { %131 = vst [vmem:[%s265_s1 + $0x10] sm:$0xff] %v20_v5  ;;  %v154_v26 = vld [vmem:[%s264_s0 + $0x70] sm:$0xff]  ;;  %v100_v27 = vxor.u32 2147483648, %v150_v22  ;;  %v156_v28 = vld [vmem:[%s264_s0 + $0x78] sm:$0xff]  ;;  %v108_v29 = vxor.u32 2147483648, %v152_v24 }
   0x7   :  { %133 = vst [vmem:[%s265_s1 + $0x18] sm:$0xff] %v28_v9  ;;  %v116_v30 = vxor.u32 2147483648, %v154_v26  ;;  %v124_v31 = vxor.u32 2147483648, %v156_v28 }
   0x8   :  { %135 = vst [vmem:[%s265_s1 + $0x20] sm:$0xff] %v36_v11 }
   0x9   :  { %137 = vst [vmem:[%s265_s1 + $0x28] sm:$0xff] %v44_v13 }
   0xa   :  { %139 = vst [vmem:[%s265_s1 + $0x30] sm:$0xff] %v52_v15 }
   0xb   :  { %141 = vst [vmem:[%s265_s1 + $0x38] sm:$0xff] %v60_v17 }
   0xc   :  { %143 = vst [vmem:[%s265_s1 + $0x40] sm:$0xff] %v68_v19 }
   0xd   :  { %145 = vst [vmem:[%s265_s1 + $0x48] sm:$0xff] %v76_v21 }
   0xe   :  { %147 = vst [vmem:[%s265_s1 + $0x50] sm:$0xff] %v84_v23 }
   0xf   :  { %149 = vst [vmem:[%s265_s1 + $0x58] sm:$0xff] %v92_v25 }
  0x10   :  { %151 = vst [vmem:[%s265_s1 + $0x60] sm:$0xff] %v100_v27 }
  0x11   :  { %153 = vst [vmem:[%s265_s1 + $0x68] sm:$0xff] %v108_v29 }
  0x12   :  { %155 = vst [vmem:[%s265_s1 + $0x70] sm:$0xff] %v116_v30 }
  0x13   :  { %157 = vst [vmem:[%s265_s1 + $0x78] sm:$0xff] %v124_v31 }

// kernel: custom_loss.1
= control target key start
LH: loop header
LB: loop body
LE: loop exit
PB: predicated region body
PF: predicated region fallthrough
CT: control target
= control target key end

     0   :  { %vm4942_vm0 = vcmask 261120   ;;  %s4890_s0 = inlined_call_operand.<no memory space> [shape: f32[1], index: 0, kind: input, shape index: {}]   ;;  %s4891_s1 = inlined_call_operand.vmem [shape: f32[240,160], index: 1, kind: input, shape index: {}]   ;;  %s4892_s2 = inlined_call_operand.vmem [shape: f32[1,4], index: 2, kind: output, shape index: {}]  }
   0x1   :  { %v3042_v0 = vld [vmem:[%s4891_s1] sm:$0xff]  ;;  %v3047_v1 = vld [vmem:[%s4891_s1 + $0x10] sm:$0xff]  ;;  %v3052_v2 = vld [vmem:[%s4891_s1 + $0x8] sm:$0xff] }
   0x2   :  { %v140_v3 = vmul.f32 %v3042_v0, %v3042_v0  ;;  %v142_v4 = vmul.f32 %v3047_v1, %v3047_v1  ;;  %v3061_v5 = vld [vmem:[%s4891_s1 + $0x18] sm:$0xff]  ;;  %v141_v6 = vmul.f32 %v3052_v2, %v3052_v2 }
   0x3   :  { %8 = vsyncpa [#allocation4], 0  ;;  %v143_v7 = vmul.f32 %v3061_v5, %v3061_v5  ;;  %v136_v43 = vld [vmem:[%s4891_s1 + $0x20] sm:$0xff]  ;;  %v138_v44 = vld [vmem:[%s4891_s1 + $0x30] sm:$0xff]  ;;  %s3016_s25 = smov 32   ;;  %vm4943_vm13 = vcmask 130048  }
   0x4   :  { %v144_v8 = vadd.f32 %v142_v4, %v140_v3  ;;  %v152_v9 = vsel %vm4942_vm0, %v141_v6, 0.0  ;;  %v137_v54 = vld [vmem:[%s4891_s1 + $0x28] sm:$0xff]  ;;  %v139_v55 = vld [vmem:[%s4891_s1 + $0x38] sm:$0xff]  ;;  %s3019_s16 = smov 108   ;;  %s3020_s20 = smov 20  }
   0x5   :  { %v153_v10 = vsel %vm4942_vm0, %v143_v7, 0.0  ;;  %s3021_s26 = smov 96   ;;  %s2686_s12 = sshll.u32 %s4892_s2, 4  ;;  %s2687_s12 = int_to_ptr.vmem [resolvable:$true] %s2686_s12 }
   0x6   :  { %v145_v11 = vrot.slane %v144_v8, 4  ;;  %v154_v12 = vadd.f32 %v153_v10, %v152_v9  ;;  %s3023_s15 = smov [#allocation3]  }
   0x8   :  { %v146_v13 = vadd.f32 %v145_v11, %v144_v8  ;;  %v155_v14 = vrot.slane %v154_v12, 4  ;;  %v896_v11 = vld [vmem:[%s4891_s1 + $0x50] sm:$0xff] }
   0xa   :  { %v147_v15 = vrot.slane %v146_v13, 2  ;;  %v156_v16 = vadd.f32 %v155_v14, %v154_v12 }
   0xc   :  { %v148_v17 = vadd.f32 %v147_v15, %v146_v13  ;;  %v157_v18 = vrot.slane %v156_v16, 2  ;;  %v904_v13 = vmul.f32 %v896_v11, %v896_v11 }
   0xe   :  { %v149_v19 = vrot.slane %v148_v17, 1  ;;  %v158_v20 = vadd.f32 %v157_v18, %v156_v16 }
  0x10   :  { %v3069_v21 = vadd.f32 %v149_v19, %v148_v17  ;;  %v159_v22 = vrot.slane %v158_v20, 1 }
  0x12   :  { %4966 = vst [vmem:[#allocation6_spill] sm:$0xff] %v3069_v21  ;;  %2964 = vrsqrt.f32 %v3069_v21  ;;  %v3072_v23 = vadd.f32 %v159_v22, %v158_v20  ;;  %vm193_vm1 = vweird.f32 %v3069_v21  ;;  %vm168_vm3 = vcmp.eq.f32.partialorder %v3069_v21, inf }
  0x13   :  { %v171_v34 = vand.u32 2147483648, %v3069_v21  ;;  %vm170_vm7 = vcmp.eq.f32.partialorder %v3069_v21, 0.0 }
  0x14   :  { %4967 = vst [vmem:[#allocation7_spill] sm:$0xff] %v3072_v23  ;;  %2966 = vrsqrt.f32 %v3072_v23  ;;  %vm203_vm5 = vweird.f32 %v3072_v23  ;;  %vm180_vm8 = vcmp.eq.f32.partialorder %v3072_v23, inf  ;;  %v183_v46 = vand.u32 2147483648, %v3072_v23 }
  0x15   :  { %vm182_vm11 = vcmp.eq.f32.partialorder %v3072_v23, 0.0 }
  0x18   :  { %v2965_v24 = vpop.eup %2964 }
  0x19   :  { %v162_v25 = vmul.f32 %v2965_v24, %v3069_v21  ;;  %vm194_vm2 = vweird.f32 %v2965_v24 }
  0x1a   :  { %v2967_v26 = vpop.eup %2966  ;;  %vm3080_vm4 = vmor %vm193_vm1, %vm194_vm2 }
  0x1b   :  { %v163_v27 = vmul.f32 %v2965_v24, %v162_v25  ;;  %v174_v28 = vmul.f32 %v2967_v26, %v3072_v23  ;;  %vm204_vm6 = vweird.f32 %v2967_v26 }
  0x1c   :  { %vm3091_vm9 = vmor %vm203_vm5, %vm204_vm6 }
  0x1d   :  { %v164_v29 = vmul.f32 0.5, %v163_v27  ;;  %v175_v30 = vmul.f32 %v2967_v26, %v174_v28 }
  0x1f   :  { %v165_v31 = vsub.f32 1.5, %v164_v29  ;;  %v176_v32 = vmul.f32 0.5, %v175_v30 }
  0x21   :  { %v166_v33 = vmul.f32 %v2965_v24, %v165_v31  ;;  %v177_v36 = vsub.f32 1.5, %v176_v32 }
  0x23   :  { %v167_v37 = vmul.f32 %v166_v33, %v3069_v21  ;;  %v178_v38 = vmul.f32 %v2967_v26, %v177_v36  ;;  %v196_v40 = vsel %vm3080_vm4, %v2965_v24, %v166_v33 }
  0x25   :  { %v169_v39 = vsel %vm168_vm3, %v3069_v21, %v167_v37  ;;  %v179_v45 = vmul.f32 %v178_v38, %v3072_v23  ;;  %v206_v49 = vsel %vm3091_vm9, %v2967_v26, %v178_v38 }
  0x26   :  { %v172_v42 = vsel %vm170_vm7, %v171_v34, %v169_v39 }
  0x27   :  { %vm185_vm10 = vcmp.ne.f32.partialorder %v172_v42, 1.0  ;;  %v181_v48 = vsel %vm180_vm8, %v3072_v23, %v179_v45 }
  0x28   :  { %v3104_v47 = vsel %vm185_vm10, %v196_v40, 1.0  ;;  %v184_v56 = vsel %vm182_vm11, %v183_v46, %v181_v48 }
  0x29   :  { %4972 = vst [vmem:[#allocation8_spill] sm:$0xff] %v3104_v47  ;;  %v209_v50 = vmul.f32 %v3104_v47, %v3042_v0  ;;  %v213_v51 = vmul.f32 %v3104_v47, %v136_v43  ;;  %v215_v52 = vmul.f32 %v3104_v47, %v138_v44  ;;  %v211_v53 = vmul.f32 %v3104_v47, %v3047_v1 }
  0x2a   :  { %vm186_vm12 = vcmp.ne.f32.partialorder %v184_v56, 1.0 }
  0x2b   :  { %237 = vxpose.xlu0.b32.start [1/2] (short) %v209_v50, 128  ;;  %v2944_v57 = vpack.i.bf16 %v213_v51, %v215_v52  ;;  %2916 = vmatpush.msra.mxu1 %v211_v53  ;;  %v3121_v58 = vsel %vm186_vm12, %v206_v49, 1.0 }
  0x2c   :  { %4973 = vst [vmem:[#allocation9_spill] sm:$0xff] %v3121_v58  ;;  %376 = vmatpush.msra.mxu0 %v211_v53  ;;  %v214_v59 = vmul.f32 %v3121_v58, %v137_v54  ;;  %v216_v60 = vmul.f32 %v3121_v58, %v139_v55  ;;  %v210_v62 = vmul.f32 %v3121_v58, %v3052_v2 }
  0x2d   :  { %2945 = vrot.lane.b32.xlu1 %v2944_v57, %s3016_s25  ;;  %2917 = vmatpush.msra.mxu1 %v209_v50  ;;  %v212_v63 = vmul.f32 %v3121_v58, %v3061_v5  ;;  %v894_v5 = vld [vmem:[%s4891_s1 + $0x40] sm:$0xff] }
  0x2e   :  { %377 = vmatpush.msra.mxu0 %v209_v50  ;;  %v2949_v61 = vpack.i.bf16 %v214_v59, %v216_v60  ;;  %v902_v12 = vmul.f32 %v894_v5, %v894_v5 }
  0x30   :  { %2950 = vrot.lane.b32.xlu2 %v2949_v61, %s3016_s25  ;;  %v906_v14 = vadd.f32 %v904_v13, %v902_v12 }
  0x32   :  { %v907_v15 = vrot.slane %v906_v14, 4 }
  0x33   :  { %238 = vxpose.xlu0.b32.end [2/2] (short) %v211_v53, 128 }
  0x34   :  { %v908_v16 = vadd.f32 %v907_v15, %v906_v14 }
  0x36   :  { %v909_v17 = vrot.slane %v908_v16, 2 }
  0x38   :  { %v910_v18 = vadd.f32 %v909_v17, %v908_v16  ;;  %v3295_v17 = vld [vmem:[%s4891_s1 + $0x48] sm:$0xff] }
  0x3a   :  { %v911_v19 = vrot.slane %v910_v18, 1 }
  0x3c   :  { %v3147_v20 = vadd.f32 %v911_v19, %v910_v18  ;;  %v3300_v18 = vld [vmem:[%s4891_s1 + $0x58] sm:$0xff] }
  0x3e   :  { %4974 = vst [vmem:[#allocation10_spill] sm:$0xff] %v3147_v20  ;;  %2968 = vrsqrt.f32 %v3147_v20  ;;  %vm929_vm14 = vcmp.eq.f32.partialorder %v3147_v20, inf  ;;  %v932_v33 = vand.u32 2147483648, %v3147_v20  ;;  %vm931_vm15 = vcmp.eq.f32.partialorder %v3147_v20, 0.0 }
  0x3f   :  { %vm954_vm1 = vweird.f32 %v3147_v20 }
  0x44   :  { %v2969_v24 = vpop.eup %2968 }
  0x45   :  { %v923_v25 = vmul.f32 %v2969_v24, %v3147_v20  ;;  %vm955_vm2 = vweird.f32 %v2969_v24 }
  0x46   :  { %vm956_vm3 = vmor %vm954_vm1, %vm955_vm2 }
  0x47   :  { %v924_v27 = vmul.f32 %v2969_v24, %v923_v25  ;;  %v905_v25 = vmul.f32 %v3300_v18, %v3300_v18 }
  0x49   :  { %v925_v28 = vmul.f32 0.5, %v924_v27 }
  0x4b   :  { %v926_v29 = vsub.f32 1.5, %v925_v28  ;;  %v914_v28 = vsel %vm4942_vm0, %v905_v25, 0.0 }
  0x4d   :  { %v927_v30 = vmul.f32 %v2969_v24, %v926_v29 }
  0x4f   :  { %v928_v32 = vmul.f32 %v927_v30, %v3147_v20  ;;  %v957_v36 = vsel %vm956_vm3, %v2969_v24, %v927_v30  ;;  %v903_v24 = vmul.f32 %v3295_v17, %v3295_v17 }
  0x51   :  { %v930_v34 = vsel %vm929_vm14, %v3147_v20, %v928_v32  ;;  %v913_v27 = vsel %vm4942_vm0, %v903_v24, 0.0 }
  0x52   :  { %v933_v35 = vsel %vm931_vm15, %v932_v33, %v930_v34  ;;  %v915_v29 = vadd.f32 %v914_v28, %v913_v27 }
  0x53   :  { %vm946_vm4 = vcmp.ne.f32.partialorder %v933_v35, 1.0 }
  0x54   :  { %v3169_v37 = vsel %vm946_vm4, %v957_v36, 1.0  ;;  %v916_v30 = vrot.slane %v915_v29, 4 }
  0x55   :  { %4975 = vst [vmem:[#allocation11_spill] sm:$0xff] %v3169_v37  ;;  %v3172_v38 = vmul.f32 %v3169_v37, %v894_v5  ;;  %v3178_v40 = vmul.f32 %v3169_v37, %v896_v11 }
  0x56   :  { %v917_v33 = vadd.f32 %v916_v30, %v915_v29 }
  0x57   :  { %4976 = vst [vmem:[#allocation12_spill] sm:$0xff] %v3172_v38  ;;  %998 = vxpose.xlu2.b32.start [1/2] (short) %v3172_v38, 128 }
  0x58   :  { %4977 = vst [vmem:[#allocation13_spill] sm:$0xff] %v3178_v40  ;;  %v918_v35 = vrot.slane %v917_v33, 2 }
  0x5f   :  { %999 = vxpose.xlu2.b32.end [2/2] (short) %v3178_v40, 128 }
  0x62   :  { %269 = vxpose.xlu1.b32.start [1/2] (short) (narrow) %v210_v62, 32 }
  0x6a   :  { %270 = vxpose.xlu1.b32.end [2/2] (short) (narrow) %v212_v63, 32 }
  0x8a   :  { %v2951_v0 = vpop.permute.xlu2 %2950 }
  0x8b   :  { %v2952_v1 = vunpack.i.l.bf16 %v2951_v0  ;;  %v2953_v4 = vunpack.i.h.bf16 %v2951_v0 }
  0x9f   :  { %v2946_v3 = vpop.permute.xlu1 %2945 }
  0xa0   :  { %v2948_v6 = vunpack.i.h.bf16 %v2946_v3  ;;  %v2947_v7 = vunpack.i.l.bf16 %v2946_v3 }
  0xa2   :  { %v236_v8 = vsel %vm4942_vm0, %v212_v63, %v2947_v7  ;;  %v3133_v9 = vsel %vm4942_vm0, %v2947_v7, %v2952_v1  ;;  %v235_v2 = vsel %vm4942_vm0, %v210_v62, %v2948_v6  ;;  %v3138_v10 = vsel %vm4942_vm0, %v2948_v6, %v2953_v4 }
  0xa3   :  { %453 = vmatpush.msrb.mxu1 %v236_v8  ;;  %2918 = vmatpush.msra.mxu2 %v3133_v9 }
  0xa5   :  { %454 = vmatpush.msrb.mxu1 %v235_v2  ;;  %2919 = vmatpush.msra.mxu2 %v3138_v10 }
  0xcf   :  { %v3150_v22 = vpop.trf.xlu0 }
  0xd0   :  { %2696 = vmatmul.msk.f32.vlgmr.msra.gmra.mxu0 %vm4943_vm13, %v3150_v22 }
  0xd7   :  { %v3155_v26 = vpop.trf.xlu0 }
  0xd8   :  { %2697 = vmatmul.msk.f32.gmra.mxu0 %vm4943_vm13, %v3155_v26  ;;  %2737 = vmatmul.msk.f32.vlgmr.msra.gmra.mxu2 %vm4943_vm13, %v3155_v26 }
  0xdf   :  { %v255_v31 = vpop.trf.xlu0 }
  0xe0   :  { %2698 = vmatmul.msk.f32.gmra.mxu0 %vm4943_vm13, %v255_v31  ;;  %2738 = vmatmul.msk.f32.gmra.mxu2 %vm4943_vm13, %v255_v31 }
  0xe7   :  { %v256_v39 = vpop.trf.xlu0 }
  0xe8   :  { %2699 = vmatmul.msk.f32.gmra.mxu0 %vm4943_vm13, %v256_v39  ;;  %2739 = vmatmul.msk.f32.gmra.mxu2 %vm4943_vm13, %v256_v39 }
  0xef   :  { %v257_v41 = vpop.trf.xlu0 }
  0xf0   :  { %2700 = vmatmul.msk.f32.gmra.mxu0 %vm4943_vm13, %v257_v41  ;;  %2740 = vmatmul.msk.f32.gmra.mxu2 %vm4943_vm13, %v257_v41 }
  0xf7   :  { %v258_v42 = vpop.trf.xlu0 }
  0xf8   :  { %2701 = vmatmul.msk.f32.gmra.mxu0 %vm4943_vm13, %v258_v42  ;;  %2741 = vmatmul.msk.f32.gmra.mxu2 %vm4943_vm13, %v258_v42 }
  0xff   :  { %v259_v43 = vpop.trf.xlu0 }
 0x100   :  { %2702 = vmatmul.msk.f32.gmra.mxu0 %vm4943_vm13, %v259_v43  ;;  %2742 = vmatmul.msk.f32.gmra.mxu2 %vm4943_vm13, %v259_v43 }
 0x106   :  { %v3187_v44 = vpop.trf.xlu1 }
 0x107   :  { %v260_v45 = vpop.trf.xlu0 }
 0x108   :  { %2703 = vmatmul.msk.f32.gmra.mxu0 %vm4943_vm13, %v260_v45  ;;  %2743 = vmatmul.msk.f32.gmra.mxu2 %vm4943_vm13, %v260_v45 }
 0x10e   :  { %v3191_v46 = vpop.trf.xlu1 }
 0x10f   :  { %v261_v48 = vpop.trf.xlu0  ;;  %2713 = vmatmul.msk.f32.vlgmr.msra.gmra.mxu1 %vm4943_vm13, %v3191_v46 }
 0x110   :  { %530 = vmatpush.msra.mxu1 %v3133_v9  ;;  %2704 = vmatmul.msk.f32.gmra.mxu0 %vm4943_vm13, %v261_v48 }
 0x111   :  { %2744 = vmatmul.msk.f32.gmra.mxu2 %vm4943_vm13, %v261_v48 }
 0x112   :  { %531 = vmatpush.msra.mxu1 %v3138_v10 }
 0x116   :  { %v3199_v49 = vpop.trf.xlu1 }
 0x117   :  { %v262_v50 = vpop.trf.xlu0  ;;  %2714 = vmatmul.msk.f32.gmra.mxu1 %vm4943_vm13, %v3199_v49 }
 0x118   :  { %2705 = vmatmul.msk.f32.gmra.mxu0 %vm4943_vm13, %v262_v50 }
 0x119   :  { %2745 = vmatmul.msk.f32.gmra.mxu2 %vm4943_vm13, %v262_v50 }
 0x11e   :  { %v3205_v51 = vpop.trf.xlu1 }
 0x11f   :  { %v263_v52 = vpop.trf.xlu0  ;;  %2715 = vmatmul.msk.f32.gmra.mxu1 %vm4943_vm13, %v3205_v51 }
 0x120   :  { %2706 = vmatmul.msk.f32.gmra.mxu0 %vm4943_vm13, %v263_v52 }
 0x121   :  { %2746 = vmatmul.msk.f32.gmra.mxu2 %vm4943_vm13, %v263_v52 }
 0x127   :  { %v264_v53 = vpop.trf.xlu0  ;;  %2716 = vmatmul.msk.f32.vlgmr.msrb.gmra.mxu1 %vm4943_vm13, %v3150_v22 }
 0x128   :  { %2707 = vmatmul.msk.f32.gmra.mxu0 %vm4943_vm13, %v264_v53 }
 0x129   :  { %2747 = vmatmul.msk.f32.gmra.mxu2 %vm4943_vm13, %v264_v53 }
 0x12f   :  { %v265_v54 = vpop.trf.xlu0  ;;  %2717 = vmatmul.msk.f32.gmra.mxu1 %vm4943_vm13, %v3155_v26  ;;  %v3309_v26 = vpop.trf.xlu2 }
 0x130   :  { %2708 = vmatmul.msk.f32.gmra.mxu0 %vm4943_vm13, %v265_v54 }
 0x131   :  { %2748 = vmatmul.msk.f32.gmra.mxu2 %vm4943_vm13, %v265_v54 }
 0x137   :  { %v266_v55 = vpop.trf.xlu0  ;;  %2718 = vmatmul.msk.f32.gmra.mxu1 %vm4943_vm13, %v255_v31  ;;  %v3321_v36 = vpop.trf.xlu2 }
 0x138   :  { %2709 = vmatmul.msk.f32.gmra.mxu0 %vm4943_vm13, %v266_v55 }
 0x139   :  { %2749 = vmatmul.msk.f32.gmra.mxu2 %vm4943_vm13, %v266_v55 }
 0x13f   :  { %v267_v56 = vpop.trf.xlu0  ;;  %2719 = vmatmul.msk.f32.gmra.mxu1 %vm4943_vm13, %v256_v39  ;;  %v919_v39 = vadd.f32 %v918_v35, %v917_v33 }
 0x140   :  { %2710 = vmatmul.msk.f32.gmra.mxu0 %vm4943_vm13, %v267_v56 }
 0x141   :  { %2750 = vmatmul.msk.f32.gmra.mxu2 %vm4943_vm13, %v267_v56 }
 0x147   :  { %v268_v57 = vpop.trf.xlu0  ;;  %2720 = vmatmul.msk.f32.gmra.mxu1 %vm4943_vm13, %v257_v41  ;;  %v920_v41 = vrot.slane %v919_v39, 1 }
 0x148   :  { %2711 = vmatmul.msk.f32.gmra.mxu0 %vm4943_vm13, %v268_v57 }
 0x149   :  { %2751 = vmatmul.msk.f32.gmra.mxu2 %vm4943_vm13, %v268_v57 }
 0x14d   :  { %v3228_v59 = vpop.f32.mrf.mxu0 }
 0x14f   :  { %2721 = vmatmul.msk.f32.gmra.mxu1 %vm4943_vm13, %v258_v42 }
 0x150   :  { %2712 = vmatmul.msk.f32.gmra.mxu0 %vm4943_vm13, %v3187_v44 }
 0x151   :  { %2752 = vmatmul.msk.f32.gmra.mxu2 %vm4943_vm13, %v3187_v44 }
 0x155   :  { %v3235_v60 = vpop.f32.mrf.mxu0 }
 0x157   :  { %2722 = vmatmul.msk.f32.gmra.mxu1 %vm4943_vm13, %v259_v43 }
 0x159   :  { %2753 = vmatmul.msk.f32.gmra.mxu2 %vm4943_vm13, %v3191_v46 }
 0x15b   :  { %v3240_v61 = vpop.f32.mrf.mxu2 }
 0x15d   :  { %v3242_v62 = vpop.f32.mrf.mxu0 }
 0x15f   :  { %2723 = vmatmul.msk.f32.gmra.mxu1 %vm4943_vm13, %v260_v45  ;;  %v898_v45 = vld [vmem:[%s4891_s1 + $0x60] sm:$0xff] }
 0x161   :  { %2754 = vmatmul.msk.f32.gmra.mxu2 %vm4943_vm13, %v3199_v49 }
 0x163   :  { %v3247_v63 = vpop.f32.mrf.mxu2 }
 0x165   :  { %v3249_v0 = vpop.f32.mrf.mxu0 }
 0x167   :  { %2724 = vmatmul.msk.f32.gmra.mxu1 %vm4943_vm13, %v261_v48  ;;  %v900_v48 = vld [vmem:[%s4891_s1 + $0x70] sm:$0xff] }
 0x169   :  { %2755 = vmatmul.msk.f32.gmra.mxu2 %vm4943_vm13, %v3205_v51 }
 0x16b   :  { %v3254_v1 = vpop.f32.mrf.mxu2 }
 0x16d   :  { %v3256_v3 = vpop.f32.mrf.mxu0 }
 0x16f   :  { %2725 = vmatmul.msk.f32.gmra.mxu1 %vm4943_vm13, %v262_v50  ;;  %v3333_v50 = vadd.f32 %v920_v41, %v919_v39 }
 0x171   :  { %4978 = vst [vmem:[#allocation14_spill] sm:$0xff] %v3333_v50  ;;  %2970 = vrsqrt.f32 %v3333_v50  ;;  %vm941_vm5 = vcmp.eq.f32.partialorder %v3333_v50, inf  ;;  %vm943_vm6 = vcmp.eq.f32.partialorder %v3333_v50, 0.0  ;;  %vm964_vm7 = vweird.f32 %v3333_v50 }
 0x173   :  { %v3259_v4 = vpop.f32.mrf.mxu2 }
 0x175   :  { %v3261_v6 = vpop.f32.mrf.mxu0 }
 0x177   :  { %2726 = vmatmul.msk.f32.gmra.mxu1 %vm4943_vm13, %v263_v52 }
 0x17b   :  { %v3264_v7 = vpop.f32.mrf.mxu2 }
 0x17d   :  { %v3266_v8 = vpop.f32.mrf.mxu0 }
 0x17f   :  { %2727 = vmatmul.msk.f32.gmra.mxu1 %vm4943_vm13, %v264_v53  ;;  %v976_v53 = vmul.f32 %v3169_v37, %v900_v48 }
 0x183   :  { %v3269_v9 = vpop.f32.mrf.mxu2 }
 0x185   :  { %v3271_v2 = vpop.f32.mrf.mxu0 }
 0x187   :  { %2728 = vmatmul.msk.f32.gmra.mxu1 %vm4943_vm13, %v265_v54 }
 0x18b   :  { %v3274_v10 = vpop.f32.mrf.mxu2 }
 0x18c   :  { %v3276_v5 = vpop.f32.mrf.mxu1 }
 0x18d   :  { %v3278_v11 = vpop.f32.mrf.mxu0 }
 0x18f   :  { %2729 = vmatmul.msk.f32.gmra.mxu1 %vm4943_vm13, %v266_v55  ;;  %v3340_v55 = vpop.trf.xlu2 }
 0x194   :  { %v3281_v12 = vpop.f32.mrf.mxu2  ;;  %v3283_v13 = vpop.f32.mrf.mxu1 }
 0x195   :  { %v3285_v14 = vpop.f32.mrf.mxu0 }
 0x197   :  { %2730 = vmatmul.msk.f32.gmra.mxu1 %vm4943_vm13, %v267_v56  ;;  %v2971_v56 = vpop.eup %2970  ;;  %v3350_v29 = vpop.trf.xlu2 }
 0x198   :  { %v935_v27 = vmul.f32 %v2971_v56, %v3333_v50  ;;  %vm965_vm8 = vweird.f32 %v2971_v56 }
 0x199   :  { %vm966_vm9 = vmor %vm964_vm7, %vm965_vm8 }
 0x19a   :  { %v936_v28 = vmul.f32 %v2971_v56, %v935_v27 }
 0x19c   :  { %v3288_v15 = vpop.f32.mrf.mxu2  ;;  %v3290_v16 = vpop.f32.mrf.mxu1 }
 0x19d   :  { %v3302_v19 = vpop.f32.mrf.mxu0 }
 0x19f   :  { %2731 = vmatmul.msk.f32.gmra.mxu1 %vm4943_vm13, %v268_v57  ;;  %v3359_v48 = vpop.trf.xlu2 }
 0x1a4   :  { %v3313_v31 = vpop.f32.mrf.mxu2  ;;  %v3315_v32 = vpop.f32.mrf.mxu1 }
 0x1a5   :  { %v3317_v34 = vpop.f32.mrf.mxu0 }
 0x1a7   :  { %2732 = vmatmul.msk.f32.gmra.mxu1 %vm4943_vm13, %v3187_v44  ;;  %v974_v44 = vmul.f32 %v3169_v37, %v898_v45  ;;  %v3383_v21 = vpop.trf.xlu2 }
 0x1a9   :  { %v2954_v54 = vpack.i.bf16 %v974_v44, %v976_v53 }
 0x1ab   :  { %2955 = vrot.lane.b32.xlu0 %v2954_v54, %s3016_s25 }
 0x1ac   :  { %v3323_v42 = vpop.f32.mrf.mxu2  ;;  %v3325_v43 = vpop.f32.mrf.mxu1 }
 0x1ad   :  { %v415_v52 = vpop.f32.mrf.mxu0 }
 0x1af   :  { %2733 = vmatmul.msk.f32.gmra.mxu1 %vm4943_vm13, %v3191_v46  ;;  %v937_v46 = vmul.f32 0.5, %v936_v28  ;;  %v899_v28 = vld [vmem:[%s4891_s1 + $0x68] sm:$0xff] }
 0x1b1   :  { %v938_v30 = vsub.f32 1.5, %v937_v46  ;;  %v901_v46 = vld [vmem:[%s4891_s1 + $0x78] sm:$0xff] }
 0x1b3   :  { %v939_v41 = vmul.f32 %v2971_v56, %v938_v30 }
 0x1b4   :  { %v3343_v57 = vpop.f32.mrf.mxu2  ;;  %v3345_v24 = vpop.f32.mrf.mxu1 }
 0x1b5   :  { %v418_v25 = vpop.f32.mrf.mxu0  ;;  %v940_v45 = vmul.f32 %v939_v41, %v3333_v50  ;;  %v967_v54 = vsel %vm966_vm9, %v2971_v56, %v939_v41 }
 0x1b6   :  { %v632_v47 = vmul.f32 %v418_v25, %v418_v25  ;;  %v3393_v25 = vpop.trf.xlu2 }
 0x1b7   :  { %2734 = vmatmul.msk.f32.gmra.mxu1 %vm4943_vm13, %v3199_v49  ;;  %v944_v49 = vand.u32 2147483648, %v3333_v50  ;;  %v942_v44 = vsel %vm941_vm5, %v3333_v50, %v940_v45 }
 0x1b9   :  { %v945_v53 = vsel %vm943_vm6, %v944_v49, %v942_v44 }
 0x1ba   :  { %vm947_vm10 = vcmp.ne.f32.partialorder %v945_v53, 1.0 }
 0x1bb   :  { %v3376_v30 = vsel %vm947_vm10, %v967_v54, 1.0  ;;  %v629_v54 = vmul.f32 %v415_v52, %v415_v52 }
 0x1bc   :  { %v3352_v33 = vpop.f32.mrf.mxu2  ;;  %v3354_v35 = vpop.f32.mrf.mxu1  ;;  %4979 = vst [vmem:[#allocation15_spill] sm:$0xff] %v3376_v30  ;;  %v975_v49 = vmul.f32 %v3376_v30, %v899_v28  ;;  %v977_v44 = vmul.f32 %v3376_v30, %v901_v46  ;;  %v620_v28 = vmul.f32 %v3285_v14, %v3285_v14  ;;  %v608_v14 = vmul.f32 %v3261_v6, %v3261_v6 }
 0x1bd   :  { %v421_v39 = vpop.f32.mrf.mxu0  ;;  %v596_v6 = vmul.f32 %v3235_v60, %v3235_v60  ;;  %v644_v60 = vmul.f32 %v3276_v5, %v3276_v5 }
 0x1be   :  { %v635_v41 = vmul.f32 %v421_v39, %v421_v39  ;;  %v2959_v53 = vpack.i.bf16 %v975_v49, %v977_v44  ;;  %v626_v39 = vmul.f32 %v3317_v34, %v3317_v34  ;;  %v614_v34 = vmul.f32 %v3271_v2, %v3271_v2 }
 0x1bf   :  { %2735 = vmatmul.msk.f32.gmra.mxu1 %vm4943_vm13, %v3205_v51  ;;  %v602_v2 = vmul.f32 %v3249_v0, %v3249_v0  ;;  %v650_v0 = vmul.f32 %v3290_v16, %v3290_v16 }
 0x1c0   :  { %2960 = vrot.lane.b32.xlu2 %v2959_v53, %s3016_s25 }
 0x1c4   :  { %v3366_v51 = vpop.f32.mrf.mxu2  ;;  %v3368_v27 = vpop.f32.mrf.mxu1 }
 0x1c5   :  { %v424_v45 = vpop.f32.mrf.mxu0 }
 0x1c6   :  { %v638_v56 = vmul.f32 %v424_v45, %v424_v45  ;;  %v3405_v45 = vpop.trf.xlu2 }
 0x1c7   :  { %2736 = vmatmul.msk.f32.vlgmr.msra.gmra.mxu1 %vm4943_vm13, %v3150_v22  ;;  %v623_v22 = vmul.f32 %v3302_v19, %v3302_v19  ;;  %v611_v19 = vmul.f32 %v3266_v8, %v3266_v8  ;;  %v599_v8 = vmul.f32 %v3242_v62, %v3242_v62  ;;  %v647_v62 = vmul.f32 %v3283_v13, %v3283_v13 }
 0x1c8   :  { %659 = vmatpush.msra.mxu3 %v638_v56 }
 0x1ca   :  { %660 = vmatpush.msra.mxu3 %v635_v41 }
 0x1cc   :  { %v3385_v58 = vpop.f32.mrf.mxu2  ;;  %v3387_v23 = vpop.f32.mrf.mxu1  ;;  %661 = vmatpush.msra.mxu3 %v632_v47  ;;  %v617_v47 = vmul.f32 %v3278_v11, %v3278_v11  ;;  %v605_v11 = vmul.f32 %v3256_v3, %v3256_v3  ;;  %v593_v3 = vmul.f32 %v3228_v59, %v3228_v59 }
 0x1ce   :  { %662 = vmatpush.msra.mxu3 %v629_v54  ;;  %v3417_v56 = vpop.trf.xlu2  ;;  %v14_v54 = vlaneseq }
 0x1d0   :  { %663 = vmatpush.msra.mxu3 %v626_v39  ;;  %v427_v39 = vpop.f32.mrf.mxu0  ;;  %v3440_v13 = vand.u32 127, %v14_v54 }
 0x1d1   :  { %v641_v59 = vmul.f32 %v427_v39, %v427_v39 }
 0x1d2   :  { %664 = vmatpush.msra.mxu3 %v623_v22  ;;  %4982 = vst [vmem:[#allocation18_spill] sm:$0xff] %v3440_v13  ;;  %v19_v5 = vadd.s32 128, %v3440_v13 }
 0x1d4   :  { %v581_v52 = vpop.f32.mrf.mxu2  ;;  %v3397_v46 = vpop.f32.mrf.mxu1  ;;  %665 = vmatpush.msra.mxu3 %v620_v28  ;;  %v3433_v28 = vshrl.u32 %v14_v54, 7  ;;  %v4912_v54 = vmov 0.0  }
 0x1d6   :  { %666 = vmatpush.msra.mxu3 %v617_v47  ;;  %v3431_v22 = vpop.trf.xlu2  ;;  %4981 = vst [vmem:[#allocation17_spill] sm:$0xff] %v3433_v28  ;;  %v20_v47 = vmul.u32 10, %v3433_v28 }
 0x1d7   :  { %4980 = vst [vmem:[#allocation16_spill] sm:$0xff] %v3431_v22 }
 0x1d8   :  { %667 = vmatpush.msra.mxu3 %v614_v34  ;;  %vm22_vm11 = vcmp.ge.s32.totalorder %v3440_v13, %v20_v47  ;;  %vm23_vm15 = vcmp.ge.s32.totalorder %v19_v5, %v20_v47 }
 0x1da   :  { %668 = vmatpush.msra.mxu3 %v611_v19 }
 0x1dc   :  { %v584_v49 = vpop.f32.mrf.mxu2  ;;  %v3409_v44 = vpop.f32.mrf.mxu1  ;;  %669 = vmatpush.msra.mxu3 %v608_v14  ;;  %v26_v14 = vadd.s32 10, %v20_v47 }
 0x1de   :  { %670 = vmatpush.msra.mxu3 %v605_v11  ;;  %vm28_vm12 = vcmp.lt.s32.totalorder %v3440_v13, %v26_v14  ;;  %vm29_vm1 = vcmp.lt.s32.totalorder %v19_v5, %v26_v14 }
 0x1df   :  { %vm3448_vm14 = vmand %vm22_vm11, %vm28_vm12 }
 0x1e0   :  { %671 = vmatpush.msra.mxu3 %v602_v2  ;;  %v4983_v2 = vmov 0  ;;  %vm33_vm2 = vmand %vm23_vm15, %vm29_vm1 }
 0x1e1   :  { %v4984_v2 = vsel %vm3448_vm14, 4294967295, %v4983_v2  ;;  %v3469_v39 = vsel %vm33_vm2, 1.0, %v4912_v54 }
 0x1e2   :  { %672 = vmatpush.msra.mxu3 %v599_v8  ;;  %v3452_v8 = vmul.f32 %v584_v49, %v584_v49 }
 0x1e4   :  { %v587_v41 = vpop.f32.mrf.mxu2  ;;  %v3421_v53 = vpop.f32.mrf.mxu1  ;;  %673 = vmatpush.msra.mxu3 %v596_v6  ;;  %v4902_v6 = vmov 1.0  }
 0x1e5   :  { %v3442_v11 = vmul.f32 %v587_v41, %v587_v41  ;;  %v3458_v41 = vpop.trf.xlu2 }
 0x1e6   :  { %674 = vmatpush.msra.mxu3 %v593_v3  ;;  %4985 = vst [vmem:[#allocation19_spill] sm:$0xff] %v3458_v41  ;;  %v3461_v3 = vadd.s32 8, %v3433_v28 }
 0x1e7   :  { %2756 = vmatmul.msk.f32.vlgmr.msra.gmra.mxu3 %vm3448_vm14, %v4902_v6 }
 0x1e8   :  { %694 = vmatpush.msrb.mxu3 %v650_v0  ;;  %4986 = vst [vmem:[#allocation20_spill] sm:$0xff] %v3461_v3  ;;  %v3463_v0 = vmul.f32 %v581_v52, %v581_v52  ;;  %v21_v49 = vmul.u32 10, %v3461_v3  ;;  %v4988_v52 = vmov 0 }
 0x1ea   :  { %695 = vmatpush.msrb.mxu3 %v647_v62  ;;  %4987 = vst [vmem:[#allocation21_spill] sm:$0xff] %v3463_v0  ;;  %vm24_vm3 = vcmp.ge.s32.totalorder %v3440_v13, %v21_v49  ;;  %vm25_vm6 = vcmp.ge.s32.totalorder %v19_v5, %v21_v49 }
 0x1ec   :  { %696 = vmatpush.msrb.mxu3 %v644_v60  ;;  %v590_v16 = vpop.f32.mrf.mxu2  ;;  %v3436_v34 = vpop.f32.mrf.mxu1  ;;  %v27_v60 = vadd.s32 10, %v21_v49 }
 0x1ed   :  { %v3438_v19 = vmul.f32 %v590_v16, %v590_v16 }
 0x1ee   :  { %697 = vmatpush.msrb.mxu3 %v641_v59  ;;  %vm30_vm4 = vcmp.lt.s32.totalorder %v3440_v13, %v27_v60  ;;  %v3482_v59 = vpop.trf.xlu2  ;;  %vm31_vm7 = vcmp.lt.s32.totalorder %v19_v5, %v27_v60 }
 0x1ef   :  { %786 = vmatpush.msrb.mxu1 %v3438_v19  ;;  %vm3475_vm5 = vmand %vm24_vm3, %vm30_vm4  ;;  %4990 = vst [vmem:[#allocation22_spill] sm:$0xff] %v3482_v59 }
 0x1f0   :  { %v4989_v52 = vsel %vm3475_vm5, 4294967295, %v4988_v52  ;;  %2757 = vmatmul.msk.f32.gmra.mxu3 %vm3475_vm5, %v4902_v6  ;;  %vm35_vm8 = vmand %vm25_vm6, %vm31_vm7 }
 0x1f1   :  { %787 = vmatpush.msrb.mxu1 %v3442_v11  ;;  %v3489_v37 = vsel %vm35_vm8, 1.0, %v4912_v54 }
 0x1f3   :  { %788 = vmatpush.msrb.mxu1 %v3452_v8 }
 0x1f4   :  { %v486_v62 = vpop.f32.mrf.mxu1 }
 0x1f5   :  { %789 = vmatpush.msrb.mxu1 %v3463_v0 }
 0x1f6   :  { %2766 = vmatmul.msk.f32.vlgmr.msrb.gmra.mxu1 %vm4942_vm0, %v3469_v39  ;;  %v3486_v16 = vpop.trf.xlu2 }
 0x1f7   :  { %4991 = vst [vmem:[#allocation23_spill] sm:$0xff] %v3486_v16 }
 0x1f8   :  { %2758 = vmatmul.msk.f32.vlgmr.msrb.gmra.mxu3 %vm4942_vm0, %v3469_v39 }
 0x1fc   :  { %v489_v47 = vpop.f32.mrf.mxu1 }
 0x1fd   :  { %v627_v0 = vmul.f32 %v489_v47, %v489_v47  ;;  %v637_v47 = vmul.f32 %v3366_v51, %v3366_v51  ;;  %v622_v51 = vmul.f32 %v3288_v15, %v3288_v15  ;;  %v613_v15 = vmul.f32 %v3269_v9, %v3269_v9 }
 0x1fe   :  { %v3491_v20 = vpop.trf.xlu2  ;;  %v601_v9 = vmul.f32 %v3247_v63, %v3247_v63  ;;  %v4996_v63 = vld [vmem:[#allocation13_spill] sm:$0xff] }
 0x1ff   :  { %4992 = vst [vmem:[#allocation24_spill] sm:$0xff] %v3491_v20 }
 0x200   :  { %2759 = vmatmul.msk.f32.gmra.mxu3 %vm4942_vm0, %v3489_v37 }
 0x204   :  { %v492_v14 = vpop.f32.mrf.mxu1 }
 0x205   :  { %v630_v16 = vmul.f32 %v492_v14, %v492_v14  ;;  %v598_v14 = vmul.f32 %v3240_v61, %v3240_v61  ;;  %v4995_v61 = vld [vmem:[#allocation21_spill] sm:$0xff] }
 0x206   :  { %v3495_v50 = vpop.trf.xlu2 }
 0x20c   :  { %v495_v6 = vpop.f32.mrf.mxu1 }
 0x20d   :  { %v633_v28 = vmul.f32 %v495_v6, %v495_v6  ;;  %v624_v6 = vmul.f32 %v486_v62, %v486_v62 }
 0x20e   :  { %v3497_v5 = vpop.trf.xlu2 }
 0x20f   :  { %4993 = vst [vmem:[#allocation25_spill] sm:$0xff] %v3497_v5  ;;  %v973_v5 = vmul.f32 %v3376_v30, %v3300_v18  ;;  %v612_v18 = vmul.f32 %v3397_v46, %v3397_v46  ;;  %v603_v46 = vmul.f32 %v3354_v35, %v3354_v35 }
 0x214   :  { %v498_v49 = vpop.f32.mrf.mxu1 }
 0x215   :  { %v636_v3 = vmul.f32 %v498_v49, %v498_v49  ;;  %v5001_v49 = vld [vmem:[#allocation23_spill] sm:$0xff] }
 0x21a   :  { %v2961_v54 = vpop.permute.xlu2 %2960 }
 0x21b   :  { %v2963_v41 = vunpack.i.h.bf16 %v2961_v54  ;;  %v2962_v22 = vunpack.i.l.bf16 %v2961_v54 }
 0x21c   :  { %v501_v60 = vpop.f32.mrf.mxu1 }
 0x21d   :  { %v639_v13 = vmul.f32 %v501_v60, %v501_v60  ;;  %v2956_v59 = vpop.permute.xlu0 %2955 }
 0x21e   :  { %v2958_v38 = vunpack.i.h.bf16 %v2956_v59  ;;  %v2957_v40 = vunpack.i.l.bf16 %v2956_v59  ;;  %v621_v59 = vmul.f32 %v3436_v34, %v3436_v34  ;;  %v600_v34 = vmul.f32 %v3345_v24, %v3345_v24 }
 0x21f   :  { %705 = vmatpush.msra.mxu3 %v639_v13  ;;  %v971_v13 = vmul.f32 %v3376_v30, %v3295_v17  ;;  %v618_v17 = vmul.f32 %v3421_v53, %v3421_v53  ;;  %v606_v53 = vmul.f32 %v3368_v27, %v3368_v27  ;;  %v594_v27 = vmul.f32 %v3315_v32, %v3315_v32 }
 0x220   :  { %v991_v60 = vsel %vm4942_vm0, %v2957_v40, %v2962_v22  ;;  %v990_v54 = vsel %vm4942_vm0, %v2958_v38, %v2963_v41  ;;  %v609_v22 = vmul.f32 %v3387_v23, %v3387_v23  ;;  %v597_v23 = vmul.f32 %v3325_v43, %v3325_v43 }
 0x221   :  { %706 = vmatpush.msra.mxu3 %v636_v3  ;;  %1290 = vmatpush.msra.mxu1 %v991_v60  ;;  %v996_v3 = vsel %vm4942_vm0, %v971_v13, %v2958_v38  ;;  %v615_v38 = vmul.f32 %v3409_v44, %v3409_v44  ;;  %v640_v32 = vmul.f32 %v3385_v58, %v3385_v58 }
 0x222   :  { %1030 = vxpose.xlu1.b32.start [1/2] (short) (narrow) %v971_v13, 32  ;;  %v628_v58 = vmul.f32 %v3323_v42, %v3323_v42  ;;  %v616_v42 = vmul.f32 %v3274_v10, %v3274_v10  ;;  %v604_v10 = vmul.f32 %v3254_v1, %v3254_v1  ;;  %v4997_v1 = vld [vmem:[#allocation12_spill] sm:$0xff] }
 0x223   :  { %707 = vmatpush.msra.mxu3 %v633_v28  ;;  %v997_v28 = vsel %vm4942_vm0, %v973_v5, %v2957_v40  ;;  %1291 = vmatpush.msra.mxu1 %v990_v54 }
 0x224   :  { %v504_v20 = vpop.f32.mrf.mxu1  ;;  %1213 = vmatpush.msrb.mxu0 %v997_v28  ;;  %2808 = vmatmul.msk.f32.vlgmr.msra.gmra.mxu1 %vm4943_vm13, %v3309_v26 }
 0x225   :  { %708 = vmatpush.msra.mxu3 %v630_v16  ;;  %v642_v62 = vmul.f32 %v504_v20, %v504_v20  ;;  %v634_v16 = vmul.f32 %v3352_v33, %v3352_v33  ;;  %v631_v20 = vmul.f32 %v3343_v57, %v3343_v57  ;;  %v625_v33 = vmul.f32 %v3313_v31, %v3313_v31 }
 0x226   :  { %1214 = vmatpush.msrb.mxu0 %v996_v3  ;;  %v619_v57 = vmul.f32 %v3281_v12, %v3281_v12  ;;  %v610_v31 = vmul.f32 %v3264_v7, %v3264_v7  ;;  %v607_v12 = vmul.f32 %v3259_v4, %v3259_v4 }
 0x227   :  { %709 = vmatpush.msra.mxu3 %v627_v0  ;;  %2788 = vmatmul.msk.f32.vlgmr.msrb.gmra.mxu0 %vm4943_vm13, %v3309_v26  ;;  %v4994_v0 = vmov 1.0  }
 0x229   :  { %710 = vmatpush.msra.mxu3 %v624_v6 }
 0x22a   :  { %1031 = vxpose.xlu1.b32.end [2/2] (short) (narrow) %v973_v5, 32  ;;  %v5002_v5 = vld [vmem:[#allocation24_spill] sm:$0xff] }
 0x22b   :  { %711 = vmatpush.msra.mxu3 %v621_v59 }
 0x22c   :  { %v507_v40 = vpop.f32.mrf.mxu1  ;;  %2809 = vmatmul.msk.f32.gmra.mxu1 %vm4943_vm13, %v3321_v36 }
 0x22d   :  { %712 = vmatpush.msra.mxu3 %v618_v17  ;;  %v645_v43 = vmul.f32 %v507_v40, %v507_v40 }
 0x22f   :  { %713 = vmatpush.msra.mxu3 %v615_v38  ;;  %2789 = vmatmul.msk.f32.gmra.mxu0 %vm4943_vm13, %v3321_v36 }
 0x231   :  { %714 = vmatpush.msra.mxu3 %v612_v18 }
 0x233   :  { %715 = vmatpush.msra.mxu3 %v609_v22 }
 0x234   :  { %v510_v44 = vpop.f32.mrf.mxu1  ;;  %2810 = vmatmul.msk.f32.gmra.mxu1 %vm4943_vm13, %v3340_v55 }
 0x235   :  { %716 = vmatpush.msra.mxu3 %v606_v53  ;;  %v648_v24 = vmul.f32 %v510_v44, %v510_v44 }
 0x237   :  { %717 = vmatpush.msra.mxu3 %v603_v46  ;;  %2790 = vmatmul.msk.f32.gmra.mxu0 %vm4943_vm13, %v3340_v55 }
 0x239   :  { %718 = vmatpush.msra.mxu3 %v600_v34 }
 0x23b   :  { %719 = vmatpush.msra.mxu3 %v597_v23 }
 0x23c   :  { %v513_v35 = vpop.f32.mrf.mxu1  ;;  %2811 = vmatmul.msk.f32.gmra.mxu1 %vm4943_vm13, %v3350_v29 }
 0x23d   :  { %v651_v41 = vmul.f32 %v513_v35, %v513_v35  ;;  %720 = vmatpush.msra.mxu3 %v594_v27  ;;  %v1661_v27 = vld [vmem:[%s4891_s1 + $0x170] sm:$0xff] }
 0x23e   :  { %2760 = vmatmul.msk.f32.vlgmr.msra.gmra.mxu3 %vm3448_vm14, %v4994_v0 }
 0x23f   :  { %740 = vmatpush.msrb.mxu3 %v651_v41  ;;  %2791 = vmatmul.msk.f32.gmra.mxu0 %vm4943_vm13, %v3350_v29  ;;  %v3738_v41 = vmul.f32 %v1661_v27, %v1661_v27 }
 0x241   :  { %741 = vmatpush.msrb.mxu3 %v648_v24  ;;  %5016 = vst [vmem:[#allocation29_spill] sm:$0xff] %v3738_v41 }
 0x243   :  { %742 = vmatpush.msrb.mxu3 %v645_v43 }
 0x244   :  { %2812 = vmatmul.msk.f32.gmra.mxu1 %vm4943_vm13, %v3359_v48  ;;  %v533_v7 = vpop.f32.mrf.mxu1 }
 0x245   :  { %743 = vmatpush.msrb.mxu3 %v642_v62  ;;  %v595_v4 = vmul.f32 %v533_v7, %v533_v7  ;;  %v1660_v62 = vld [vmem:[%s4891_s1 + $0x160] sm:$0xff]  ;;  %v1657_v7 = vld [vmem:[%s4891_s1 + $0x130] sm:$0xff] }
 0x246   :  { %2761 = vmatmul.msk.f32.gmra.mxu3 %vm3475_vm5, %v4994_v0 }
 0x247   :  { %751 = vmatpush.msra.mxu3 %v640_v32  ;;  %2792 = vmatmul.msk.f32.gmra.mxu0 %vm4943_vm13, %v3359_v48  ;;  %v3749_v32 = vmul.f32 %v1660_v62, %v1660_v62  ;;  %v1652_v62 = vld [vmem:[%s4891_s1 + $0xe0] sm:$0xff] }
 0x249   :  { %752 = vmatpush.msra.mxu3 %v637_v47  ;;  %5017 = vst [vmem:[#allocation30_spill] sm:$0xff] %v3749_v32 }
 0x24b   :  { %753 = vmatpush.msra.mxu3 %v634_v16 }
 0x24c   :  { %2813 = vmatmul.msk.f32.gmra.mxu1 %vm4943_vm13, %v3383_v21 }
 0x24d   :  { %754 = vmatpush.msra.mxu3 %v631_v20 }
 0x24e   :  { %2762 = vmatmul.msk.f32.vlgmr.msrb.gmra.mxu3 %vm4942_vm0, %v3469_v39 }
 0x24f   :  { %755 = vmatpush.msra.mxu3 %v628_v58  ;;  %2793 = vmatmul.msk.f32.gmra.mxu0 %vm4943_vm13, %v3383_v21  ;;  %v1659_v58 = vld [vmem:[%s4891_s1 + $0x150] sm:$0xff] }
 0x251   :  { %756 = vmatpush.msra.mxu3 %v625_v33  ;;  %v3762_v33 = vmul.f32 %v1659_v58, %v1659_v58  ;;  %v3831_v58 = vmul.f32 %v1652_v62, %v1652_v62 }
 0x253   :  { %757 = vmatpush.msra.mxu3 %v622_v51 }
 0x254   :  { %2814 = vmatmul.msk.f32.gmra.mxu1 %vm4943_vm13, %v3393_v25 }
 0x255   :  { %758 = vmatpush.msra.mxu3 %v619_v57 }
 0x256   :  { %2763 = vmatmul.msk.f32.gmra.mxu3 %vm4942_vm0, %v3489_v37 }
 0x257   :  { %759 = vmatpush.msra.mxu3 %v616_v42  ;;  %2794 = vmatmul.msk.f32.gmra.mxu0 %vm4943_vm13, %v3393_v25 }
 0x259   :  { %760 = vmatpush.msra.mxu3 %v613_v15  ;;  %v1658_v15 = vld [vmem:[%s4891_s1 + $0x140] sm:$0xff] }
 0x25b   :  { %761 = vmatpush.msra.mxu3 %v610_v31  ;;  %v3775_v31 = vmul.f32 %v1658_v15, %v1658_v15  ;;  %v3836_v15 = vld [vmem:[%s4891_s1 + $0xd0] sm:$0xff] }
 0x25c   :  { %2815 = vmatmul.msk.f32.gmra.mxu1 %vm4943_vm13, %v3405_v45  ;;  %5018 = vst [vmem:[#allocation31_spill] sm:$0xff] %v3836_v15 }
 0x25d   :  { %762 = vmatpush.msra.mxu3 %v607_v12 }
 0x25f   :  { %763 = vmatpush.msra.mxu3 %v604_v10  ;;  %2795 = vmatmul.msk.f32.gmra.mxu0 %vm4943_vm13, %v3405_v45 }
 0x261   :  { %764 = vmatpush.msra.mxu3 %v601_v9 }
 0x263   :  { %765 = vmatpush.msra.mxu3 %v598_v14  ;;  %v3788_v14 = vmul.f32 %v1657_v7, %v1657_v7  ;;  %v3842_v7 = vmul.f32 %v3836_v15, %v3836_v15 }
 0x264   :  { %2816 = vmatmul.msk.f32.gmra.mxu1 %vm4943_vm13, %v3417_v56 }
 0x265   :  { %766 = vmatpush.msra.mxu3 %v595_v4 }
 0x266   :  { %2764 = vmatmul.msk.f32.vlgmr.msra.gmra.mxu3 %vm3448_vm14, %v4994_v0 }
 0x267   :  { %2920 = vmatpush.msrb.mxu3 %v3438_v19  ;;  %2796 = vmatmul.msk.f32.gmra.mxu0 %vm4943_vm13, %v3417_v56  ;;  %v4998_v19 = vld [vmem:[#allocation16_spill] sm:$0xff] }
 0x269   :  { %2921 = vmatpush.msrb.mxu3 %v3442_v11  ;;  %v4999_v11 = vld [vmem:[#allocation19_spill] sm:$0xff] }
 0x26b   :  { %2922 = vmatpush.msrb.mxu3 %v3452_v8  ;;  %v5000_v8 = vld [vmem:[#allocation22_spill] sm:$0xff] }
 0x26c   :  { %2817 = vmatmul.msk.f32.gmra.mxu1 %vm4943_vm13, %v4998_v19 }
 0x26d   :  { %2923 = vmatpush.msrb.mxu3 %v4995_v61 }
 0x26e   :  { %2765 = vmatmul.msk.f32.gmra.mxu3 %vm3475_vm5, %v4994_v0 }
 0x26f   :  { %1136 = vmatpush.msra.mxu3 %v4996_v63  ;;  %2797 = vmatmul.msk.f32.gmra.mxu0 %vm4943_vm13, %v4998_v19  ;;  %v1656_v63 = vld [vmem:[%s4891_s1 + $0x120] sm:$0xff] }
 0x271   :  { %1137 = vmatpush.msra.mxu3 %v4997_v1  ;;  %v1655_v1 = vld [vmem:[%s4891_s1 + $0x110] sm:$0xff] }
 0x273   :  { %v3725_v44 = vpop.f32.mrf.mxu1 }
 0x274   :  { %2818 = vmatmul.msk.f32.gmra.mxu1 %vm4943_vm13, %v4999_v11  ;;  %5015 = vst [vmem:[#allocation28_spill] sm:$0xff] %v3725_v44  ;;  %v3888_v44 = vld [vmem:[%s4891_s1 + $0x90] sm:$0xff] }
 0x275   :  { %5025 = vst [vmem:[#allocation38_spill] sm:$0xff] %v3888_v44 }
 0x276   :  { %2767 = vmatmul.msk.f32.vlgmr.msrb.gmra.mxu3 %vm4942_vm0, %v3489_v37 }
 0x277   :  { %2798 = vmatmul.msk.f32.gmra.mxu0 %vm4943_vm13, %v4999_v11 }
 0x27c   :  { %2819 = vmatmul.msk.f32.gmra.mxu1 %vm4943_vm13, %v5000_v8 }
 0x27e   :  { %2768 = vmatmul.msk.f32.vlgmr.msra.gmra.mxu3 %vm4943_vm13, %v3309_v26  ;;  %v3651_v26 = vpop.f32.mrf.mxu3 }
 0x27f   :  { %2799 = vmatmul.msk.f32.gmra.mxu0 %vm4943_vm13, %v5000_v8  ;;  %5003 = vst [vmem:[#allocation21_spill] sm:$0xff] %v3651_v26 }
 0x284   :  { %2820 = vmatmul.msk.f32.gmra.mxu1 %vm4943_vm13, %v5001_v49 }
 0x286   :  { %2769 = vmatmul.msk.f32.gmra.mxu3 %vm4943_vm13, %v3321_v36  ;;  %v5004_v36 = vld [vmem:[#allocation25_spill] sm:$0xff] }
 0x287   :  { %2800 = vmatmul.msk.f32.gmra.mxu0 %vm4943_vm13, %v5001_v49 }
 0x28c   :  { %2821 = vmatmul.msk.f32.gmra.mxu1 %vm4943_vm13, %v5002_v5 }
 0x28e   :  { %2770 = vmatmul.msk.f32.gmra.mxu3 %vm4943_vm13, %v3340_v55  ;;  %v3659_v55 = vpop.f32.mrf.mxu3 }
 0x28f   :  { %2801 = vmatmul.msk.f32.gmra.mxu0 %vm4943_vm13, %v5002_v5  ;;  %5005 = vst [vmem:[#allocation13_spill] sm:$0xff] %v3659_v55 }
 0x294   :  { %2822 = vmatmul.msk.f32.gmra.mxu1 %vm4943_vm13, %v3495_v50  ;;  %1724 = vrot.lane.b32.xlu1 %v3738_v41, %s3019_s16 }
 0x296   :  { %2771 = vmatmul.msk.f32.gmra.mxu3 %vm4943_vm13, %v3350_v29  ;;  %v3663_v29 = vpop.f32.mrf.mxu3 }
 0x297   :  { %2802 = vmatmul.msk.f32.gmra.mxu0 %vm4943_vm13, %v3495_v50  ;;  %5006 = vst [vmem:[#allocation12_spill] sm:$0xff] %v3663_v29 }
 0x29c   :  { %2823 = vmatmul.msk.f32.gmra.mxu1 %vm4943_vm13, %v5004_v36  ;;  %1722 = vrot.lane.b32.xlu1 %v3749_v32, %s3019_s16 }
 0x29e   :  { %2772 = vmatmul.msk.f32.gmra.mxu3 %vm4943_vm13, %v3359_v48  ;;  %v3667_v48 = vpop.f32.mrf.mxu3 }
 0x29f   :  { %2803 = vmatmul.msk.f32.gmra.mxu0 %vm4943_vm13, %v5004_v36  ;;  %5007 = vst [vmem:[#allocation16_spill] sm:$0xff] %v3667_v48  ;;  %v3862_v48 = vld [vmem:[%s4891_s1 + $0xb0] sm:$0xff] }
 0x2a0   :  { %5021 = vst [vmem:[#allocation34_spill] sm:$0xff] %v3862_v48  ;;  %v3868_v55 = vmul.f32 %v3862_v48, %v3862_v48 }
 0x2a1   :  { %v3736_v35 = vpop.f32.mrf.mxu1 }
 0x2a2   :  { %5022 = vst [vmem:[#allocation35_spill] sm:$0xff] %v3868_v55 }
 0x2a4   :  { %v3710_v40 = vpop.f32.mrf.mxu0  ;;  %1720 = vrot.lane.b32.xlu1 %v3762_v33, %s3019_s16 }
 0x2a6   :  { %2773 = vmatmul.msk.f32.gmra.mxu3 %vm4943_vm13, %v3383_v21 }
 0x2a9   :  { %v3751_v47 = vpop.f32.mrf.mxu1 }
 0x2ac   :  { %v3715_v38 = vpop.f32.mrf.mxu0  ;;  %1718 = vrot.lane.b32.xlu1 %v3775_v31, %s3019_s16 }
 0x2ae   :  { %2774 = vmatmul.msk.f32.gmra.mxu3 %vm4943_vm13, %v3393_v25 }
 0x2b1   :  { %v3766_v51 = vpop.f32.mrf.mxu1 }
 0x2b4   :  { %v3721_v22 = vpop.f32.mrf.mxu0  ;;  %1716 = vrot.lane.b32.xlu1 %v3788_v14, %s3019_s16 }
 0x2b6   :  { %2775 = vmatmul.msk.f32.gmra.mxu3 %vm4943_vm13, %v3405_v45 }
 0x2b9   :  { %v3779_v12 = vpop.f32.mrf.mxu1 }
 0x2bc   :  { %v3727_v46 = vpop.f32.mrf.mxu0 }
 0x2be   :  { %2776 = vmatmul.msk.f32.gmra.mxu3 %vm4943_vm13, %v3417_v56 }
 0x2c1   :  { %v3671_v60 = vpop.f32.mrf.mxu3  ;;  %v3792_v61 = vpop.f32.mrf.mxu1 }
 0x2c2   :  { %5008 = vst [vmem:[#allocation19_spill] sm:$0xff] %v3671_v60 }
 0x2c4   :  { %v3740_v24 = vpop.f32.mrf.mxu0 }
 0x2c6   :  { %2777 = vmatmul.msk.f32.gmra.mxu3 %vm4943_vm13, %v4998_v19  ;;  %v1046_v45 = vpop.trf.xlu1 }
 0x2c7   :  { %2804 = vmatmul.msk.f32.gmra.mxu0 %vm4943_vm13, %v1046_v45  ;;  %2824 = vmatmul.msk.f32.gmra.mxu1 %vm4943_vm13, %v1046_v45 }
 0x2c9   :  { %v3675_v21 = vpop.f32.mrf.mxu3 }
 0x2ca   :  { %5009 = vst [vmem:[#allocation22_spill] sm:$0xff] %v3675_v21 }
 0x2cc   :  { %v3755_v16 = vpop.f32.mrf.mxu0 }
 0x2ce   :  { %2778 = vmatmul.msk.f32.gmra.mxu3 %vm4943_vm13, %v4999_v11  ;;  %v1047_v13 = vpop.trf.xlu1  ;;  %v3802_v11 = vmul.f32 %v1656_v63, %v1656_v63 }
 0x2cf   :  { %2805 = vmatmul.msk.f32.gmra.mxu0 %vm4943_vm13, %v1047_v13  ;;  %2825 = vmatmul.msk.f32.gmra.mxu1 %vm4943_vm13, %v1047_v13 }
 0x2d0   :  { %1714 = vrot.lane.b32.xlu0 %v3802_v11, %s3019_s16 }
 0x2d1   :  { %v3681_v25 = vpop.f32.mrf.mxu3 }
 0x2d2   :  { %5010 = vst [vmem:[#allocation23_spill] sm:$0xff] %v3681_v25 }
 0x2d4   :  { %v3768_v57 = vpop.f32.mrf.mxu0 }
 0x2d6   :  { %2779 = vmatmul.msk.f32.gmra.mxu3 %vm4943_vm13, %v5000_v8  ;;  %v1048_v28 = vpop.trf.xlu1  ;;  %v3804_v8 = vmul.f32 %v1655_v1, %v1655_v1 }
 0x2d7   :  { %2806 = vmatmul.msk.f32.gmra.mxu0 %vm4943_vm13, %v1048_v28  ;;  %2826 = vmatmul.msk.f32.gmra.mxu1 %vm4943_vm13, %v1048_v28 }
 0x2d8   :  { %1712 = vrot.lane.b32.xlu1 %v3804_v8, %s3019_s16 }
 0x2d9   :  { %v3687_v56 = vpop.f32.mrf.mxu3 }
 0x2da   :  { %5011 = vst [vmem:[#allocation24_spill] sm:$0xff] %v3687_v56 }
 0x2dc   :  { %v3781_v10 = vpop.f32.mrf.mxu0 }
 0x2de   :  { %2780 = vmatmul.msk.f32.gmra.mxu3 %vm4943_vm13, %v5001_v49  ;;  %v1049_v54 = vpop.trf.xlu1 }
 0x2df   :  { %2807 = vmatmul.msk.f32.gmra.mxu0 %vm4943_vm13, %v1049_v54  ;;  %2827 = vmatmul.msk.f32.gmra.mxu1 %vm4943_vm13, %v1049_v54 }
 0x2e4   :  { %v3800_v19 = vpop.f32.mrf.mxu0 }
 0x2e6   :  { %2781 = vmatmul.msk.f32.gmra.mxu3 %vm4943_vm13, %v5002_v5  ;;  %v1654_v5 = vld [vmem:[%s4891_s1 + $0x100] sm:$0xff] }
 0x2e9   :  { %v3693_v6 = vpop.f32.mrf.mxu3 }
 0x2ea   :  { %5012 = vst [vmem:[#allocation25_spill] sm:$0xff] %v3693_v6  ;;  %v3894_v6 = vmul.f32 %v3888_v44, %v3888_v44 }
 0x2ec   :  { %5026 = vst [vmem:[#allocation39_spill] sm:$0xff] %v3894_v6 }
 0x2ee   :  { %2782 = vmatmul.msk.f32.gmra.mxu3 %vm4943_vm13, %v3495_v50 }
 0x2f1   :  { %v3699_v3 = vpop.f32.mrf.mxu3 }
 0x2f2   :  { %5013 = vst [vmem:[#allocation26_spill] sm:$0xff] %v3699_v3 }
 0x2f6   :  { %2783 = vmatmul.msk.f32.gmra.mxu3 %vm4943_vm13, %v5004_v36  ;;  %v3813_v36 = vmul.f32 %v1654_v5, %v1654_v5 }
 0x2f8   :  { %1710 = vrot.lane.b32.xlu0 %v3813_v36, %s3019_s16 }
 0x2f9   :  { %v3705_v59 = vpop.f32.mrf.mxu3 }
 0x2fa   :  { %5014 = vst [vmem:[#allocation27_spill] sm:$0xff] %v3705_v59  ;;  %v3879_v59 = vld [vmem:[%s4891_s1 + $0xa0] sm:$0xff] }
 0x2fb   :  { %5023 = vst [vmem:[#allocation36_spill] sm:$0xff] %v3879_v59  ;;  %v3883_v3 = vmul.f32 %v3879_v59, %v3879_v59 }
 0x2fd   :  { %5024 = vst [vmem:[#allocation37_spill] sm:$0xff] %v3883_v3 }
 0x2fe   :  { %2784 = vmatmul.msk.f32.gmra.mxu3 %vm4943_vm13, %v1046_v45  ;;  %v3815_v45 = vpop.f32.mrf.mxu1 }
 0x300   :  { %1706 = vrot.lane.b32.xlu0 %v3831_v58, %s3019_s16 }
 0x301   :  { %v3708_v17 = vpop.f32.mrf.mxu3 }
 0x306   :  { %2785 = vmatmul.msk.f32.gmra.mxu3 %vm4943_vm13, %v1047_v13  ;;  %v1653_v13 = vld [vmem:[%s4891_s1 + $0xf0] sm:$0xff]  ;;  %v3844_v63 = vpop.f32.mrf.mxu1 }
 0x309   :  { %v3713_v50 = vpop.f32.mrf.mxu3 }
 0x30e   :  { %2786 = vmatmul.msk.f32.gmra.mxu3 %vm4943_vm13, %v1048_v28  ;;  %v3820_v28 = vpop.f32.mrf.mxu0  ;;  %v3872_v29 = vpop.f32.mrf.mxu1 }
 0x311   :  { %v3718_v18 = vpop.f32.mrf.mxu3 }
 0x316   :  { %2787 = vmatmul.msk.f32.gmra.mxu3 %vm4943_vm13, %v1049_v54  ;;  %v3824_v54 = vmul.f32 %v1653_v13, %v1653_v13  ;;  %v3846_v1 = vpop.f32.mrf.mxu0  ;;  %v3853_v13 = vld [vmem:[%s4891_s1 + $0xc0] sm:$0xff]  ;;  %v3898_v21 = vpop.f32.mrf.mxu1 }
 0x317   :  { %5019 = vst [vmem:[#allocation32_spill] sm:$0xff] %v3853_v13  ;;  %v3857_v62 = vmul.f32 %v3853_v13, %v3853_v13 }
 0x318   :  { %1708 = vrot.lane.b32.xlu1 %v3824_v54, %s3019_s16 }
 0x319   :  { %v3723_v53 = vpop.f32.mrf.mxu3  ;;  %5020 = vst [vmem:[#allocation33_spill] sm:$0xff] %v3857_v62  ;;  %1702 = vrot.lane.b32.xlu0 %v3857_v62, %s3019_s16 }
 0x31e   :  { %v3874_v26 = vpop.f32.mrf.mxu0 }
 0x320   :  { %1704 = vrot.lane.b32.xlu1 %v3842_v7, %s3019_s16 }
 0x321   :  { %v3729_v34 = vpop.f32.mrf.mxu3  ;;  %1698 = vrot.lane.b32.xlu0 %v3883_v3, %s3019_s16 }
 0x326   :  { %v1252_v60 = vpop.f32.mrf.mxu0 }
 0x328   :  { %1700 = vrot.lane.b32.xlu1 %v3868_v55, %s3019_s16  ;;  %v3900_v55 = vpop.f32.mrf.mxu1 }
 0x329   :  { %v3731_v23 = vpop.f32.mrf.mxu3 }
 0x32e   :  { %v1255_v62 = vpop.f32.mrf.mxu0 }
 0x330   :  { %1696 = vrot.lane.b32.xlu1 %v3894_v6, %s3019_s16 }
 0x331   :  { %v3744_v43 = vpop.f32.mrf.mxu3 }
 0x339   :  { %v3757_v20 = vpop.f32.mrf.mxu3 }
 0x341   :  { %v3770_v42 = vpop.f32.mrf.mxu3 }
 0x349   :  { %v3783_v9 = vpop.f32.mrf.mxu3 }
 0x34a   :  { %v1380_v6 = vmul.f32 %v3783_v9, %v3783_v9 }
 0x351   :  { %v1169_v4 = vpop.f32.mrf.mxu3 }
 0x352   :  { %v1383_v44 = vmul.f32 %v1169_v4, %v1169_v4  ;;  %v1359_v4 = vmul.f32 %v3718_v18, %v3718_v18 }
 0x359   :  { %v1172_v49 = vpop.f32.mrf.mxu3 }
 0x35a   :  { %v1386_v3 = vmul.f32 %v1172_v49, %v1172_v49  ;;  %v1356_v49 = vmul.f32 %v3713_v50, %v3713_v50 }
 0x361   :  { %v1175_v27 = vpop.f32.mrf.mxu3 }
 0x362   :  { %v1389_v48 = vmul.f32 %v1175_v27, %v1175_v27 }
 0x369   :  { %v1178_v5 = vpop.f32.mrf.mxu3 }
 0x36a   :  { %v1392_v13 = vmul.f32 %v1178_v5, %v1178_v5 }
 0x371   :  { %v1181_v30 = vpop.f32.mrf.mxu3 }
 0x372   :  { %v1395_v15 = vmul.f32 %v1181_v30, %v1181_v30  ;;  %v1377_v30 = vmul.f32 %v3770_v42, %v3770_v42  ;;  %v1258_v42 = vpop.f32.mrf.mxu0 }
 0x379   :  { %v1184_v56 = vpop.f32.mrf.mxu3 }
 0x37a   :  { %v1398_v25 = vmul.f32 %v1184_v56, %v1184_v56  ;;  %v1374_v56 = vmul.f32 %v3757_v20, %v3757_v20 }
 0x37c   :  { %1413 = vmatpush.msrb.mxu2 %v1398_v25 }
 0x37e   :  { %1414 = vmatpush.msrb.mxu2 %v1395_v15  ;;  %v1261_v15 = vpop.f32.mrf.mxu0 }
 0x380   :  { %1415 = vmatpush.msrb.mxu2 %v1392_v13 }
 0x381   :  { %v1187_v59 = vpop.f32.mrf.mxu3 }
 0x382   :  { %1416 = vmatpush.msrb.mxu2 %v1389_v48  ;;  %v1371_v48 = vmul.f32 %v3744_v43, %v3744_v43  ;;  %v1365_v43 = vmul.f32 %v3729_v34, %v3729_v34  ;;  %v1353_v34 = vmul.f32 %v3708_v17, %v3708_v17  ;;  %v1396_v17 = vmul.f32 %v1258_v42, %v1258_v42 }
 0x384   :  { %1417 = vmatpush.msrb.mxu2 %v1386_v3  ;;  %v3910_v3 = vpop.f32.mrf.mxu1 }
 0x386   :  { %1418 = vmatpush.msrb.mxu2 %v1383_v44  ;;  %v1368_v44 = vmul.f32 %v3731_v23, %v3731_v23  ;;  %v1362_v23 = vmul.f32 %v3723_v53, %v3723_v53  ;;  %v1264_v50 = vpop.f32.mrf.mxu0 }
 0x388   :  { %1419 = vmatpush.msrb.mxu2 %v1380_v6  ;;  %v3917_v6 = vld [vmem:[%s4891_s1 + $0x80] sm:$0xff] }
 0x389   :  { %v1190_v25 = vpop.f32.mrf.mxu3  ;;  %v3921_v9 = vmul.f32 %v3917_v6, %v3917_v6 }
 0x38a   :  { %1420 = vmatpush.msrb.mxu2 %v1377_v30  ;;  %v1404_v18 = vmul.f32 %v1190_v25, %v1190_v25  ;;  %v1401_v30 = vmul.f32 %v1187_v59, %v1187_v59  ;;  %v1387_v25 = vmul.f32 %v3874_v26, %v3874_v26  ;;  %v1375_v26 = vmul.f32 %v3781_v10, %v3781_v10 }
 0x38b   :  { %1694 = vrot.lane.b32.xlu2 %v3921_v9, %s3019_s16  ;;  %v1363_v10 = vmul.f32 %v3727_v46, %v3727_v46 }
 0x38c   :  { %1421 = vmatpush.msrb.mxu2 %v1374_v56  ;;  %v3933_v27 = vpop.f32.mrf.mxu1 }
 0x38e   :  { %1422 = vmatpush.msrb.mxu2 %v1371_v48  ;;  %v1399_v48 = vmul.f32 %v1261_v15, %v1261_v15  ;;  %v1267_v59 = vpop.f32.mrf.mxu0  ;;  %v1357_v15 = vmul.f32 %v3715_v38, %v3715_v38  ;;  %v1402_v38 = vmul.f32 %v1264_v50, %v1264_v50 }
 0x38f   :  { %v1405_v46 = vmul.f32 %v1267_v59, %v1267_v59  ;;  %v1382_v59 = vmul.f32 %v3900_v55, %v3900_v55  ;;  %v1370_v55 = vmul.f32 %v3815_v45, %v3815_v45 }
 0x390   :  { %1423 = vmatpush.msrb.mxu2 %v1368_v44  ;;  %v1393_v44 = vmul.f32 %v1255_v62, %v1255_v62  ;;  %v1381_v62 = vmul.f32 %v3820_v28, %v3820_v28  ;;  %v1369_v28 = vmul.f32 %v3755_v16, %v3755_v16 }
 0x391   :  { %v1193_v20 = vpop.f32.mrf.mxu3 }
 0x392   :  { %1424 = vmatpush.msrb.mxu2 %v1365_v43  ;;  %v1407_v53 = vmul.f32 %v1193_v20, %v1193_v20  ;;  %v1390_v43 = vmul.f32 %v1252_v60, %v1252_v60  ;;  %v1384_v20 = vmul.f32 %v3846_v1, %v3846_v1  ;;  %v1378_v60 = vmul.f32 %v3800_v19, %v3800_v19 }
 0x393   :  { %v1372_v1 = vmul.f32 %v3768_v57, %v3768_v57  ;;  %v1366_v19 = vmul.f32 %v3740_v24, %v3740_v24  ;;  %v1360_v57 = vmul.f32 %v3721_v22, %v3721_v22 }
 0x394   :  { %1425 = vmatpush.msrb.mxu2 %v1362_v23  ;;  %v1329_v56 = vpop.f32.mrf.mxu1 }
 0x396   :  { %1426 = vmatpush.msrb.mxu2 %v1359_v4  ;;  %v3949_v4 = vpop.permute.xlu1 %1724  ;;  %v1270_v42 = vpop.f32.mrf.mxu0 }
 0x397   :  { %v1408_v22 = vmul.f32 %v1270_v42, %v1270_v42 }
 0x398   :  { %1427 = vmatpush.msrb.mxu2 %v1356_v49 }
 0x399   :  { %v1196_v5 = vpop.f32.mrf.mxu3 }
 0x39a   :  { %v1410_v13 = vmul.f32 %v1196_v5, %v1196_v5  ;;  %1428 = vmatpush.msrb.mxu2 %v1353_v34  ;;  %v1354_v5 = vmul.f32 %v3710_v40, %v3710_v40 }
 0x39b   :  { %2828 = vmatmul.msk.f32.vlgmr.msrb.gmra.mxu2 %vm3448_vm14, %v4994_v0 }
 0x39c   :  { %1448 = vmatpush.msra.mxu2 %v1410_v13  ;;  %v1332_v23 = vpop.f32.mrf.mxu1 }
 0x39e   :  { %1449 = vmatpush.msra.mxu2 %v1407_v53  ;;  %v3963_v34 = vpop.permute.xlu1 %1722  ;;  %v1273_v16 = vpop.f32.mrf.mxu0 }
 0x39f   :  { %v1411_v53 = vmul.f32 %v1273_v16, %v1273_v16 }
 0x3a0   :  { %1450 = vmatpush.msra.mxu2 %v1404_v18 }
 0x3a2   :  { %1451 = vmatpush.msra.mxu2 %v1401_v30 }
 0x3a3   :  { %2829 = vmatmul.msk.f32.gmra.mxu2 %vm3475_vm5, %v4994_v0 }
 0x3a4   :  { %1459 = vmatpush.msrb.mxu2 %v1399_v48  ;;  %v1335_v49 = vpop.f32.mrf.mxu1 }
 0x3a5   :  { %v1397_v40 = vmul.f32 %v1335_v49, %v1335_v49  ;;  %v5027_v49 = vld [vmem:[#allocation17_spill] sm:$0xff] }
 0x3a6   :  { %1460 = vmatpush.msrb.mxu2 %v1396_v17  ;;  %v3975_v24 = vpop.permute.xlu1 %1720  ;;  %v1394_v17 = vmul.f32 %v1332_v23, %v1332_v23 }
 0x3a8   :  { %1461 = vmatpush.msrb.mxu2 %v1393_v44  ;;  %v1391_v44 = vmul.f32 %v1329_v56, %v1329_v56  ;;  %v1379_v56 = vmul.f32 %v3898_v21, %v3898_v21  ;;  %v1367_v21 = vmul.f32 %v3792_v61, %v3792_v61 }
 0x3aa   :  { %1462 = vmatpush.msrb.mxu2 %v1390_v43  ;;  %v1388_v43 = vmul.f32 %v3933_v27, %v3933_v27  ;;  %v1376_v27 = vmul.f32 %v3872_v29, %v3872_v29  ;;  %v1364_v29 = vmul.f32 %v3779_v12, %v3779_v12 }
 0x3ab   :  { %2830 = vmatmul.msk.f32.vlgmr.msra.gmra.mxu2 %vm4942_vm0, %v3469_v39 }
 0x3ac   :  { %1463 = vmatpush.msrb.mxu2 %v1387_v25  ;;  %v1338_v13 = vpop.f32.mrf.mxu1  ;;  %v1385_v25 = vmul.f32 %v3910_v3, %v3910_v3  ;;  %v1373_v3 = vmul.f32 %v3844_v63, %v3844_v63  ;;  %v1361_v63 = vmul.f32 %v3766_v51, %v3766_v51 }
 0x3ad   :  { %v1400_v30 = vmul.f32 %v1338_v13, %v1338_v13 }
 0x3ae   :  { %1464 = vmatpush.msrb.mxu2 %v1384_v20  ;;  %v3980_v48 = vpop.permute.xlu1 %1718 }
 0x3b0   :  { %1465 = vmatpush.msrb.mxu2 %v1381_v62  ;;  %v1715_v62 = vpop.permute.xlu0 %1714 }
 0x3b2   :  { %1466 = vmatpush.msrb.mxu2 %v1378_v60 }
 0x3b3   :  { %2831 = vmatmul.msk.f32.gmra.mxu2 %vm4942_vm0, %v3489_v37 }
 0x3b4   :  { %1467 = vmatpush.msrb.mxu2 %v1375_v26  ;;  %v1341_v18 = vpop.f32.mrf.mxu1  ;;  %v1358_v26 = vmul.f32 %v3751_v47, %v3751_v47  ;;  %v40_v47 = vmul.u32 8, %v5027_v49 }
 0x3b6   :  { %1468 = vmatpush.msrb.mxu2 %v1372_v1  ;;  %v1717_v20 = vpop.permute.xlu1 %1716  ;;  %v1355_v1 = vmul.f32 %v3736_v35, %v3736_v35  ;;  %v1757_v35 = vadd.f32 %v3949_v4, %v3738_v41  ;;  %v1755_v4 = vadd.f32 %v3975_v24, %v3762_v33 }
 0x3b7   :  { %v1753_v24 = vadd.f32 %v1717_v20, %v3788_v14 }
 0x3b8   :  { %1469 = vmatpush.msrb.mxu2 %v1369_v28  ;;  %v1711_v61 = vpop.permute.xlu0 %1710 }
 0x3ba   :  { %1470 = vmatpush.msrb.mxu2 %v1366_v19  ;;  %v1403_v19 = vmul.f32 %v1341_v18, %v1341_v18  ;;  %v1752_v18 = vadd.f32 %v1715_v62, %v3802_v11 }
 0x3bc   :  { %1471 = vmatpush.msrb.mxu2 %v1363_v10  ;;  %v1344_v50 = vpop.f32.mrf.mxu1 }
 0x3bd   :  { %v1406_v51 = vmul.f32 %v1344_v50, %v1344_v50 }
 0x3be   :  { %1472 = vmatpush.msrb.mxu2 %v1360_v57  ;;  %v1713_v60 = vpop.permute.xlu1 %1712  ;;  %v44_v57 = vadd.s32 8, %v40_v47 }
 0x3c0   :  { %1473 = vmatpush.msrb.mxu2 %v1357_v15  ;;  %v1707_v10 = vpop.permute.xlu0 %1706  ;;  %v5028_v15 = vld [vmem:[#allocation20_spill] sm:$0xff] }
 0x3c1   :  { %v41_v16 = vmul.u32 8, %v5028_v15 }
 0x3c2   :  { %1474 = vmatpush.msrb.mxu2 %v1354_v5  ;;  %v1756_v5 = vadd.f32 %v3963_v34, %v3749_v32  ;;  %v1754_v34 = vadd.f32 %v3980_v48, %v3775_v31 }
 0x3c3   :  { %2832 = vmatmul.msk.f32.vlgmr.msrb.gmra.mxu2 %vm3448_vm14, %v4994_v0 }
 0x3c4   :  { %1494 = vmatpush.msra.mxu2 %v1411_v53  ;;  %v1347_v23 = vpop.f32.mrf.mxu1  ;;  %v5029_v53 = vld [vmem:[#allocation18_spill] sm:$0xff] }
 0x3c5   :  { %v1409_v12 = vmul.f32 %v1347_v23, %v1347_v23  ;;  %vm43_vm9 = vcmp.ge.s32.totalorder %v5029_v53, %v41_v16  ;;  %vm42_vm10 = vcmp.ge.s32.totalorder %v5029_v53, %v40_v47  ;;  %vm46_vm11 = vcmp.lt.s32.totalorder %v5029_v53, %v44_v57  ;;  %v5038_v23 = vld [vmem:[#allocation37_spill] sm:$0xff] }
 0x3c6   :  { %1495 = vmatpush.msra.mxu2 %v1408_v22  ;;  %v1709_v28 = vpop.permute.xlu1 %1708  ;;  %v45_v22 = vadd.s32 8, %v41_v16  ;;  %vm4041_vm1 = vmand %vm42_vm10, %vm46_vm11  ;;  %v4090_v16 = vmul.u32 8, %v5029_v53 }
 0x3c8   :  { %1496 = vmatpush.msra.mxu2 %v1405_v46  ;;  %vm47_vm12 = vcmp.lt.s32.totalorder %v5029_v53, %v45_v22  ;;  %v5030_v46 = vmov 0  ;;  %v4096_v22 = vadd.s32 8, %v4090_v16 }
 0x3c9   :  { %vm4033_vm15 = vmand %vm43_vm9, %vm47_vm12 }
 0x3ca   :  { %1497 = vmatpush.msra.mxu2 %v1402_v38  ;;  %v5031_v46 = vsel %vm4033_vm15, 4294967295, %v5030_v46  ;;  %2874 = vmatpush.msk.msrb.mxu1 %vm4033_vm15, %v4994_v0  ;;  %v5033_v38 = vmov 0 }
 0x3cb   :  { %2833 = vmatmul.msk.f32.gmra.mxu2 %vm3475_vm5, %v4994_v0  ;;  %5032 = vst [vmem:[#allocation17_spill] sm:$0xff] %v5031_v46  ;;  %v5034_v38 = vsel %vm4041_vm1, 4294967295, %v5033_v38 }
 0x3cc   :  { %1505 = vmatpush.msrb.mxu2 %v1400_v30  ;;  %v1350_v45 = vpop.f32.mrf.mxu1  ;;  %5035 = vst [vmem:[#allocation20_spill] sm:$0xff] %v5034_v38  ;;  %2875 = vmatpush.msk.msrb.mxu1 %vm4041_vm1, %v4994_v0  ;;  %v1703_v30 = vpop.permute.xlu0 %1702 }
 0x3cd   :  { %v1412_v42 = vmul.f32 %v1350_v45, %v1350_v45 }
 0x3ce   :  { %1506 = vmatpush.msrb.mxu2 %v1397_v40  ;;  %v1705_v13 = vpop.permute.xlu1 %1704  ;;  %v1751_v40 = vadd.f32 %v1713_v60, %v3804_v8 }
 0x3cf   :  { %v1747_v50 = vadd.f32 %v1705_v13, %v3842_v7  ;;  %v65_v13 = vadd.s32 120, %v5027_v49 }
 0x3d0   :  { %1507 = vmatpush.msrb.mxu2 %v1394_v17  ;;  %v1750_v17 = vadd.f32 %v1711_v61, %v3813_v36 }
 0x3d1   :  { %vm82_vm2 = vcmp.ge.s32.totalorder %v65_v13, %v4090_v16  ;;  %vm99_vm3 = vcmp.lt.s32.totalorder %v65_v13, %v4096_v22 }
 0x3d2   :  { %1508 = vmatpush.msrb.mxu2 %v1391_v44  ;;  %v1749_v44 = vadd.f32 %v1709_v28, %v3824_v54  ;;  %vm4104_vm6 = vmand %vm82_vm2, %vm99_vm3 }
 0x3d3   :  { %2834 = vmatmul.msk.f32.vlgmr.msra.gmra.mxu2 %vm4942_vm0, %v3469_v39  ;;  %2858 = vmatpush.msk.msra.mxu0 %vm4104_vm6, %v4994_v0 }
 0x3d4   :  { %1509 = vmatpush.msrb.mxu2 %v1388_v43  ;;  %v1748_v43 = vadd.f32 %v1707_v10, %v3831_v58 }
 0x3d6   :  { %1510 = vmatpush.msrb.mxu2 %v1385_v25  ;;  %v1701_v48 = vpop.permute.xlu1 %1700  ;;  %v1699_v25 = vpop.permute.xlu0 %1698 }
 0x3d8   :  { %1511 = vmatpush.msrb.mxu2 %v1382_v59  ;;  %v5036_v59 = vld [vmem:[#allocation33_spill] sm:$0xff] }
 0x3d9   :  { %v1746_v20 = vadd.f32 %v1703_v30, %v5036_v59  ;;  %v5042_v30 = vmov 0 }
 0x3da   :  { %1512 = vmatpush.msrb.mxu2 %v1379_v56 }
 0x3db   :  { %2835 = vmatmul.msk.f32.gmra.mxu2 %vm4942_vm0, %v3489_v37 }
 0x3dc   :  { %1513 = vmatpush.msrb.mxu2 %v1376_v27  ;;  %v5037_v27 = vld [vmem:[#allocation35_spill] sm:$0xff] }
 0x3de   :  { %1514 = vmatpush.msrb.mxu2 %v1373_v3  ;;  %v1697_v56 = vpop.permute.xlu1 %1696  ;;  %v1745_v3 = vadd.f32 %v1701_v48, %v5037_v27  ;;  %v60_v48 = vadd.s32 80, %v5027_v49 }
 0x3e0   :  { %1515 = vmatpush.msrb.mxu2 %v1370_v55  ;;  %v1744_v55 = vadd.f32 %v1699_v25, %v5038_v23 }
 0x3e2   :  { %1516 = vmatpush.msrb.mxu2 %v1367_v21  ;;  %v5039_v21 = vld [vmem:[#allocation39_spill] sm:$0xff] }
 0x3e3   :  { %v1743_v60 = vadd.f32 %v1697_v56, %v5039_v21  ;;  %v58_v56 = vadd.s32 64, %v5027_v49 }
 0x3e4   :  { %1517 = vmatpush.msrb.mxu2 %v1364_v29 }
 0x3e5   :  { %v1695_v62 = vpop.permute.xlu2 %1694 }
 0x3e6   :  { %1518 = vmatpush.msrb.mxu2 %v1361_v63  ;;  %v1742_v29 = vadd.f32 %v1695_v62, %v3921_v9  ;;  %v57_v62 = vadd.s32 56, %v5027_v49 }
 0x3e8   :  { %1519 = vmatpush.msrb.mxu2 %v1358_v26 }
 0x3ea   :  { %1520 = vmatpush.msrb.mxu2 %v1355_v1 }
 0x3eb   :  { %2836 = vmatmul.msk.f32.vlgmr.msrb.gmra.mxu2 %vm3448_vm14, %v4994_v0 }
 0x3ec   :  { %1540 = vmatpush.msra.mxu2 %v1412_v42 }
 0x3ee   :  { %1541 = vmatpush.msra.mxu2 %v1409_v12 }
 0x3f0   :  { %1542 = vmatpush.msra.mxu2 %v1406_v51 }
 0x3f2   :  { %1543 = vmatpush.msra.mxu2 %v1403_v19 }
 0x3f3   :  { %2837 = vmatmul.msk.f32.gmra.mxu2 %vm3475_vm5, %v4994_v0 }
 0x3f4   :  { %1758 = vmatpush.msrb.mxu2 %v1757_v35 }
 0x3f6   :  { %1759 = vmatpush.msrb.mxu2 %v1756_v5 }
 0x3f8   :  { %1760 = vmatpush.msrb.mxu2 %v1755_v4  ;;  %v64_v4 = vadd.s32 112, %v5027_v49 }
 0x3fa   :  { %1761 = vmatpush.msrb.mxu2 %v1754_v34  ;;  %v63_v34 = vadd.s32 104, %v5027_v49  ;;  %vm81_vm4 = vcmp.ge.s32.totalorder %v64_v4, %v4090_v16  ;;  %vm98_vm7 = vcmp.lt.s32.totalorder %v64_v4, %v4096_v22  ;;  %v5054_v4 = vmov 0 }
 0x3fb   :  { %2838 = vmatmul.msk.f32.vlgmr.msra.gmra.mxu2 %vm4942_vm0, %v3469_v39  ;;  %vm4115_vm10 = vmand %vm81_vm4, %vm98_vm7 }
 0x3fc   :  { %1762 = vmatpush.msrb.mxu2 %v1753_v24  ;;  %v5040_v24 = vmov 0  ;;  %vm80_vm8 = vcmp.ge.s32.totalorder %v63_v34, %v4090_v16  ;;  %vm97_vm9 = vcmp.lt.s32.totalorder %v63_v34, %v4096_v22  ;;  %v5043_v30 = vsel %vm4115_vm10, 4294967295, %v5042_v30  ;;  %2859 = vmatpush.msk.msra.mxu0 %vm4115_vm10, %v4994_v0 }
 0x3fd   :  { %v5041_v24 = vsel %vm4104_vm6, 4294967295, %v5040_v24  ;;  %vm4121_vm11 = vmand %vm80_vm8, %vm97_vm9  ;;  %vm77_vm8 = vcmp.ge.s32.totalorder %v60_v48, %v4090_v16  ;;  %vm94_vm9 = vcmp.lt.s32.totalorder %v60_v48, %v4096_v22  ;;  %v5056_v48 = vmov 0 }
 0x3fe   :  { %1763 = vmatpush.msrb.mxu2 %v1752_v18  ;;  %v62_v18 = vadd.s32 96, %v5027_v49  ;;  %2860 = vmatpush.msk.msra.mxu0 %vm4121_vm11, %v4994_v0  ;;  %vm4161_vm13 = vmand %vm77_vm8, %vm94_vm9  ;;  %vm74_vm8 = vcmp.ge.s32.totalorder %v57_v62, %v4090_v16  ;;  %vm91_vm9 = vcmp.lt.s32.totalorder %v57_v62, %v4096_v22 }
 0x3ff   :  { %vm4198_vm5 = vmand %vm74_vm8, %vm91_vm9 }
 0x400   :  { %1764 = vmatpush.msrb.mxu2 %v1751_v40  ;;  %v61_v40 = vadd.s32 88, %v5027_v49  ;;  %vm79_vm12 = vcmp.ge.s32.totalorder %v62_v18, %v4090_v16  ;;  %vm96_vm2 = vcmp.lt.s32.totalorder %v62_v18, %v4096_v22  ;;  %v5057_v48 = vsel %vm4198_vm5, 4294967295, %v5056_v48 }
 0x401   :  { %vm4135_vm7 = vmand %vm79_vm12, %vm96_vm2 }
 0x402   :  { %1765 = vmatpush.msrb.mxu2 %v1750_v17  ;;  %v5044_v17 = vmov 0  ;;  %vm78_vm3 = vcmp.ge.s32.totalorder %v61_v40, %v4090_v16  ;;  %vm95_vm4 = vcmp.lt.s32.totalorder %v61_v40, %v4096_v22  ;;  %2861 = vmatpush.msk.msra.mxu0 %vm4135_vm7, %v4994_v0  ;;  %v54_v40 = vadd.s32 32, %v5027_v49 }
 0x403   :  { %2839 = vmatmul.msk.f32.gmra.mxu2 %vm4942_vm0, %v3489_v37  ;;  %v5045_v17 = vsel %vm4121_vm11, 4294967295, %v5044_v17  ;;  %vm4150_vm12 = vmand %vm78_vm3, %vm95_vm4  ;;  %vm75_vm3 = vcmp.ge.s32.totalorder %v58_v56, %v4090_v16  ;;  %vm92_vm4 = vcmp.lt.s32.totalorder %v58_v56, %v4096_v22 }
 0x404   :  { %1766 = vmatpush.msrb.mxu2 %v1749_v44  ;;  %v59_v44 = vadd.s32 72, %v5027_v49  ;;  %2862 = vmatpush.msk.msra.mxu0 %vm4150_vm12, %v4994_v0 }
 0x406   :  { %1767 = vmatpush.msrb.mxu2 %v1748_v43  ;;  %vm76_vm2 = vcmp.ge.s32.totalorder %v59_v44, %v4090_v16  ;;  %vm93_vm0 = vcmp.lt.s32.totalorder %v59_v44, %v4096_v22  ;;  %2863 = vmatpush.msk.msra.mxu0 %vm4161_vm13, %v4994_v0  ;;  %v53_v44 = vadd.s32 24, %v5027_v49 }
 0x408   :  { %1768 = vmatpush.msrb.mxu2 %v1747_v50  ;;  %v5046_v50 = vmov 0 }
 0x409   :  { %v5047_v50 = vsel %vm4135_vm7, 4294967295, %v5046_v50  ;;  %vm71_vm7 = vcmp.ge.s32.totalorder %v54_v40, %v4090_v16 }
 0x40a   :  { %1769 = vmatpush.msrb.mxu2 %v1746_v20 }
 0x40c   :  { %1770 = vmatpush.msrb.mxu2 %v1745_v3  ;;  %v5048_v3 = vmov 0 }
 0x40d   :  { %v5049_v3 = vsel %vm4150_vm12, 4294967295, %v5048_v3  ;;  %vm88_vm12 = vcmp.lt.s32.totalorder %v54_v40, %v4096_v22 }
 0x40e   :  { %1771 = vmatpush.msrb.mxu2 %v1744_v55 }
 0x410   :  { %1772 = vmatpush.msrb.mxu2 %v1743_v60  ;;  %v5050_v60 = vmov 0 }
 0x411   :  { %v5051_v60 = vsel %vm4161_vm13, 4294967295, %v5050_v60 }
 0x412   :  { %1773 = vmatpush.msrb.mxu2 %v1742_v29  ;;  %v56_v29 = vadd.s32 48, %v5027_v49 }
 0x413   :  { %2840 = vmatmul.msk.f32.vlgmr.msrb.gmra.mxu2 %vm4041_vm1, %v4994_v0  ;;  %vm4183_vm1 = vmand %vm75_vm3, %vm92_vm4 }
 0x414   :  { %v5055_v4 = vsel %vm4183_vm1, 4294967295, %v5054_v4  ;;  %vm5058_vm9 = vcmp.ge.s32.totalorder %v56_v29, %v4090_v16 }
 0x41b   :  { %2841 = vmatmul.msk.f32.gmra.mxu2 %vm4033_vm15, %v4994_v0  ;;  %vm4171_vm15 = vmand %vm76_vm2, %vm93_vm0  ;;  %vm90_vm2 = vcmp.lt.s32.totalorder %v56_v29, %v4096_v22 }
 0x41c   :  { %2864 = vmatpush.msk.msra.mxu0 %vm4171_vm15, %v4994_v0  ;;  %vm4215_vm10 = vmand %vm5058_vm9, %vm90_vm2  ;;  %vm70_vm2 = vcmp.ge.s32.totalorder %v53_v44, %v4090_v16 }
 0x41e   :  { %v4069_v63 = vpop.f32.mrf.mxu2  ;;  %2865 = vmatpush.msk.msra.mxu0 %vm4183_vm1, %v4994_v0 }
 0x420   :  { %2866 = vmatpush.msk.msra.mxu0 %vm4198_vm5, %v4994_v0 }
 0x422   :  { %2867 = vmatpush.msk.msra.mxu0 %vm4215_vm10, %v4994_v0 }
 0x426   :  { %v4071_v26 = vpop.f32.mrf.mxu2 }
 0x42e   :  { %v4073_v45 = vpop.f32.mrf.mxu2 }
 0x436   :  { %v4075_v1 = vpop.f32.mrf.mxu2 }
 0x446   :  { %v4077_v61 = vpop.f32.mrf.mxu2 }
 0x44e   :  { %v4079_v42 = vpop.f32.mrf.mxu2 }
 0x456   :  { %v4081_v28 = vpop.f32.mrf.mxu2 }
 0x45e   :  { %v4083_v12 = vpop.f32.mrf.mxu2 }
 0x46e   :  { %v1522_v51 = vpop.f32.mrf.mxu2 }
 0x476   :  { %v1525_v47 = vpop.f32.mrf.mxu2 }
 0x47e   :  { %v1545_v19 = vpop.f32.mrf.mxu2 }
 0x47f   :  { %v4085_v35 = vadd.f32 %v1545_v19, %v1522_v51 }
 0x486   :  { %v1548_v10 = vpop.f32.mrf.mxu2 }
 0x487   :  { %v4087_v57 = vadd.f32 %v1548_v10, %v1525_v47  ;;  %v5052_v47 = vmov 0  ;;  %v55_v10 = vadd.s32 40, %v5027_v49 }
 0x488   :  { %v5053_v47 = vsel %vm4171_vm15, 4294967295, %v5052_v47 }
 0x489   :  { %vm72_vm0 = vcmp.ge.s32.totalorder %v55_v10, %v4090_v16  ;;  %vm89_vm14 = vcmp.lt.s32.totalorder %v55_v10, %v4096_v22 }
 0x48a   :  { %vm4226_vm13 = vmand %vm72_vm0, %vm89_vm14  ;;  %vm68_vm0 = vcmp.ge.s32.totalorder %v5028_v15, %v4090_v16 }
 0x48b   :  { %2868 = vmatpush.msk.msra.mxu0 %vm4226_vm13, %v4994_v0 }
 0x496   :  { %v4092_v5 = vpop.f32.mrf.mxu2 }
 0x497   :  { %2972 = vrsqrt.f32 %v4092_v5  ;;  %vm1788_vm3 = vcmp.eq.f32.partialorder %v4092_v5, inf  ;;  %vm1790_vm6 = vcmp.eq.f32.partialorder %v4092_v5, 0.0  ;;  %vm1813_vm8 = vweird.f32 %v4092_v5 }
 0x49d   :  { %v4133_v43 = vpop.eup %2972 }
 0x49e   :  { %v4139_v25 = vpop.f32.mrf.mxu2  ;;  %v1782_v20 = vmul.f32 %v4133_v43, %v4092_v5  ;;  %vm1814_vm4 = vweird.f32 %v4133_v43 }
 0x49f   :  { %2974 = vrsqrt.f32 %v4139_v25  ;;  %vm1815_vm11 = vmor %vm1813_vm8, %vm1814_vm4  ;;  %vm85_vm8 = vcmp.lt.s32.totalorder %v5028_v15, %v4096_v22 }
 0x4a0   :  { %v1783_v55 = vmul.f32 %v4133_v43, %v1782_v20  ;;  %vm4236_vm4 = vmand %vm71_vm7, %vm88_vm12  ;;  %vm1800_vm12 = vcmp.eq.f32.partialorder %v4139_v25, inf }
 0x4a1   :  { %2869 = vmatpush.msk.msra.mxu0 %vm4236_vm4, %v4994_v0  ;;  %vm4292_vm1 = vmand %vm68_vm0, %vm85_vm8 }
 0x4a2   :  { %v1784_v51 = vmul.f32 0.5, %v1783_v55  ;;  %v1791_v55 = vand.u32 2147483648, %v4092_v5 }
 0x4a4   :  { %v1785_v19 = vsub.f32 1.5, %v1784_v51  ;;  %v52_v51 = vadd.s32 16, %v5027_v49 }
 0x4a5   :  { %v4181_v13 = vpop.eup %2974 }
 0x4a6   :  { %v1786_v34 = vmul.f32 %v4133_v43, %v1785_v19  ;;  %v1794_v18 = vmul.f32 %v4181_v13, %v4139_v25  ;;  %vm69_vm14 = vcmp.ge.s32.totalorder %v52_v51, %v4090_v16 }
 0x4a8   :  { %v1787_v20 = vmul.f32 %v1786_v34, %v4092_v5  ;;  %v1795_v56 = vmul.f32 %v4181_v13, %v1794_v18 }
 0x4aa   :  { %v1789_v19 = vsel %vm1788_vm3, %v4092_v5, %v1787_v20  ;;  %v1796_v18 = vmul.f32 0.5, %v1795_v56  ;;  %v1816_v5 = vsel %vm1815_vm11, %v4133_v43, %v1786_v34  ;;  %vm87_vm3 = vcmp.lt.s32.totalorder %v53_v44, %v4096_v22  ;;  %v4250_v43 = vld [vmem:[%s4891_s1 + $0x1a0] sm:$0xff] }
 0x4ab   :  { %v1792_v10 = vsel %vm1790_vm6, %v1791_v55, %v1789_v19  ;;  %vm86_vm6 = vcmp.lt.s32.totalorder %v52_v51, %v4096_v22  ;;  %v4255_v34 = vld [vmem:[%s4891_s1 + $0x1c0] sm:$0xff]  ;;  %vm1824_vm11 = vweird.f32 %v4181_v13  ;;  %vm4260_vm7 = vmand %vm70_vm2, %vm87_vm3  ;;  %v1803_v44 = vand.u32 2147483648, %v4139_v25 }
 0x4ac   :  { %vm1805_vm9 = vcmp.ne.f32.partialorder %v1792_v10, 1.0  ;;  %v1797_v20 = vsub.f32 1.5, %v1796_v18  ;;  %vm1823_vm2 = vweird.f32 %v4139_v25  ;;  %v2137_v10 = vmul.f32 %v4250_v43, %v4250_v43  ;;  %2870 = vmatpush.msk.msra.mxu0 %vm4260_vm7, %v4994_v0 }
 0x4ad   :  { %v1827_v56 = vsel %vm1805_vm9, %v1816_v5, 1.0  ;;  %vm4275_vm9 = vmand %vm69_vm14, %vm86_vm6  ;;  %v2139_v5 = vmul.f32 %v4255_v34, %v4255_v34  ;;  %vm1802_vm3 = vcmp.eq.f32.partialorder %v4139_v25, 0.0  ;;  %vm67_vm14 = vcmp.ge.s32.totalorder %v5027_v49, %v4090_v16 }
 0x4ae   :  { %1831 = vrot.lane.b32.xlu1 %v1827_v56, %s3020_s20  ;;  %v1798_v55 = vmul.f32 %v4181_v13, %v1797_v20  ;;  %vm1825_vm15 = vmor %vm1823_vm2, %vm1824_vm11  ;;  %vm84_vm6 = vcmp.lt.s32.totalorder %v5027_v49, %v4096_v22  ;;  %2871 = vmatpush.msk.msra.mxu0 %vm4275_vm9, %v4994_v0  ;;  %v4311_v22 = vld [vmem:[%s4891_s1 + $0x1b0] sm:$0x3] }
 0x4af   :  { %vm4300_vm11 = vmand %vm67_vm14, %vm84_vm6  ;;  %v2141_v16 = vadd.f32 %v2139_v5, %v2137_v10 }
 0x4b0   :  { %v1799_v51 = vmul.f32 %v1798_v55, %v4139_v25  ;;  %2872 = vmatpush.msk.msra.mxu0 %vm4292_vm1, %v4994_v0 }
 0x4b2   :  { %v1801_v20 = vsel %vm1800_vm12, %v4139_v25, %v1799_v51  ;;  %v1826_v51 = vsel %vm1825_vm15, %v4181_v13, %v1798_v55  ;;  %v4316_v13 = vld [vmem:[%s4891_s1 + $0x1d0] sm:$0x3]  ;;  %2873 = vmatpush.msk.msra.mxu0 %vm4300_vm11, %v4994_v0  ;;  %v2138_v55 = vmul.f32 %v4311_v22, %v4311_v22  ;;  %vm5074_vm15 = vcmask 130048  }
 0x4b3   :  { %v1804_v15 = vsel %vm1802_vm3, %v1803_v44, %v1801_v20  ;;  %2159 = vmatmul.f32.vlgmr.msra.gmra.mxu0 %v2141_v16  ;;  %v2140_v44 = vmul.f32 %v4316_v13, %v4316_v13  ;;  %v1841_v20 = vld [vmem:[%s4891_s1 + $0x190] sm:$0xff]  ;;  %vm5075_vm12 = vmmov %vm5074_vm15 }
 0x4b4   :  { %vm1806_vm5 = vcmp.ne.f32.partialorder %v1804_v15, 1.0  ;;  %vm5076_vm0 = vmmov %vm5075_vm12 }
 0x4b5   :  { %v1828_v25 = vsel %vm1806_vm5, %v1826_v51, 1.0  ;;  %v2142_v10 = vadd.f32 %v2140_v44, %v2138_v55  ;;  %vm1837_vm5 = vcmask 162816   ;;  %v1840_v51 = vld [vmem:[%s4891_s1 + $0x180] sm:$0xff]  ;;  %v5073_v44 = vmov 0.0   ;;  %vm5077_vm8 = vmmov %vm5076_vm0 }
 0x4b6   :  { %1833 = vrot.lane.b32.xlu0 %v1828_v25, %s3020_s20  ;;  %v117_v32 = vsel %vm4292_vm1, 1.0, %v5073_v44  ;;  %vm5078_vm1 = vmmov %vm5076_vm0 }
 0x4b7   :  { %vm5079_vm6 = vmmov %vm5076_vm0 }
 0x4bb   :  { %2162 = vmatmul.f32.gmra.mxu0 %v2142_v10  ;;  %v116_v10 = vsel %vm4300_vm11, 1.0, %v5073_v44  ;;  %vm5080_vm11 = vmmov %vm5076_vm0 }
 0x4be   :  { %2069 = vrot.lane.b32.xlu0 %v3917_v6, %s3019_s16 }
 0x520   :  { %v1832_v5 = vpop.permute.xlu1 %1831 }
 0x521   :  { %v1838_v16 = vsel %vm1837_vm5, %v1827_v56, %v1832_v5  ;;  %v118_v56 = vsel %vm4275_vm9, 1.0, %v5073_v44 }
 0x522   :  { %v1842_v41 = vmul.f32 %v1840_v51, %v1838_v16 }
 0x528   :  { %v1834_v15 = vpop.permute.xlu0 %1833 }
 0x529   :  { %v1839_v0 = vsel %vm1837_vm5, %v1828_v25, %v1834_v15 }
 0x52a   :  { %v1843_v55 = vmul.f32 %v1841_v20, %v1839_v0 }
 0x52c   :  { %1906 = vmatpush.msrb.mxu3 %v1843_v55 }
 0x52e   :  { %1907 = vmatpush.msrb.mxu3 %v1842_v41  ;;  %v119_v41 = vsel %vm4260_vm7, 1.0, %v5073_v44 }
 0x52f   :  { %2842 = vmatmul.msk.f32.vlgmr.msrb.gmra.mxu3 %vm5074_vm15, %v116_v10  ;;  %v121_v10 = vsel %vm4226_vm13, 1.0, %v5073_v44 }
 0x530   :  { %v2160_v0 = vpop.f32.mrf.mxu0 }
 0x531   :  { %2976 = vrsqrt.f32 %v2160_v0  ;;  %vm2173_vm7 = vcmp.eq.f32.partialorder %v2160_v0, inf  ;;  %vm2175_vm2 = vcmp.eq.f32.partialorder %v2160_v0, 0.0  ;;  %vm2198_vm9 = vweird.f32 %v2160_v0 }
 0x537   :  { %2843 = vmatmul.msk.f32.gmra.mxu3 %vm5075_vm12, %v117_v32  ;;  %v2977_v38 = vpop.eup %2976  ;;  %v120_v32 = vsel %vm4236_vm4, 1.0, %v5073_v44 }
 0x538   :  { %v2163_v25 = vpop.f32.mrf.mxu0  ;;  %v2167_v46 = vmul.f32 %v2977_v38, %v2160_v0  ;;  %vm2199_vm3 = vweird.f32 %v2977_v38 }
 0x539   :  { %2978 = vrsqrt.f32 %v2163_v25  ;;  %vm2200_vm4 = vmor %vm2198_vm9, %vm2199_vm3  ;;  %vm2185_vm13 = vcmp.eq.f32.partialorder %v2163_v25, inf  ;;  %vm2187_vm15 = vcmp.eq.f32.partialorder %v2163_v25, 0.0  ;;  %vm2208_vm12 = vweird.f32 %v2163_v25 }
 0x53a   :  { %v2168_v5 = vmul.f32 %v2977_v38, %v2167_v46  ;;  %vm5082_vm9 = vnez %v5057_v48  ;;  %vm5083_vm3 = vmmov %vm5078_vm1 }
 0x53c   :  { %v2169_v18 = vmul.f32 0.5, %v2168_v5 }
 0x53e   :  { %v2170_v20 = vsub.f32 1.5, %v2169_v18 }
 0x53f   :  { %2844 = vmatmul.msk.f32.gmra.mxu3 %vm5076_vm0, %v118_v56  ;;  %v2979_v15 = vpop.eup %2978  ;;  %v2176_v56 = vand.u32 2147483648, %v2160_v0 }
 0x540   :  { %v2171_v51 = vmul.f32 %v2977_v38, %v2170_v20  ;;  %v2179_v16 = vmul.f32 %v2979_v15, %v2163_v25  ;;  %vm2209_vm0 = vweird.f32 %v2979_v15 }
 0x542   :  { %v2172_v19 = vmul.f32 %v2171_v51, %v2160_v0  ;;  %v2180_v55 = vmul.f32 %v2979_v15, %v2179_v16  ;;  %v2201_v5 = vsel %vm2200_vm4, %v2977_v38, %v2171_v51  ;;  %v2188_v16 = vand.u32 2147483648, %v2163_v25  ;;  %vm5085_vm4 = vmmov %vm5078_vm1 }
 0x544   :  { %v2181_v46 = vmul.f32 0.5, %v2180_v55 }
 0x546   :  { %v2182_v18 = vsub.f32 1.5, %v2181_v46 }
 0x547   :  { %2845 = vmatmul.msk.f32.gmra.mxu3 %vm5077_vm8, %v119_v41  ;;  %v2174_v41 = vsel %vm2173_vm7, %v2160_v0, %v2172_v19  ;;  %v122_v0 = vsel %vm4215_vm10, 1.0, %v5073_v44  ;;  %vm2210_vm8 = vmor %vm2208_vm12, %vm2209_vm0  ;;  %vm5084_vm10 = vnez %v5055_v4  ;;  %vm5092_vm0 = vnez %v5047_v50 }
 0x548   :  { %v2177_v40 = vsel %vm2175_vm2, %v2176_v56, %v2174_v41  ;;  %v2183_v20 = vmul.f32 %v2979_v15, %v2182_v18  ;;  %vm5081_vm2 = vmmov %vm5078_vm1  ;;  %v124_v62 = vsel %vm5084_vm10, 1.0, %v5073_v44  ;;  %v128_v4 = vsel %vm5092_vm0, 1.0, %v5073_v44  ;;  %v5100_v41 = vld [vmem:[#allocation38_spill] sm:$0xff] }
 0x549   :  { %vm2190_vm14 = vcmp.ne.f32.partialorder %v2177_v40, 1.0  ;;  %vm5091_vm12 = vmmov %vm5078_vm1  ;;  %vm5124_vm0 = vnez %v4989_v52 }
 0x54a   :  { %v2184_v29 = vmul.f32 %v2183_v20, %v2163_v25  ;;  %v2211_v51 = vsel %vm2210_vm8, %v2979_v15, %v2183_v20  ;;  %vm5093_vm8 = vmmov %vm5078_vm1  ;;  %v5103_v20 = vld [vmem:[#allocation32_spill] sm:$0xff] }
 0x54b   :  { %vm5099_vm10 = vmmov %vm5085_vm4 }
 0x54c   :  { %v2186_v19 = vsel %vm2185_vm13, %v2163_v25, %v2184_v29  ;;  %vm5089_vm13 = vmmov %vm5078_vm1 }
 0x54d   :  { %v2189_v38 = vsel %vm2187_vm15, %v2188_v16, %v2186_v19  ;;  %vm5090_vm15 = vnez %v5049_v3  ;;  %v5104_v19 = vld [vmem:[#allocation31_spill] sm:$0xff] }
 0x54e   :  { %vm2191_vm7 = vcmp.ne.f32.partialorder %v2189_v38, 1.0  ;;  %v127_v48 = vsel %vm5090_vm15, 1.0, %v5073_v44  ;;  %vm5118_vm15 = vcmask 261120  }
 0x54f   :  { %2846 = vmatmul.msk.f32.gmra.mxu3 %vm5078_vm1, %v120_v32  ;;  %v2212_v32 = vsel %vm2190_vm14, %v2201_v5, 1.0  ;;  %v2213_v55 = vsel %vm2191_vm7, %v2211_v51, 1.0  ;;  %vm5086_vm14 = vnez %v5053_v47  ;;  %vm5095_vm7 = vmmov %vm5081_vm2  ;;  %v5102_v5 = vld [vmem:[#allocation34_spill] sm:$0xff]  ;;  %v2247_v51 = vand.u32 7, %v5029_v53 }
 0x550   :  { %2876 = vmatmul.msk.f32.vlgmr.msrb.gmra.mxu1 %vm5080_vm11, %v2212_v32  ;;  %v125_v25 = vsel %vm5086_vm14, 1.0, %v5073_v44  ;;  %vm5088_vm11 = vnez %v5051_v60  ;;  %vm2275_vm14 = vcmask 1043456  }
 0x551   :  { %v126_v15 = vsel %vm5088_vm11, 1.0, %v5073_v44  ;;  %vm2280_vm11 = vcmask 293888  }
 0x557   :  { %2847 = vmatmul.msk.f32.gmra.mxu3 %vm5079_vm6, %v121_v10  ;;  %v123_v10 = vsel %vm5082_vm9, 1.0, %v5073_v44  ;;  %vm5087_vm6 = vmmov %vm5078_vm1 }
 0x558   :  { %2877 = vmatmul.msk.f32.gmra.mxu1 %vm5081_vm2, %v2213_v55  ;;  %vm5096_vm2 = vnez %v5043_v30  ;;  %vm5097_vm9 = vmmov %vm5083_vm3  ;;  %v5101_v30 = vld [vmem:[#allocation36_spill] sm:$0xff] }
 0x559   :  { %v130_v60 = vsel %vm5096_vm2, 1.0, %v5073_v44 }
 0x55f   :  { %2848 = vmatmul.msk.f32.gmra.mxu3 %vm5078_vm1, %v122_v0  ;;  %vm5094_vm1 = vnez %v5045_v17 }
 0x560   :  { %v129_v47 = vsel %vm5094_vm1, 1.0, %v5073_v44 }
 0x567   :  { %2849 = vmatmul.msk.f32.gmra.mxu3 %vm5083_vm3, %v123_v10  ;;  %vm5098_vm3 = vnez %v5041_v24 }
 0x568   :  { %v131_v3 = vsel %vm5098_vm3, 1.0, %v5073_v44 }
 0x56f   :  { %2850 = vmatmul.msk.f32.gmra.mxu3 %vm5085_vm4, %v124_v62  ;;  %vm2248_vm4 = vcmp.eq.s32.totalorder %v2247_v51, %v5027_v49  ;;  %v2270_v62 = vrot.slane %v5073_v44, 4 }
 0x571   :  { %2878 = vmatpush.msk.msra.mxu2 %vm2275_vm14, %v2270_v62 }
 0x577   :  { %2851 = vmatmul.msk.f32.gmra.mxu3 %vm5087_vm6, %v125_v25  ;;  %v2249_v25 = vsel %vm2248_vm4, -1.0, %v5073_v44  ;;  %vm2256_vm6 = vcmask 1041408  }
 0x57f   :  { %2852 = vmatmul.msk.f32.gmra.mxu3 %vm5089_vm13, %v126_v15  ;;  %vm5117_vm13 = vnez %v4984_v2 }
 0x587   :  { %2853 = vmatmul.msk.f32.gmra.mxu3 %vm5091_vm12, %v127_v48  ;;  %v2269_v48 = vrot.slane %v2249_v25, 4  ;;  %v2995_v25 = vld [vmem:[%s4891_s1 + $0x110] sm:$0xff]  ;;  %vm5123_vm12 = vmmov %vm5118_vm15 }
 0x589   :  { %v2278_v49 = vsel %vm2275_vm14, %v2269_v48, %v2270_v62  ;;  %2895 = vmatpush.msk.msrb.mxu0 %vm2275_vm14, %v2269_v48 }
 0x58a   :  { %2345 = vmatpush.msra.mxu2 %v2278_v49 }
 0x58f   :  { %2854 = vmatmul.msk.f32.gmra.mxu3 %vm5093_vm8, %v128_v4  ;;  %vm5125_vm8 = vmmov %vm5123_vm12 }
 0x590   :  { %vm5126_vm1 = vmmov %vm5125_vm8 }
 0x591   :  { %vm5129_vm2 = vmmov %vm5126_vm1 }
 0x592   :  { %vm5134_vm3 = vmmov %vm5126_vm1 }
 0x597   :  { %2855 = vmatmul.msk.f32.gmra.mxu3 %vm5095_vm7, %v129_v47  ;;  %vm809_vm7 = vcmask 785408  }
 0x59f   :  { %2856 = vmatmul.msk.f32.gmra.mxu3 %vm5097_vm9, %v130_v60  ;;  %vm5133_vm9 = vmmov %vm5126_vm1 }
 0x5a7   :  { %2857 = vmatmul.msk.f32.gmra.mxu3 %vm5099_vm10, %v131_v3 }
 0x5b2   :  { %v1909_v50 = vpop.f32.mrf.mxu3 }
 0x5b3   :  { %v4402_v56 = vmul.f32 %v1909_v50, %v3917_v6 }
 0x5b5   :  { %1989 = vrot.lane.b32.xlu2 %v4402_v56, %s3019_s16 }
 0x5ba   :  { %v1912_v17 = vpop.f32.mrf.mxu3 }
 0x5bb   :  { %v4407_v40 = vmul.f32 %v1912_v17, %v5100_v41  ;;  %v2279_v17 = vsel %vm2275_vm14, %v2270_v62, %v2269_v48 }
 0x5bc   :  { %2410 = vmatpush.msrb.mxu0 %v2279_v17  ;;  %v2998_v17 = vld [vmem:[%s4891_s1 + $0x140] sm:$0xff] }
 0x5bd   :  { %1991 = vrot.lane.b32.xlu1 %v4407_v40, %s3019_s16  ;;  %2071 = vrot.lane.b32.xlu2 %v5100_v41, %s3019_s16 }
 0x5c2   :  { %v1915_v24 = vpop.f32.mrf.mxu3 }
 0x5c3   :  { %v4414_v46 = vmul.f32 %v1915_v24, %v5101_v30 }
 0x5c5   :  { %1993 = vrot.lane.b32.xlu0 %v4414_v46, %s3019_s16  ;;  %2073 = vrot.lane.b32.xlu1 %v5101_v30, %s3019_s16 }
 0x5ca   :  { %v1918_v6 = vpop.f32.mrf.mxu3 }
 0x5cb   :  { %v4421_v32 = vmul.f32 %v1918_v6, %v5102_v5 }
 0x5cd   :  { %2075 = vrot.lane.b32.xlu0 %v5102_v5, %s3019_s16  ;;  %1995 = vrot.lane.b32.xlu2 %v4421_v32, %s3019_s16  ;;  %v2237_v16 = vpop.f32.mrf.mxu1 }
 0x5ce   :  { %v2245_v55 = vmul.f32 %v2237_v16, %v4255_v34  ;;  %v2243_v53 = vmul.f32 %v2237_v16, %v4250_v43 }
 0x5d0   :  { %v2257_v4 = vrot.slane %v2245_v55, 6  ;;  %v2258_v3 = vrot.slane %v2243_v53, 6 }
 0x5d2   :  { %v1921_v18 = vpop.f32.mrf.mxu3 }
 0x5d3   :  { %v4428_v29 = vmul.f32 %v1921_v18, %v5103_v20 }
 0x5d5   :  { %1997 = vrot.lane.b32.xlu1 %v4428_v29, %s3019_s16  ;;  %2077 = vrot.lane.b32.xlu2 %v5103_v20, %s3019_s16  ;;  %v2240_v10 = vpop.f32.mrf.mxu1  ;;  %v2250_v20 = vsub.f32 0.0, %v2245_v55  ;;  %v2994_v55 = vld [vmem:[%s4891_s1 + $0x100] sm:$0xff] }
 0x5d6   :  { %v2246_v15 = vmul.f32 %v2240_v10, %v4316_v13  ;;  %v2244_v47 = vmul.f32 %v2240_v10, %v4311_v22  ;;  %v2992_v13 = vld [vmem:[%s4891_s1 + $0xe0] sm:$0xff] }
 0x5d8   :  { %v2259_v60 = vrot.slane %v2246_v15, 6  ;;  %v2261_v50 = vrot.slane %v2244_v47, 6  ;;  %v2251_v30 = vsub.f32 0.0, %v2246_v15  ;;  %v2273_v6 = vsel %vm2256_vm6, %v2244_v47, %v2257_v4 }
 0x5da   :  { %v1924_v0 = vpop.f32.mrf.mxu3  ;;  %v2260_v22 = vsel %vm2256_vm6, %v2257_v4, %v2259_v60  ;;  %v2262_v24 = vsel %vm2256_vm6, %v2258_v3, %v2261_v50  ;;  %v2274_v18 = vsel %vm2256_vm6, %v2251_v30, %v2258_v3  ;;  %v2997_v60 = vld [vmem:[%s4891_s1 + $0x130] sm:$0xff]  ;;  %v2070_v3 = vpop.permute.xlu0 %2069 }
 0x5db   :  { %v4435_v38 = vmul.f32 %v1924_v0, %v5104_v19  ;;  %v2276_v41 = vsel %vm2275_vm14, %v2260_v22, %v2269_v48  ;;  %v2277_v5 = vsel %vm2275_vm14, %v2262_v24, %v2270_v62  ;;  %v2993_v0 = vld [vmem:[%s4891_s1 + $0xf0] sm:$0xff]  ;;  %vm880_vm14 = vcmask 7168  }
 0x5dc   :  { %2346 = vmatpush.msra.mxu2 %v2276_v41  ;;  %2411 = vmatpush.msrb.mxu0 %v2277_v5  ;;  %v2999_v24 = vld [vmem:[%s4891_s1 + $0x150] sm:$0xff]  ;;  %v3000_v5 = vld [vmem:[%s4891_s1 + $0x160] sm:$0xff] }
 0x5dd   :  { %1999 = vrot.lane.b32.xlu0 %v4435_v38, %s3019_s16  ;;  %2079 = vrot.lane.b32.xlu1 %v5104_v19, %s3019_s16 }
 0x5de   :  { %2347 = vmatpush.msra.mxu2 %v2273_v6  ;;  %2412 = vmatpush.msrb.mxu0 %v2274_v18 }
 0x5e0   :  { %2348 = vmatpush.msra.mxu2 %v2243_v53  ;;  %2413 = vmatpush.msrb.mxu0 %v2250_v20  ;;  %v2996_v53 = vld [vmem:[%s4891_s1 + $0x120] sm:$0xff] }
 0x5e2   :  { %v1927_v34 = vpop.f32.mrf.mxu3 }
 0x5e3   :  { %v4455_v43 = vmul.f32 %v2992_v13, %v1927_v34 }
 0x5e5   :  { %2081 = vrot.lane.b32.xlu0 %v2992_v13, %s3019_s16  ;;  %2001 = vrot.lane.b32.xlu2 %v4455_v43, %s3019_s16 }
 0x5ea   :  { %v1930_v16 = vpop.f32.mrf.mxu3 }
 0x5eb   :  { %v4470_v19 = vmul.f32 %v2993_v0, %v1930_v16  ;;  %v3001_v16 = vld [vmem:[%s4891_s1 + $0x170] sm:$0xff]  ;;  %s3022_s1 = smov 88  }
 0x5ed   :  { %2003 = vrot.lane.b32.xlu1 %v4470_v19, %s3019_s16  ;;  %2083 = vrot.lane.b32.xlu2 %v2993_v0, %s3019_s16 }
 0x5f2   :  { %v1933_v51 = vpop.f32.mrf.mxu3 }
 0x5f3   :  { %v4478_v10 = vmul.f32 %v2994_v55, %v1933_v51  ;;  %v5105_v51 = vld [vmem:[#allocation19_spill] sm:$0xff] }
 0x5f5   :  { %2005 = vrot.lane.b32.xlu0 %v4478_v10, %s3019_s16  ;;  %2085 = vrot.lane.b32.xlu1 %v2994_v55, %s3019_s16  ;;  %v5106_v55 = vld [vmem:[#allocation23_spill] sm:$0xff] }
 0x5fa   :  { %v1936_v62 = vpop.f32.mrf.mxu3 }
 0x5fb   :  { %v4486_v15 = vmul.f32 %v2995_v25, %v1936_v62  ;;  %v4542_v62 = vadd.f32 %v5106_v55, %v5105_v51  ;;  %v4575_v51 = vadd.f32 %v4083_v12, %v4079_v42 }
 0x5fd   :  { %2087 = vrot.lane.b32.xlu0 %v2995_v25, %s3019_s16  ;;  %2007 = vrot.lane.b32.xlu2 %v4486_v15, %s3019_s16 }
 0x602   :  { %v1939_v48 = vpop.f32.mrf.mxu3 }
 0x603   :  { %v4494_v4 = vmul.f32 %v2996_v53, %v1939_v48 }
 0x605   :  { %2009 = vrot.lane.b32.xlu1 %v4494_v4, %s3019_s16  ;;  %2089 = vrot.lane.b32.xlu2 %v2996_v53, %s3019_s16 }
 0x60a   :  { %v1942_v47 = vpop.f32.mrf.mxu3 }
 0x60b   :  { %v4502_v49 = vmul.f32 %v2997_v60, %v1942_v47 }
 0x60d   :  { %2011 = vrot.lane.b32.xlu0 %v4502_v49, %s3019_s16  ;;  %2091 = vrot.lane.b32.xlu1 %v2997_v60, %s3019_s16  ;;  %v5107_v60 = vld [vmem:[#allocation22_spill] sm:$0xff] }
 0x60f   :  { %v1990_v34 = vpop.permute.xlu2 %1989 }
 0x610   :  { %v2037_v50 = vadd.f32 %v1990_v34, %v4402_v56  ;;  %v5108_v34 = vld [vmem:[#allocation24_spill] sm:$0xff] }
 0x612   :  { %v1945_v13 = vpop.f32.mrf.mxu3  ;;  %v2117_v22 = vsel %vm1837_vm5, %v2037_v50, %v2070_v3  ;;  %v4553_v3 = vadd.f32 %v5108_v34, %v5107_v60  ;;  %v5109_v50 = vld [vmem:[#allocation25_spill] sm:$0xff] }
 0x613   :  { %v4512_v41 = vmul.f32 %v2998_v17, %v1945_v13  ;;  %2879 = vmatmul.msk.f32.vlgmr.msra.gmra.mxu2 %vm2280_vm11, %v2117_v22  ;;  %2896 = vmatmul.msk.f32.vlgmr.msrb.gmra.mxu0 %vm2280_vm11, %v2117_v22  ;;  %v5110_v13 = vld [vmem:[#allocation28_spill] sm:$0xff] }
 0x614   :  { %v792_v22 = vadd.f32 %v5110_v13, %v5109_v50 }
 0x615   :  { %2093 = vrot.lane.b32.xlu0 %v2998_v17, %s3019_s16  ;;  %2013 = vrot.lane.b32.xlu2 %v4512_v41, %s3019_s16  ;;  %v5111_v17 = vld [vmem:[#allocation26_spill] sm:$0xff] }
 0x617   :  { %v2072_v53 = vpop.permute.xlu2 %2071 }
 0x61a   :  { %v1948_v56 = vpop.f32.mrf.mxu3 }
 0x61b   :  { %v4522_v30 = vmul.f32 %v2999_v24, %v1948_v56  ;;  %v5112_v56 = vld [vmem:[#allocation27_spill] sm:$0xff] }
 0x61d   :  { %2015 = vrot.lane.b32.xlu1 %v4522_v30, %s3019_s16  ;;  %2095 = vrot.lane.b32.xlu2 %v2999_v24, %s3019_s16  ;;  %v795_v24 = vadd.f32 %v5112_v56, %v5111_v17 }
 0x622   :  { %v1951_v6 = vpop.f32.mrf.mxu3 }
 0x623   :  { %v4530_v18 = vmul.f32 %v3000_v5, %v1951_v6 }
 0x625   :  { %2097 = vrot.lane.b32.xlu1 %v3000_v5, %s3019_s16  ;;  %2017 = vrot.lane.b32.xlu0 %v4530_v18, %s3019_s16 }
 0x62a   :  { %v1954_v20 = vpop.f32.mrf.mxu3 }
 0x62b   :  { %v4538_v0 = vmul.f32 %v3001_v16, %v1954_v20 }
 0x62d   :  { %2099 = vrot.lane.b32.xlu0 %v3001_v16, %s3019_s16  ;;  %2019 = vrot.lane.b32.xlu2 %v4538_v0, %s3019_s16  ;;  %v4569_v16 = vadd.f32 %v4081_v28, %v4077_v61 }
 0x62e   :  { %801 = vrot.lane.b32.xlu1 %v4542_v62, %s3021_s26 }
 0x62f   :  { %v1992_v25 = vpop.permute.xlu1 %1991 }
 0x630   :  { %v2038_v48 = vadd.f32 %v1992_v25, %v4407_v40 }
 0x632   :  { %v2118_v47 = vsel %vm1837_vm5, %v2038_v48, %v2072_v53 }
 0x633   :  { %2880 = vmatmul.msk.f32.gmra.mxu2 %vm2280_vm11, %v2118_v47  ;;  %2897 = vmatmul.msk.f32.gmra.mxu0 %vm2280_vm11, %v2118_v47 }
 0x635   :  { %803 = vrot.lane.b32.xlu2 %v792_v22, %s3021_s26  ;;  %805 = vrot.lane.b32.xlu0 %v4553_v3, %s3021_s26 }
 0x636   :  { %807 = vrot.lane.b32.xlu1 %v795_v24, %s3021_s26 }
 0x637   :  { %v1994_v40 = vpop.permute.xlu0 %1993  ;;  %v2074_v6 = vpop.permute.xlu1 %2073 }
 0x638   :  { %v2039_v5 = vadd.f32 %v1994_v40, %v4414_v46  ;;  %v1996_v46 = vpop.permute.xlu2 %1995 }
 0x639   :  { %v2040_v28 = vadd.f32 %v1996_v46, %v4421_v32 }
 0x63a   :  { %v2119_v20 = vsel %vm1837_vm5, %v2039_v5, %v2074_v6 }
 0x63b   :  { %2881 = vmatmul.msk.f32.gmra.mxu2 %vm2280_vm11, %v2119_v20  ;;  %2898 = vmatmul.msk.f32.gmra.mxu0 %vm2280_vm11, %v2119_v20 }
 0x63d   :  { %1555 = vrot.lane.b32.xlu2 %v4569_v16, %s3021_s26  ;;  %1557 = vrot.lane.b32.xlu0 %v4085_v35, %s3021_s26 }
 0x63e   :  { %1559 = vrot.lane.b32.xlu1 %v4575_v51, %s3021_s26 }
 0x63f   :  { %v2076_v61 = vpop.permute.xlu0 %2075 }
 0x640   :  { %v2120_v55 = vsel %vm1837_vm5, %v2040_v28, %v2076_v61  ;;  %v2078_v35 = vpop.permute.xlu2 %2077  ;;  %v5113_v61 = vld [vmem:[#allocation14_spill] sm:$0xff]  ;;  %v5114_v28 = vld [vmem:[#allocation15_spill] sm:$0xff] }
 0x643   :  { %2882 = vmatmul.msk.f32.gmra.mxu2 %vm2280_vm11, %v2120_v55  ;;  %2899 = vmatmul.msk.f32.gmra.mxu0 %vm2280_vm11, %v2120_v55 }
 0x645   :  { %1561 = vrot.lane.b32.xlu2 %v4087_v57, %s3021_s26 }
 0x647   :  { %v1998_v42 = vpop.permute.xlu1 %1997 }
 0x648   :  { %v2041_v12 = vadd.f32 %v1998_v42, %v4428_v29  ;;  %v2002_v57 = vpop.permute.xlu2 %2001  ;;  %v5115_v42 = vld [vmem:[#allocation10_spill] sm:$0xff] }
 0x649   :  { %v2043_v29 = vadd.f32 %v2002_v57, %v4455_v43 }
 0x64a   :  { %v2121_v25 = vsel %vm1837_vm5, %v2041_v12, %v2078_v35  ;;  %v5116_v12 = vld [vmem:[#allocation11_spill] sm:$0xff] }
 0x64b   :  { %2883 = vmatmul.msk.f32.gmra.mxu2 %vm2280_vm11, %v2121_v25  ;;  %2900 = vmatmul.msk.f32.gmra.mxu0 %vm2280_vm11, %v2121_v25  ;;  %v1585_v35 = vmul.f32 %v5116_v12, %v5115_v42 }
 0x64f   :  { %v2000_v32 = vpop.permute.xlu0 %1999  ;;  %v2080_v48 = vpop.permute.xlu1 %2079 }
 0x650   :  { %v2042_v53 = vadd.f32 %v2000_v32, %v4435_v38  ;;  %v2084_v50 = vpop.permute.xlu2 %2083 }
 0x652   :  { %v2122_v47 = vsel %vm1837_vm5, %v2042_v53, %v2080_v48  ;;  %v1587_v48 = vmul.f32 %v1585_v35, %v5116_v12  ;;  %v4626_v53 = vsel %vm5117_vm13, 1.0, %v5073_v44 }
 0x653   :  { %2884 = vmatmul.msk.f32.gmra.mxu2 %vm2280_vm11, %v2122_v47  ;;  %2901 = vmatmul.msk.f32.gmra.mxu0 %vm2280_vm11, %v2122_v47 }
 0x654   :  { %v1589_v47 = vmul.f32 %v1587_v48, %v4626_v53 }
 0x657   :  { %v2082_v60 = vpop.permute.xlu0 %2081 }
 0x658   :  { %v2123_v34 = vsel %vm1837_vm5, %v2043_v29, %v2082_v60  ;;  %v2008_v24 = vpop.permute.xlu2 %2007  ;;  %v5119_v60 = vld [vmem:[#allocation7_spill] sm:$0xff]  ;;  %v5120_v29 = vld [vmem:[#allocation9_spill] sm:$0xff] }
 0x65b   :  { %2885 = vmatmul.msk.f32.gmra.mxu2 %vm2280_vm11, %v2123_v34  ;;  %2902 = vmatmul.msk.f32.gmra.mxu0 %vm2280_vm11, %v2123_v34  ;;  %v833_v34 = vmul.f32 %v5120_v29, %v5119_v60 }
 0x65f   :  { %v2004_v13 = vpop.permute.xlu1 %2003 }
 0x660   :  { %v2044_v38 = vadd.f32 %v2004_v13, %v4470_v19  ;;  %v2046_v19 = vadd.f32 %v2008_v24, %v4486_v15  ;;  %v2090_v5 = vpop.permute.xlu2 %2089  ;;  %v5121_v13 = vld [vmem:[#allocation6_spill] sm:$0xff]  ;;  %v835_v24 = vmul.f32 %v833_v34, %v5120_v29 }
 0x662   :  { %v2124_v22 = vsel %vm1837_vm5, %v2044_v38, %v2084_v50  ;;  %v5122_v38 = vld [vmem:[#allocation8_spill] sm:$0xff] }
 0x663   :  { %2886 = vmatmul.msk.f32.gmra.mxu2 %vm2280_vm11, %v2124_v22  ;;  %2903 = vmatmul.msk.f32.gmra.mxu0 %vm2280_vm11, %v2124_v22  ;;  %v832_v22 = vmul.f32 %v5122_v38, %v5121_v13 }
 0x667   :  { %v2006_v17 = vpop.permute.xlu0 %2005  ;;  %v2086_v56 = vpop.permute.xlu1 %2085 }
 0x668   :  { %v2045_v43 = vadd.f32 %v2006_v17, %v4478_v10  ;;  %v1586_v10 = vmul.f32 %v5114_v28, %v5113_v61 }
 0x66a   :  { %v2125_v40 = vsel %vm1837_vm5, %v2045_v43, %v2086_v56  ;;  %v1588_v25 = vmul.f32 %v1586_v10, %v5114_v28  ;;  %v834_v43 = vmul.f32 %v832_v22, %v5122_v38  ;;  %v5127_v38 = vld [vmem:[#allocation21_spill] sm:$0xff]  ;;  %v5128_v22 = vld [vmem:[#allocation12_spill] sm:$0xff] }
 0x66b   :  { %2887 = vmatmul.msk.f32.gmra.mxu2 %vm2280_vm11, %v2125_v40  ;;  %2904 = vmatmul.msk.f32.gmra.mxu0 %vm2280_vm11, %v2125_v40  ;;  %v837_v40 = vmul.f32 %v835_v24, %v3469_v39 }
 0x66c   :  { %v1592_v52 = vmul.f32 %v1588_v25, %v3489_v37 }
 0x66f   :  { %v2088_v6 = vpop.permute.xlu0 %2087  ;;  %v2014_v32 = vpop.permute.xlu2 %2013 }
 0x670   :  { %v2126_v20 = vsel %vm1837_vm5, %v2046_v19, %v2088_v6  ;;  %v2049_v12 = vadd.f32 %v2014_v32, %v4512_v41 }
 0x673   :  { %2888 = vmatmul.msk.f32.gmra.mxu2 %vm2280_vm11, %v2126_v20  ;;  %2905 = vmatmul.msk.f32.gmra.mxu0 %vm2280_vm11, %v2126_v20  ;;  %v840_v20 = vsel %vm5123_vm12, %v837_v40, 0.0 }
 0x677   :  { %v2010_v46 = vpop.permute.xlu1 %2009  ;;  %v2096_v6 = vpop.permute.xlu2 %2095 }
 0x678   :  { %v2047_v55 = vadd.f32 %v2010_v46, %v4494_v4  ;;  %v1590_v4 = vmul.f32 %v1588_v25, %v3469_v39  ;;  %v839_v46 = vmul.f32 %v835_v24, %v3489_v37 }
 0x67a   :  { %v2127_v15 = vsel %vm1837_vm5, %v2047_v55, %v2090_v5  ;;  %v1593_v57 = vsel %vm5118_vm15, %v1590_v4, 0.0  ;;  %v836_v5 = vmul.f32 %v834_v43, %v4626_v53  ;;  %v844_v10 = vsel %vm5125_vm8, %v839_v46, 0.0  ;;  %v5131_v46 = vld [vmem:[#allocation16_spill] sm:$0xff] }
 0x67b   :  { %2889 = vmatmul.msk.f32.gmra.mxu2 %vm2280_vm11, %v2127_v15  ;;  %2906 = vmatmul.msk.f32.gmra.mxu0 %vm2280_vm11, %v2127_v15  ;;  %v1594_v50 = vadd.f32 %v1593_v57, %v1589_v47  ;;  %v1597_v47 = vsel %vm5126_vm1, %v1592_v52, 0.0 }
 0x67c   :  { %v841_v61 = vadd.f32 %v840_v20, %v836_v5 }
 0x67d   :  { %1595 = vadd.xlane.f32.xlu2 %v1594_v50 }
 0x67e   :  { %842 = vadd.xlane.f32.xlu0 %v841_v61 }
 0x67f   :  { %v2012_v17 = vpop.permute.xlu0 %2011  ;;  %v2092_v56 = vpop.permute.xlu1 %2091 }
 0x680   :  { %v2048_v2 = vadd.f32 %v2012_v17, %v4502_v49  ;;  %v4647_v49 = vsel %vm5124_vm0, 1.0, %v5073_v44  ;;  %v700_v17 = vadd.f32 %v5128_v22, %v5127_v38 }
 0x681   :  { %v838_v28 = vmul.f32 %v834_v43, %v4647_v49  ;;  %v1591_v4 = vmul.f32 %v1587_v48, %v4647_v49 }
 0x682   :  { %v2128_v19 = vsel %vm1837_vm5, %v2048_v2, %v2092_v56 }
 0x683   :  { %2890 = vmatmul.msk.f32.gmra.mxu2 %vm2280_vm11, %v2128_v19  ;;  %2907 = vmatmul.msk.f32.gmra.mxu0 %vm2280_vm11, %v2128_v19  ;;  %v845_v55 = vadd.f32 %v844_v10, %v838_v28  ;;  %v1598_v57 = vadd.f32 %v1597_v47, %v1591_v4 }
 0x685   :  { %846 = vadd.xlane.f32.xlu1 %v845_v55 }
 0x686   :  { %1599 = vadd.xlane.f32.xlu0 %v1598_v57 }
 0x687   :  { %v2094_v42 = vpop.permute.xlu0 %2093  ;;  %v2020_v15 = vpop.permute.xlu2 %2019 }
 0x688   :  { %v2129_v35 = vsel %vm1837_vm5, %v2049_v12, %v2094_v42  ;;  %v2052_v56 = vadd.f32 %v2020_v15, %v4538_v0  ;;  %v5130_v0 = vld [vmem:[#allocation13_spill] sm:$0xff] }
 0x689   :  { %v703_v61 = vadd.f32 %v5131_v46, %v5130_v0 }
 0x68b   :  { %2891 = vmatmul.msk.f32.gmra.mxu2 %vm2280_vm11, %v2129_v35  ;;  %2908 = vmatmul.msk.f32.gmra.mxu0 %vm2280_vm11, %v2129_v35 }
 0x68f   :  { %v2016_v60 = vpop.permute.xlu1 %2015  ;;  %v804_v32 = vpop.permute.xlu2 %803 }
 0x690   :  { %v2050_v29 = vadd.f32 %v2016_v60, %v4522_v30  ;;  %v817_v30 = vadd.f32 %v804_v32, %v4542_v62  ;;  %v1454_v60 = vadd.f32 %v4073_v45, %v4069_v63 }
 0x692   :  { %v2130_v41 = vsel %vm1837_vm5, %v2050_v29, %v2096_v6  ;;  %v821_v43 = vmul.f32 %v817_v30, %v3469_v39 }
 0x693   :  { %2892 = vmatmul.msk.f32.gmra.mxu2 %vm2280_vm11, %v2130_v41  ;;  %2909 = vmatmul.msk.f32.gmra.mxu0 %vm2280_vm11, %v2130_v41  ;;  %v4690_v41 = vpop.f32.mrf.mxu0 }
 0x694   :  { %v824_v19 = vsel %vm5129_vm2, %v821_v43, 0.0 }
 0x696   :  { %v4686_v47 = vpop.f32.mrf.mxu2 }
 0x697   :  { %v2098_v34 = vpop.permute.xlu1 %2097  ;;  %v2018_v50 = vpop.permute.xlu0 %2017 }
 0x698   :  { %v2051_v25 = vadd.f32 %v2018_v50, %v4530_v18  ;;  %v1556_v24 = vpop.permute.xlu2 %1555 }
 0x69a   :  { %v2131_v48 = vsel %vm1837_vm5, %v2051_v25, %v2098_v34 }
 0x69b   :  { %2893 = vmatmul.msk.f32.gmra.mxu2 %vm2280_vm11, %v2131_v48  ;;  %2910 = vmatmul.msk.f32.gmra.mxu0 %vm2280_vm11, %v2131_v48 }
 0x69f   :  { %v2100_v13 = vpop.permute.xlu0 %2099 }
 0x6a0   :  { %v802_v2 = vpop.permute.xlu1 %801  ;;  %v2132_v40 = vsel %vm1837_vm5, %v2052_v56, %v2100_v13  ;;  %v1562_v42 = vpop.permute.xlu2 %1561  ;;  %vm5132_vm5 = vmmov %vm5126_vm1 }
 0x6a1   :  { %v810_v18 = vsel %vm809_vm7, %v802_v2, %v804_v32  ;;  %v1572_v15 = vadd.f32 %v1562_v42, %v4575_v51 }
 0x6a2   :  { %v816_v6 = vadd.f32 %v810_v18, %v700_v17 }
 0x6a3   :  { %2894 = vmatmul.msk.f32.gmra.mxu2 %vm2280_vm11, %v2132_v40  ;;  %2911 = vmatmul.msk.f32.gmra.mxu0 %vm2280_vm11, %v2132_v40  ;;  %v1576_v51 = vmul.f32 %v1572_v15, %v3489_v37 }
 0x6a4   :  { %v820_v62 = vmul.f32 %v816_v6, %v4626_v53 }
 0x6a5   :  { %v1581_v38 = vsel %vm5134_vm3, %v1576_v51, 0.0 }
 0x6a6   :  { %v825_v5 = vadd.f32 %v824_v19, %v820_v62 }
 0x6a7   :  { %v806_v20 = vpop.permute.xlu0 %805 }
 0x6a8   :  { %v808_v28 = vpop.permute.xlu1 %807  ;;  %826 = vadd.xlane.f32.xlu2 %v825_v5 }
 0x6a9   :  { %v811_v10 = vsel %vm809_vm7, %v806_v20, %v808_v28  ;;  %v819_v55 = vadd.f32 %v808_v28, %v4553_v3  ;;  %v1457_v3 = vadd.f32 %v4075_v1, %v4071_v26 }
 0x6aa   :  { %v818_v12 = vadd.f32 %v811_v10, %v703_v61 }
 0x6ab   :  { %v823_v35 = vmul.f32 %v819_v55, %v3489_v37 }
 0x6ac   :  { %v822_v52 = vmul.f32 %v818_v12, %v4647_v49 }
 0x6ad   :  { %v828_v4 = vsel %vm5132_vm5, %v823_v35, 0.0 }
 0x6ae   :  { %v829_v57 = vadd.f32 %v828_v4, %v822_v52 }
 0x6af   :  { %v1558_v29 = vpop.permute.xlu0 %1557 }
 0x6b0   :  { %v1563_v32 = vsel %vm809_vm7, %v1556_v24, %v1558_v29  ;;  %v1570_v34 = vadd.f32 %v1558_v29, %v4569_v16  ;;  %v1560_v50 = vpop.permute.xlu1 %1559  ;;  %830 = vadd.xlane.f32.xlu1 %v829_v57  ;;  %v4705_v37 = vpop.f32.mrf.mxu0 }
 0x6b1   :  { %v1569_v25 = vadd.f32 %v1563_v32, %v1454_v60  ;;  %v1564_v48 = vsel %vm809_vm7, %v1560_v50, %v1562_v42  ;;  %vm5142_vm7 = vcmask 130048  }
 0x6b2   :  { %v1574_v30 = vmul.f32 %v1570_v34, %v3469_v39  ;;  %v1571_v63 = vadd.f32 %v1564_v48, %v1457_v3  ;;  %vm5143_vm2 = vmmov %vm5142_vm7 }
 0x6b3   :  { %v1573_v45 = vmul.f32 %v1569_v25, %v4626_v53  ;;  %vm5144_vm5 = vmmov %vm5143_vm2 }
 0x6b4   :  { %v1577_v13 = vsel %vm5133_vm9, %v1574_v30, 0.0  ;;  %v1575_v26 = vmul.f32 %v1571_v63, %v4647_v49  ;;  %vm5145_vm9 = vmmov %vm5143_vm2 }
 0x6b5   :  { %v1578_v1 = vadd.f32 %v1577_v13, %v1573_v45  ;;  %vm5146_vm3 = vmmov %vm5143_vm2 }
 0x6b6   :  { %v4703_v16 = vpop.f32.mrf.mxu2  ;;  %v1582_v22 = vadd.f32 %v1581_v38, %v1575_v26 }
 0x6b7   :  { %1579 = vadd.xlane.f32.xlu0 %v1578_v1 }
 0x6b8   :  { %1583 = vadd.xlane.f32.xlu2 %v1582_v22  ;;  %v4709_v39 = vpop.f32.mrf.mxu0 }
 0x6be   :  { %v4707_v17 = vpop.f32.mrf.mxu2 }
 0x6c0   :  { %v4714_v53 = vpop.f32.mrf.mxu0 }
 0x6c6   :  { %v4711_v56 = vpop.f32.mrf.mxu2 }
 0x6c8   :  { %v4722_v24 = vpop.f32.mrf.mxu0 }
 0x6c9   :  { %2555 = vrot.lane.b32.xlu1 %v3921_v9, %s3022_s1 }
 0x6cb   :  { %2557 = vrot.lane.b32.xlu0 %v5039_v21, %s3022_s1 }
 0x6ce   :  { %v4717_v49 = vpop.f32.mrf.mxu2 }
 0x6d0   :  { %2559 = vrot.lane.b32.xlu2 %v5038_v23, %s3022_s1  ;;  %v4731_v21 = vpop.f32.mrf.mxu0 }
 0x6d1   :  { %2561 = vrot.lane.b32.xlu1 %v5037_v27, %s3022_s1 }
 0x6d3   :  { %2563 = vrot.lane.b32.xlu0 %v5036_v59, %s3022_s1 }
 0x6d6   :  { %v4724_v2 = vpop.f32.mrf.mxu2 }
 0x6d8   :  { %2565 = vrot.lane.b32.xlu2 %v3842_v7, %s3022_s1  ;;  %v4739_v27 = vpop.f32.mrf.mxu0  ;;  %v5136_v7 = vld [vmem:[#allocation29_spill] sm:$0xff] }
 0x6d9   :  { %2567 = vrot.lane.b32.xlu1 %v3831_v58, %s3022_s1  ;;  %v5135_v58 = vld [vmem:[#allocation30_spill] sm:$0xff] }
 0x6db   :  { %2569 = vrot.lane.b32.xlu0 %v3824_v54, %s3022_s1 }
 0x6de   :  { %v4729_v9 = vpop.f32.mrf.mxu2 }
 0x6e0   :  { %2571 = vrot.lane.b32.xlu2 %v3813_v36, %s3022_s1  ;;  %v4747_v36 = vpop.f32.mrf.mxu0 }
 0x6e1   :  { %2573 = vrot.lane.b32.xlu1 %v3804_v8, %s3022_s1 }
 0x6e3   :  { %2575 = vrot.lane.b32.xlu0 %v3802_v11, %s3022_s1 }
 0x6e6   :  { %v4736_v59 = vpop.f32.mrf.mxu2 }
 0x6e8   :  { %2577 = vrot.lane.b32.xlu2 %v3788_v14, %s3022_s1  ;;  %v4749_v11 = vpop.f32.mrf.mxu0 }
 0x6e9   :  { %2579 = vrot.lane.b32.xlu1 %v3775_v31, %s3022_s1 }
 0x6eb   :  { %2581 = vrot.lane.b32.xlu0 %v3762_v33, %s3022_s1 }
 0x6ee   :  { %v4743_v54 = vpop.f32.mrf.mxu2 }
 0x6f0   :  { %2583 = vrot.lane.b32.xlu2 %v5135_v58, %s3022_s1  ;;  %v4751_v14 = vpop.f32.mrf.mxu0  ;;  %v1596_v40 = vpop.xlane.xlu2 %1595 }
 0x6f1   :  { %2585 = vrot.lane.b32.xlu1 %v5136_v7, %s3022_s1  ;;  %v843_v33 = vpop.xlane.xlu0 %842  ;;  %v1601_v4 = vmul.f32 2.0, %v1596_v40 }
 0x6f2   :  { %v848_v62 = vmul.f32 2.0, %v843_v33 }
 0x6f6   :  { %v2377_v8 = vpop.f32.mrf.mxu2 }
 0x6f8   :  { %v4753_v31 = vpop.f32.mrf.mxu0  ;;  %v847_v19 = vpop.xlane.xlu1 %846 }
 0x6f9   :  { %v849_v10 = vmul.f32 2.0, %v847_v19  ;;  %v1600_v55 = vpop.xlane.xlu0 %1599  ;;  %v2481_v19 = vmul.f32 %v2377_v8, %v2377_v8 }
 0x6fa   :  { %v1602_v29 = vmul.f32 2.0, %v1600_v55 }
 0x6fe   :  { %v2380_v23 = vpop.f32.mrf.mxu2 }
 0x700   :  { %v4755_v20 = vpop.f32.mrf.mxu0 }
 0x706   :  { %v2383_v43 = vpop.f32.mrf.mxu2 }
 0x707   :  { %v2485_v38 = vmul.f32 %v2383_v43, %v2383_v43 }
 0x708   :  { %v4760_v35 = vpop.f32.mrf.mxu0 }
 0x70e   :  { %v2386_v18 = vpop.f32.mrf.mxu2 }
 0x70f   :  { %v2487_v45 = vmul.f32 %v2386_v18, %v2386_v18 }
 0x710   :  { %v4768_v58 = vpop.f32.mrf.mxu0 }
 0x716   :  { %v2389_v6 = vpop.f32.mrf.mxu2 }
 0x717   :  { %v2489_v51 = vmul.f32 %v2389_v6, %v2389_v6  ;;  %v2483_v6 = vmul.f32 %v2380_v23, %v2380_v23  ;;  %v2477_v23 = vmul.f32 %v4736_v59, %v4736_v59  ;;  %v2473_v59 = vmul.f32 %v4724_v2, %v4724_v2 }
 0x71b   :  { %v827_v5 = vpop.xlane.xlu2 %826 }
 0x71c   :  { %v850_v0 = vsub.f32 %v827_v5, %v848_v62  ;;  %v2479_v5 = vmul.f32 %v4743_v54, %v4743_v54 }
 0x71e   :  { %v852_v46 = vadd.f32 10.0, %v850_v0  ;;  %v2392_v61 = vpop.f32.mrf.mxu2 }
 0x71f   :  { %v2491_v32 = vmul.f32 %v2392_v61, %v2392_v61 }
 0x720   :  { %v4757_v28 = vmax.f32 %v852_v46, 0.0 }
 0x722   :  { %2980 = vrsqrt.f32 %v4757_v28  ;;  %vm863_vm10 = vcmp.eq.f32.partialorder %v4757_v28, inf  ;;  %vm865_vm4 = vcmp.eq.f32.partialorder %v4757_v28, 0.0 }
 0x723   :  { %v831_v42 = vpop.xlane.xlu1 %830 }
 0x724   :  { %v851_v12 = vsub.f32 %v831_v42, %v849_v10  ;;  %v2475_v42 = vmul.f32 %v4729_v9, %v4729_v9 }
 0x726   :  { %v853_v52 = vadd.f32 10.0, %v851_v12  ;;  %v2395_v15 = vpop.f32.mrf.mxu2  ;;  %v2457_v12 = vpop.f32.mrf.mxu0 }
 0x727   :  { %v2493_v57 = vmul.f32 %v2395_v15, %v2395_v15 }
 0x728   :  { %v2981_v60 = vpop.eup %2980  ;;  %v4762_v3 = vmax.f32 %v853_v52, 0.0 }
 0x729   :  { %2495 = vmatpush.msra.mxu1 %v2493_v57  ;;  %v857_v34 = vmul.f32 %v2981_v60, %v4757_v28 }
 0x72a   :  { %2982 = vrsqrt.f32 %v4762_v3  ;;  %v1580_v50 = vpop.xlane.xlu0 %1579  ;;  %vm875_vm6 = vcmp.eq.f32.partialorder %v4762_v3, inf  ;;  %vm877_vm11 = vcmp.eq.f32.partialorder %v4762_v3, 0.0 }
 0x72b   :  { %v1603_v25 = vsub.f32 %v1580_v50, %v1601_v4  ;;  %v1584_v48 = vpop.xlane.xlu2 %1583  ;;  %2496 = vmatpush.msra.mxu1 %v2491_v32  ;;  %v858_v30 = vmul.f32 %v2981_v60, %v857_v34  ;;  %v866_v4 = vand.u32 2147483648, %v4757_v28  ;;  %v878_v32 = vand.u32 2147483648, %v4762_v3 }
 0x72c   :  { %v1604_v63 = vsub.f32 %v1584_v48, %v1602_v29  ;;  %v2471_v50 = vmul.f32 %v4717_v49, %v4717_v49  ;;  %v2469_v48 = vmul.f32 %v4711_v56, %v4711_v56  ;;  %v2467_v49 = vmul.f32 %v4707_v17, %v4707_v17 }
 0x72d   :  { %v1605_v13 = vadd.f32 10.0, %v1603_v25  ;;  %2497 = vmatpush.msra.mxu1 %v2489_v51  ;;  %v859_v26 = vmul.f32 0.5, %v858_v30 }
 0x72e   :  { %v1606_v1 = vadd.f32 10.0, %v1604_v63  ;;  %v2460_v56 = vpop.f32.mrf.mxu0 }
 0x72f   :  { %v4766_v22 = vmax.f32 %v1605_v13, 0.0  ;;  %2498 = vmatpush.msra.mxu1 %v2487_v45  ;;  %v860_v7 = vsub.f32 1.5, %v859_v26 }
 0x730   :  { %v2983_v40 = vpop.eup %2982  ;;  %v4770_v33 = vmax.f32 %v1606_v1, 0.0 }
 0x731   :  { %2984 = vrsqrt.f32 %v4766_v22  ;;  %2499 = vmatpush.msra.mxu1 %v2485_v38  ;;  %v861_v62 = vmul.f32 %v2981_v60, %v860_v7  ;;  %v869_v18 = vmul.f32 %v2983_v40, %v4762_v3  ;;  %v2465_v38 = vmul.f32 %v4703_v16, %v4703_v16 }
 0x732   :  { %2986 = vrsqrt.f32 %v4770_v33  ;;  %vm1616_vm13 = vcmp.eq.f32.partialorder %v4766_v22, inf  ;;  %v1619_v7 = vand.u32 2147483648, %v4766_v22  ;;  %vm1618_vm15 = vcmp.eq.f32.partialorder %v4766_v22, 0.0 }
 0x733   :  { %2500 = vmatpush.msra.mxu1 %v2483_v6  ;;  %v870_v43 = vmul.f32 %v2983_v40, %v869_v18  ;;  %v862_v0 = vmul.f32 %v861_v62, %v4757_v28  ;;  %vm1628_vm12 = vcmp.eq.f32.partialorder %v4770_v33, inf  ;;  %v1631_v17 = vand.u32 2147483648, %v4770_v33 }
 0x734   :  { %v2463_v62 = vmul.f32 %v4686_v47, %v4686_v47  ;;  %vm1630_vm0 = vcmp.eq.f32.partialorder %v4770_v33, 0.0  ;;  %v2490_v47 = vmul.f32 %v4768_v58, %v4768_v58  ;;  %v2482_v58 = vmul.f32 %v4751_v14, %v4751_v14 }
 0x735   :  { %2501 = vmatpush.msra.mxu1 %v2481_v19  ;;  %v871_v46 = vmul.f32 0.5, %v870_v43  ;;  %v864_v54 = vsel %vm863_vm10, %v4757_v28, %v862_v0  ;;  %v2494_v19 = vmul.f32 %v2460_v56, %v2460_v56  ;;  %v2492_v0 = vmul.f32 %v2457_v12, %v2457_v12  ;;  %vm5147_vm10 = vmmov %vm5143_vm2 }
 0x736   :  { %v867_v29 = vsel %vm865_vm4, %v866_v4, %v864_v54  ;;  %v2472_v14 = vmul.f32 %v4722_v24, %v4722_v24  ;;  %vm5148_vm4 = vmmov %vm5143_vm2 }
 0x737   :  { %v2985_v61 = vpop.eup %2984  ;;  %2502 = vmatpush.msra.mxu1 %v2479_v5  ;;  %v872_v10 = vsub.f32 1.5, %v871_v46  ;;  %v881_v30 = vsel %vm880_vm14, %v867_v29, 0.0 }
 0x738   :  { %v2987_v55 = vpop.eup %2986  ;;  %v1610_v8 = vmul.f32 %v2985_v61, %v4766_v22 }
 0x739   :  { %2503 = vmatpush.msra.mxu1 %v2477_v23  ;;  %v873_v52 = vmul.f32 %v2983_v40, %v872_v10  ;;  %v1622_v15 = vmul.f32 %v2987_v55, %v4770_v33  ;;  %v5138_v23 = vld [vmem:[#allocation20_spill] sm:$0xff]  ;;  %v2486_v10 = vmul.f32 %v4755_v20, %v4755_v20  ;;  %v2478_v20 = vmul.f32 %v4747_v36, %v4747_v36 }
 0x73a   :  { %v1611_v57 = vmul.f32 %v2985_v61, %v1610_v8  ;;  %vm5139_vm8 = vnez %v5138_v23  ;;  %v5140_v8 = vld [vmem:[#allocation17_spill] sm:$0xff]  ;;  %v2468_v36 = vmul.f32 %v4709_v39, %v4709_v39  ;;  %v2560_v39 = vpop.permute.xlu2 %2559 }
 0x73b   :  { %2504 = vmatpush.msra.mxu1 %v2475_v42  ;;  %v874_v60 = vmul.f32 %v873_v52, %v4762_v3  ;;  %v1623_v9 = vmul.f32 %v2987_v55, %v1622_v15  ;;  %vm5141_vm1 = vnez %v5140_v8  ;;  %v2474_v42 = vmul.f32 %v4731_v21, %v4731_v21 }
 0x73c   :  { %v1612_v34 = vmul.f32 0.5, %v1611_v57  ;;  %v2464_v21 = vmul.f32 %v4690_v41, %v4690_v41  ;;  %v2606_v4 = vsel %vm5143_vm2, %v2560_v39, 0.0 }
 0x73d   :  { %2505 = vmatpush.msra.mxu1 %v2473_v59  ;;  %v876_v2 = vsel %vm875_vm6, %v4762_v3, %v874_v60  ;;  %v1624_v51 = vmul.f32 0.5, %v1623_v9  ;;  %vm5150_vm6 = vmmov %vm5143_vm2 }
 0x73e   :  { %v879_v28 = vsel %vm877_vm11, %v878_v32, %v876_v2  ;;  %v1613_v25 = vsub.f32 1.5, %v1612_v34  ;;  %vm5151_vm11 = vmmov %vm5143_vm2 }
 0x73f   :  { %2506 = vmatpush.msra.mxu1 %v2471_v50  ;;  %v882_v63 = vsel %vm880_vm14, %v879_v28, 0.0  ;;  %v1625_v45 = vsub.f32 1.5, %v1624_v51 }
 0x740   :  { %v883_v13 = vadd.f32 %v882_v63, %v881_v30  ;;  %v1614_v26 = vmul.f32 %v2985_v61, %v1613_v25  ;;  %v5137_v61 = vmov 1.0  }
 0x741   :  { %2507 = vmatpush.msra.mxu1 %v2469_v48  ;;  %v1626_v1 = vmul.f32 %v2987_v55, %v1625_v45  ;;  %v2484_v55 = vmul.f32 %v4753_v31, %v4753_v31  ;;  %v2476_v31 = vmul.f32 %v4739_v27, %v4739_v27  ;;  %v2466_v27 = vmul.f32 %v4705_v37, %v4705_v37  ;;  %v2556_v37 = vpop.permute.xlu1 %2555 }
 0x742   :  { %884 = vadd.xlane.f32.xlu0 %v883_v13  ;;  %v1615_v3 = vmul.f32 %v1614_v26, %v4766_v22  ;;  %v2566_v12 = vpop.permute.xlu2 %2565  ;;  %v2603_v57 = vsel %vm5144_vm5, %v2556_v37, 0.0  ;;  %v51_v37 = vsel %vm5141_vm1, 1.0, %v5073_v44 }
 0x743   :  { %2508 = vmatpush.msra.mxu1 %v2467_v49  ;;  %v1627_v40 = vmul.f32 %v1626_v1, %v4770_v33  ;;  %v2612_v28 = vsel %vm5147_vm10, %v2566_v12, 0.0 }
 0x744   :  { %v1617_v6 = vsel %vm1616_vm13, %v4766_v22, %v1615_v3  ;;  %vm5152_vm13 = vmmov %vm5143_vm2 }
 0x745   :  { %2509 = vmatpush.msra.mxu1 %v2465_v38  ;;  %v1620_v16 = vsel %vm1618_vm15, %v1619_v7, %v1617_v6  ;;  %v1629_v18 = vsel %vm1628_vm12, %v4770_v33, %v1627_v40  ;;  %v2488_v33 = vmul.f32 %v4760_v35, %v4760_v35  ;;  %v2480_v35 = vmul.f32 %v4749_v11, %v4749_v11  ;;  %vm5153_vm15 = vmmov %vm5143_vm2 }
 0x746   :  { %v1632_v43 = vsel %vm1630_vm0, %v1631_v17, %v1629_v18  ;;  %v1633_v5 = vsel %vm880_vm14, %v1620_v16, 0.0  ;;  %v2470_v11 = vmul.f32 %v4714_v53, %v4714_v53  ;;  %v2558_v53 = vpop.permute.xlu0 %2557  ;;  %vm5154_vm12 = vmmov %vm5143_vm2 }
 0x747   :  { %2510 = vmatpush.msra.mxu1 %v2463_v62  ;;  %v1634_v22 = vsel %vm880_vm14, %v1632_v43, 0.0  ;;  %v2604_v41 = vsel %vm5142_vm7, %v2558_v53, 0.0  ;;  %vm5149_vm14 = vmmov %vm5143_vm2 }
 0x748   :  { %v1635_v46 = vadd.f32 %v1634_v22, %v1633_v5  ;;  %2912 = vmatmul.msk.f32.vlgmr.msra.gmra.mxu1 %vm5139_vm8, %v5137_v61  ;;  %v2605_v60 = vadd.f32 %v2604_v41, %v2603_v57  ;;  %vm5155_vm0 = vmmov %vm5143_vm2 }
 0x749   :  { %2518 = vmatpush.msrb.mxu1 %v2494_v19  ;;  %v2562_v59 = vpop.permute.xlu1 %2561  ;;  %vm5156_vm7 = vmmov %vm5155_vm0 }
 0x74a   :  { %1636 = vadd.xlane.f32.xlu2 %v1635_v46  ;;  %v2572_v52 = vpop.permute.xlu2 %2571  ;;  %v2607_v29 = vadd.f32 %v2606_v4, %v2605_v60  ;;  %v2608_v32 = vsel %vm5145_vm9, %v2562_v59, 0.0  ;;  %vm5157_vm2 = vmmov %vm5155_vm0 }
 0x74b   :  { %2519 = vmatpush.msrb.mxu1 %v2492_v0  ;;  %v2618_v26 = vsel %vm5150_vm6, %v2572_v52, 0.0 }
 0x74c   :  { %v2609_v51 = vadd.f32 %v2608_v32, %v2607_v29 }
 0x74d   :  { %2520 = vmatpush.msrb.mxu1 %v2490_v47 }
 0x74e   :  { %v2564_v24 = vpop.permute.xlu0 %2563 }
 0x74f   :  { %2521 = vmatpush.msrb.mxu1 %v2488_v33  ;;  %v2610_v50 = vsel %vm5146_vm3, %v2564_v24, 0.0 }
 0x750   :  { %2913 = vmatmul.msk.f32.gmra.mxu1 %vm5141_vm1, %v5137_v61  ;;  %v2611_v25 = vadd.f32 %v2610_v50, %v2609_v51 }
 0x751   :  { %2522 = vmatpush.msrb.mxu1 %v2486_v10  ;;  %v2568_v34 = vpop.permute.xlu1 %2567 }
 0x752   :  { %v2578_v9 = vpop.permute.xlu2 %2577  ;;  %v2614_v48 = vsel %vm5148_vm4, %v2568_v34, 0.0  ;;  %v2613_v30 = vadd.f32 %v2612_v28, %v2611_v25 }
 0x753   :  { %2523 = vmatpush.msrb.mxu1 %v2484_v55  ;;  %v2624_v62 = vsel %vm5153_vm15, %v2578_v9, 0.0 }
 0x754   :  { %v2615_v45 = vadd.f32 %v2614_v48, %v2613_v30 }
 0x755   :  { %2524 = vmatpush.msrb.mxu1 %v2482_v58 }
 0x756   :  { %v2570_v54 = vpop.permute.xlu0 %2569 }
 0x757   :  { %2525 = vmatpush.msrb.mxu1 %v2480_v35  ;;  %v2616_v63 = vsel %vm5149_vm14, %v2570_v54, 0.0  ;;  %v50_v54 = vsel %vm5139_vm8, 1.0, %v5073_v44 }
 0x758   :  { %v2617_v1 = vadd.f32 %v2616_v63, %v2615_v45 }
 0x759   :  { %2526 = vmatpush.msrb.mxu1 %v2478_v20  ;;  %v2574_v13 = vpop.permute.xlu1 %2573 }
 0x75a   :  { %v2584_v49 = vpop.permute.xlu2 %2583  ;;  %v2620_v38 = vsel %vm5151_vm11, %v2574_v13, 0.0  ;;  %v2619_v7 = vadd.f32 %v2618_v26, %v2617_v1 }
 0x75b   :  { %2527 = vmatpush.msrb.mxu1 %v2476_v31  ;;  %v2630_v10 = vsel %vm5156_vm7, %v2584_v49, 0.0 }
 0x75c   :  { %v2621_v17 = vadd.f32 %v2620_v38, %v2619_v7 }
 0x75d   :  { %2528 = vmatpush.msrb.mxu1 %v2474_v42 }
 0x75e   :  { %v2576_v15 = vpop.permute.xlu0 %2575 }
 0x75f   :  { %2529 = vmatpush.msrb.mxu1 %v2472_v14  ;;  %v2622_v40 = vsel %vm5152_vm13, %v2576_v15, 0.0 }
 0x760   :  { %v2623_v18 = vadd.f32 %v2622_v40, %v2621_v17 }
 0x761   :  { %2530 = vmatpush.msrb.mxu1 %v2470_v11  ;;  %v2580_v19 = vpop.permute.xlu1 %2579 }
 0x762   :  { %v2625_v5 = vadd.f32 %v2624_v62, %v2623_v18  ;;  %v2626_v46 = vsel %vm5155_vm0, %v2580_v19, 0.0 }
 0x763   :  { %2531 = vmatpush.msrb.mxu1 %v2468_v36 }
 0x764   :  { %v2627_v33 = vadd.f32 %v2626_v46, %v2625_v5 }
 0x765   :  { %2532 = vmatpush.msrb.mxu1 %v2466_v27 }
 0x766   :  { %v2582_v2 = vpop.permute.xlu0 %2581 }
 0x767   :  { %2533 = vmatpush.msrb.mxu1 %v2464_v21  ;;  %v2628_v22 = vsel %vm5154_vm12, %v2582_v2, 0.0 }
 0x768   :  { %2914 = vmatmul.msk.f32.vlgmr.msrb.gmra.mxu1 %vm5139_vm8, %v5137_v61  ;;  %v2629_v35 = vadd.f32 %v2628_v22, %v2627_v33 }
 0x769   :  { %v2586_v31 = vpop.permute.xlu1 %2585 }
 0x76a   :  { %v2631_v42 = vadd.f32 %v2630_v10, %v2629_v35  ;;  %v2632_v14 = vsel %vm5157_vm2, %v2586_v31, 0.0 }
 0x76c   :  { %v2633_v36 = vadd.f32 %v2632_v14, %v2631_v42 }
 0x76e   :  { %2634 = vadd.xlane.f32.xlu0 %v2633_v36 }
 0x770   :  { %2915 = vmatmul.msk.f32.gmra.mxu1 %vm5141_vm1, %v5137_v61 }
 0x7b5   :  { %v885_v3 = vpop.xlane.xlu0 %884 }
 0x7b6   :  { %v886_v56 = vrot.slane %v885_v3, 4 }
 0x7b8   :  { %v887_v6 = vadd.f32 %v886_v56, %v885_v3 }
 0x7ba   :  { %v888_v16 = vrot.slane %v887_v6, 2 }
 0x7bc   :  { %v889_v43 = vadd.f32 %v888_v16, %v887_v6 }
 0x7bd   :  { %v1637_v0 = vpop.xlane.xlu2 %1636 }
 0x7be   :  { %v1638_v61 = vrot.slane %v1637_v0, 4  ;;  %v890_v47 = vrot.slane %v889_v43, 1 }
 0x7c0   :  { %v1639_v55 = vadd.f32 %v1638_v61, %v1637_v0  ;;  %v891_v58 = vadd.f32 %v890_v47, %v889_v43 }
 0x7c2   :  { %v1640_v20 = vrot.slane %v1639_v55, 2  ;;  %2924 = vpush %v891_v58 }
 0x7c4   :  { %v1641_v11 = vadd.f32 %v1640_v20, %v1639_v55 }
 0x7c5   :  { %v2512_v53 = vpop.f32.mrf.mxu1 }
 0x7c6   :  { %v1642_v27 = vrot.slane %v1641_v11, 1 }
 0x7c8   :  { %v1643_v21 = vadd.f32 %v1642_v27, %v1641_v11 }
 0x7ca   :  { %2926 = vpush %v1643_v21 }
 0x7cd   :  { %v2515_v39 = vpop.f32.mrf.mxu1 }
 0x7e1   :  { %v2635_v23 = vpop.xlane.xlu0 %2634 }
 0x7e2   :  { %v2636_v57 = vrot.slane %v2635_v23, 4 }
 0x7e4   :  { %v2637_v60 = vadd.f32 %v2636_v57, %v2635_v23 }
 0x7e5   :  { %v2535_v24 = vpop.f32.mrf.mxu1 }
 0x7e6   :  { %v2541_v12 = vadd.f32 %v2535_v24, %v2512_v53  ;;  %v2638_v8 = vrot.slane %v2637_v60, 2 }
 0x7e8   :  { %v2543_v59 = vmul.f32 %v2541_v12, %v50_v54  ;;  %v2639_v32 = vadd.f32 %v2638_v8, %v2637_v60 }
 0x7ea   :  { %v2640_v2 = vrot.slane %v2639_v32, 1 }
 0x7ec   :  { %v2641_v25 = vadd.f32 %v2640_v2, %v2639_v32 }
 0x7ed   :  { %v2538_v52 = vpop.f32.mrf.mxu1 }
 0x7ee   :  { %v2542_v15 = vadd.f32 %v2538_v52, %v2515_v39 }
 0x7f0   :  { %v2544_v41 = vmul.f32 %v2542_v15, %v51_v37 }
 0x7f2   :  { %v2545_v4 = vadd.f32 %v2544_v41, %v2543_v59 }
 0x7f3   :  { %s2925_s16 = spop %2924 }
 0x7f4   :  { %2546 = vadd.xlane.f32.xlu1 %v2545_v4  ;;  %s893_s27 = smul.f32 0.0625, %s2925_s16 }
 0x7f6   :  { %2680 = sst [smem:[#allocation3 + $0x3]] %s893_s27 }
 0x7fb   :  { %s2927_s28 = spop %2926 }
 0x7fc   :  { %s1645_s29 = smul.f32 0.0625, %s2927_s28 }
 0x7fe   :  { %s4881_s30 = sadd.f32 %s1645_s29, %s893_s27 }
 0x7ff   :  { %2678 = sst [smem:[#allocation3 + $0x2]] %s1645_s29 }
 0x800   :  { %s2671_s7 = smul.f32 %s4881_s30, %s4890_s0 }
 0x867   :  { %v2547_v9 = vpop.xlane.xlu1 %2546 }
 0x868   :  { %v2548_v44 = vrot.slane %v2547_v9, 4 }
 0x86a   :  { %v2549_v29 = vadd.f32 %v2548_v44, %v2547_v9 }
 0x86c   :  { %v2550_v34 = vrot.slane %v2549_v29, 2 }
 0x86e   :  { %v2551_v50 = vadd.f32 %v2550_v34, %v2549_v29 }
 0x870   :  { %v2552_v51 = vrot.slane %v2551_v50, 1 }
 0x872   :  { %v2553_v28 = vadd.f32 %v2552_v51, %v2551_v50 }
 0x874   :  { %2928 = vpush %v2553_v28 }
 0x875   :  { %2930 = vpush %v2641_v25 }
 0x8a5   :  { %s2929_s3 = spop %2928 }
 0x8a6   :  { %v2643_v48 = vstv %s2929_s3  ;;  %s2931_s4 = spop %2930 }
 0x8a7   :  { %2988 = vrsqrt.f32 %v2643_v48  ;;  %v2657_v30 = vstv %s2931_s4  ;;  %vm2651_vm1 = vcmp.eq.f32.partialorder %v2643_v48, inf  ;;  %v2654_v62 = vand.u32 2147483648, %v2643_v48 }
 0x8a8   :  { %2990 = vrsqrt.f32 %v2657_v30  ;;  %vm2664_vm5 = vweird.f32 %v2657_v30  ;;  %vm2653_vm9 = vcmp.eq.f32.partialorder %v2643_v48, 0.0 }
 0x8ad   :  { %v2989_v63 = vpop.eup %2988 }
 0x8ae   :  { %v2991_v45 = vpop.eup %2990  ;;  %v2645_v13 = vmul.f32 %v2989_v63, %v2643_v48 }
 0x8af   :  { %v2659_v26 = vmul.f32 %v2991_v45, %v2657_v30  ;;  %vm2665_vm8 = vweird.f32 %v2991_v45 }
 0x8b0   :  { %v2646_v49 = vmul.f32 %v2989_v63, %v2645_v13  ;;  %vm2666_vm3 = vmor %vm2664_vm5, %vm2665_vm8 }
 0x8b1   :  { %v2660_v1 = vmul.f32 %v2991_v45, %v2659_v26 }
 0x8b2   :  { %v2647_v3 = vmul.f32 0.5, %v2646_v49 }
 0x8b3   :  { %v2661_v38 = vmul.f32 0.5, %v2660_v1 }
 0x8b4   :  { %v2648_v56 = vsub.f32 1.5, %v2647_v3 }
 0x8b5   :  { %v2662_v7 = vsub.f32 1.5, %v2661_v38 }
 0x8b6   :  { %v2649_v40 = vmul.f32 %v2989_v63, %v2648_v56 }
 0x8b7   :  { %v2663_v17 = vmul.f32 %v2991_v45, %v2662_v7 }
 0x8b8   :  { %v2650_v6 = vmul.f32 %v2649_v40, %v2643_v48 }
 0x8b9   :  { %v2667_v19 = vsel %vm2666_vm3, %v2991_v45, %v2663_v17 }
 0x8ba   :  { %v2652_v16 = vsel %vm2651_vm1, %v2643_v48, %v2650_v6 }
 0x8bb   :  { %v2655_v18 = vsel %vm2653_vm9, %v2654_v62, %v2652_v16 }
 0x8bc   :  { %2932 = vpush %v2655_v18 }
 0x8bd   :  { %2934 = vpush %v2667_v19 }
 0x8ed   :  { %s2933_s8 = spop %2932 }
 0x8ee   :  { %s2935_s9 = spop %2934 }
 0x8ef   :  { %s2669_s13 = smul.f32 %s2935_s9, %s2933_s8 }
 0x8f1   :  { %s2672_s14 = sadd.f32 %s2671_s7, %s2669_s13 }
 0x8f2   :  { %2676 = sst [smem:[#allocation3 + $0x1]] %s2669_s13 }
 0x8f3   :  { %2674 = sst [smem:[#allocation3]] %s2672_s14 }
 0x8f4   :  { %2689 = dma.smem_to_vmem %s3023_s15, 16, %s2687_s12, [#allocation4]  }
 0x8f5   :  { %3014 = dma.done.wait [#allocation4], 16  }
 0x8f6   :  { %3015 = vsyncadd [#allocation4], 4294967280 }
 0x8f7   :  { %2694 = sfence }
 0x8f8   :  { %2695 = vsyncpa [#allocation4], 1 }

</bundles_post_ra>
